<compile_context>
chip_gen: v7x
topology: tpu7x:2x2x1
jax: 0.10.0
libtpu: 0.0.40
codegen_flags: <defaults>
</compile_context>

<pallas_src>
import functools

import jax
import jax.numpy as jnp
from jax.experimental import pallas as pl
from jax.experimental.pallas import tpu as pltpu


_NEG_BIG = -1e30  # large finite negative: safer than -inf if masking ever changes


def _layernorm(x, gamma, beta, eps=1e-5):
    # PyTorch nn.LayerNorm semantics: biased variance, eps inside rsqrt. f32 stats.
    mean = jnp.mean(x, axis=-1, keepdims=True)
    xc = x - mean
    var = jnp.mean(xc * xc, axis=-1, keepdims=True)
    return xc * jax.lax.rsqrt(var + eps) * gamma + beta


def block_kernel(xq_ref, xkv_ref, ln1_g_ref, ln1_b_ref,
                 wq_ref, wk_ref, wv_ref, wproj_ref, bproj_ref,
                 ln2_g_ref, ln2_b_ref, w1_ref, b1_ref, w2_ref, b2_ref,
                 out_ref, *, num_heads, head_size, batched_heads):
    f32, bf16 = jnp.float32, jnp.bfloat16

    xq = xq_ref[0].astype(f32)      # (TQ, C) query rows of this tile
    xkv = xkv_ref[0].astype(f32)    # (T,  C) full sequence (for keys/values)
    TQ, C = xq.shape
    T = xkv.shape[0]
    H, D = num_heads, head_size
    q0 = pl.program_id(1) * TQ      # global row offset of this query tile

    # ------------------- x + sa(ln1(x)) -------------------
    g1 = ln1_g_ref[0].astype(f32)
    beta1 = ln1_b_ref[0].astype(f32)
    hq = _layernorm(xq, g1, beta1)      # (TQ, C) f32
    hkv = _layernorm(xkv, g1, beta1)    # (T,  C) f32

    scale = jnp.float32(head_size ** -0.5)
    # bf16 only at MXU inputs; f32 accumulation. Scale folded into q once.
    q = jnp.dot(hq.astype(bf16), wq_ref[...], preferred_element_type=f32) * scale
    k = jnp.dot(hkv.astype(bf16), wk_ref[...], preferred_element_type=f32)
    v = jnp.dot(hkv.astype(bf16), wv_ref[...], preferred_element_type=f32)

    row = q0 + jax.lax.broadcasted_iota(jnp.int32, (TQ, T), 0)
    col = jax.lax.broadcasted_iota(jnp.int32, (TQ, T), 1)
    mask_bias = jnp.where(row >= col, jnp.float32(0.0), jnp.float32(_NEG_BIG))

    if batched_heads:
        # Heads batched on the leading axis -> one big MXU contraction per step.
        qh = pltpu.einshape("qhd->hqd", q.reshape(TQ, H, D)).astype(bf16)  # (H,TQ,D)
        kh = pltpu.einshape("khd->hkd", k.reshape(T, H, D)).astype(bf16)   # (H,T,D)
        vh = pltpu.einshape("khd->hkd", v.reshape(T, H, D)).astype(bf16)   # (H,T,D)
        s = jnp.einsum("hqd,hkd->hqk", qh, kh, preferred_element_type=f32)
        s = s + mask_bias[None, :, :]
        s = s - jnp.max(s, axis=-1, keepdims=True)
        p = jnp.exp(s)
        p = p * pl.reciprocal(jnp.sum(p, axis=-1, keepdims=True), approx=True)
        ctx = jnp.einsum("hqk,hkd->hqd", p.astype(bf16), vh,
                         preferred_element_type=f32)                       # (H,TQ,D)
        attn = pltpu.einshape("hqd->qhd", ctx).reshape(TQ, C)
    else:
        # Conservative per-head path (kept as a compatibility fallback).
        head_outs = []
        for hd in range(H):
            sl = slice(hd * D, (hd + 1) * D)
            qh = q[:, sl].astype(bf16)
            kh = k[:, sl].astype(bf16)
            vh = v[:, sl].astype(bf16)
            s = jnp.einsum("qd,kd->qk", qh, kh, preferred_element_type=f32)
            s = s + mask_bias
            s = s - jnp.max(s, axis=-1, keepdims=True)
            p = jnp.exp(s)
            p = p * pl.reciprocal(jnp.sum(p, axis=-1, keepdims=True), approx=True)
            head_outs.append(jnp.einsum("qk,kd->qd", p.astype(bf16), vh,
                                        preferred_element_type=f32))
        attn = jnp.concatenate(head_outs, axis=-1)

    attn = jnp.dot(attn.astype(bf16), wproj_ref[...], preferred_element_type=f32)
    attn = attn + bproj_ref[0].astype(f32)
    # TODO(synk): attention/residual/FFN dropout omitted (deterministic eval mode).
    x1 = xq + attn

    # ------------------- x + ffwd(ln2(x)) -------------------
    g2 = ln2_g_ref[0].astype(f32)
    beta2 = ln2_b_ref[0].astype(f32)
    h2 = _layernorm(x1, g2, beta2)
    f = jnp.dot(h2.astype(bf16), w1_ref[...], preferred_element_type=f32)
    f = f + b1_ref[0].astype(f32)
    f = jnp.maximum(f, 0.0)
    f = jnp.dot(f.astype(bf16), w2_ref[...], preferred_element_type=f32)
    f = f + b2_ref[0].astype(f32)
    out_ref[0] = (x1 + f).astype(out_ref.dtype)


def _build_block_call(B, T, C, num_heads, q_tile, x_dtype, optimized):
    head_size = C // num_heads
    hidden = 4 * C
    n_qt = T // q_tile

    # Constant-index operands (weights/biases) don't need double buffering.
    w_mode = dict(pipeline_mode=pl.Buffered(1)) if optimized else {}

    def const_spec(shape):
        zeros = (0,) * len(shape)
        return pl.BlockSpec(shape, lambda b, qi, _z=zeros: _z, **w_mode)

    in_specs = [
        pl.BlockSpec((1, q_tile, C), lambda b, qi: (b, qi, 0)),   # x (query rows)
        pl.BlockSpec((1, T, C), lambda b, qi: (b, 0, 0)),         # x (full seq, K/V)
        const_spec((1, C)), const_spec((1, C)),                   # ln1 gamma/beta
        const_spec((C, C)), const_spec((C, C)), const_spec((C, C)),  # Wq, Wk, Wv
        const_spec((C, C)), const_spec((1, C)),                   # Wproj, bproj
        const_spec((1, C)), const_spec((1, C)),                   # ln2 gamma/beta
        const_spec((C, hidden)), const_spec((1, hidden)),         # W1, b1
        const_spec((hidden, C)), const_spec((1, C)),              # W2, b2
    ]

    kernel = functools.partial(block_kernel, num_heads=num_heads,
                               head_size=head_size, batched_heads=optimized)

    # Advisory cost estimate for the XLA scheduler.
    itemsize = jnp.dtype(x_dtype).itemsize
    flops = 2 * B * (T * C * C                 # q projection
                     + 2 * n_qt * T * C * C    # k/v projections (per query tile)
                     + 2 * T * T * C           # scores + p@v
                     + T * C * C               # output projection
                     + 2 * T * C * hidden)     # FFN
    transcendentals = B * num_heads * T * T + 4 * B * T
    weight_bytes = 2 * (4 * C * C + 2 * C * hidden) + 4 * (6 * C + hidden)
    act_bytes = itemsize * B * (n_qt * (q_tile + T) * C + T * C)
    cost = pl.CostEstimate(flops=int(flops),
                           transcendentals=int(transcendentals),
                           bytes_accessed=int(weight_bytes + act_bytes))

    return pl.pallas_call(
        kernel,
        out_shape=jax.ShapeDtypeStruct((B, T, C), x_dtype),
        grid=(B, n_qt),
        in_specs=in_specs,
        out_specs=pl.BlockSpec((1, q_tile, C), lambda b, qi: (b, qi, 0)),
        compiler_params=pltpu.CompilerParams(
            dimension_semantics=("parallel", "parallel"),
            vmem_limit_bytes=64 * 1024 * 1024),
        cost_estimate=cost,
    )


def transformer_block(x, params, *, num_heads, q_tile=None):
    B, T, C = x.shape
    assert C % num_heads == 0, "model_dimension must be divisible by num_heads"
    if q_tile is None:
        for cand in (256, 128, 64, 32, 16, 8):
            if T % cand == 0:
                q_tile = cand
                break
        else:
            q_tile = T
    assert T % q_tile == 0

    # Prefer the fully optimized build (batched-head einsums + single-buffered
    # weights); fall back to a conservative build if this Pallas version rejects
    # any of those options, so the kernel always runs.
    last_err = None
    for optimized in (True, False):
        try:
            call = _build_block_call(B, T, C, num_heads, q_tile, x.dtype, optimized)
            out = call(x, x, *params)   # x passed twice: query tile + full-seq K/V
            return jax.block_until_ready(out)
        except Exception as e:  # noqa: BLE001 - deliberate compatibility fallback
            last_err = e
    raise last_err


def init_params(key, model_dimension, w_dtype=jnp.bfloat16):
    # Weights live in HBM as bf16 (MXU-native); LN params & biases stay f32.
    C = model_dimension
    hidden = 4 * C
    ks = jax.random.split(key, 6)
    std = 0.02

    def w(k, shape):
        return (jax.random.normal(k, shape, jnp.float32) * std).astype(w_dtype)

    ln1_g = jnp.ones((1, C), jnp.float32)
    ln1_b = jnp.zeros((1, C), jnp.float32)
    wq, wk, wv = w(ks[0], (C, C)), w(ks[1], (C, C)), w(ks[2], (C, C))
    wproj = w(ks[3], (C, C))
    bproj = jnp.zeros((1, C), jnp.float32)
    ln2_g = jnp.ones((1, C), jnp.float32)
    ln2_b = jnp.zeros((1, C), jnp.float32)
    w1 = w(ks[4], (C, hidden))
    b1 = jnp.zeros((1, hidden), jnp.float32)
    w2 = w(ks[5], (hidden, C))
    b2 = jnp.zeros((1, C), jnp.float32)
    return (ln1_g, ln1_b, wq, wk, wv, wproj, bproj,
            ln2_g, ln2_b, w1, b1, w2, b2)


if __name__ == "__main__":
    B, T = 2, 8                 # batch, context_window (toy; prod: C,T multiples of 128)
    model_dimension = 32
    num_heads = 4

    key = jax.random.PRNGKey(0)
    kx, kp = jax.random.split(key)
    x = jax.random.normal(kx, (B, T, model_dimension), jnp.float32)
    params = init_params(kp, model_dimension)

    out = transformer_block(x, params, num_heads=num_heads)
    out = jax.block_until_ready(out)
    assert out.shape == (B, T, model_dimension)
    assert bool(jnp.all(jnp.isfinite(out)))
    print("KERNEL_OK")
</pallas_src>

<mosaic_0001>
module attributes {stable_mosaic.version = 11 : i64} {
  func.func @block_kernel(%arg0: i32, %arg1: i32, %arg2: memref<1x8x32xf32, #tpu.memory_space<vmem>>, %arg3: memref<1x8x32xf32, #tpu.memory_space<vmem>>, %arg4: memref<1x32xf32, #tpu.memory_space<vmem>>, %arg5: memref<1x32xf32, #tpu.memory_space<vmem>>, %arg6: memref<32x32xbf16, #tpu.memory_space<vmem>>, %arg7: memref<32x32xbf16, #tpu.memory_space<vmem>>, %arg8: memref<32x32xbf16, #tpu.memory_space<vmem>>, %arg9: memref<32x32xbf16, #tpu.memory_space<vmem>>, %arg10: memref<1x32xf32, #tpu.memory_space<vmem>>, %arg11: memref<1x32xf32, #tpu.memory_space<vmem>>, %arg12: memref<1x32xf32, #tpu.memory_space<vmem>>, %arg13: memref<32x128xbf16, #tpu.memory_space<vmem>>, %arg14: memref<1x128xf32, #tpu.memory_space<vmem>>, %arg15: memref<128x32xbf16, #tpu.memory_space<vmem>>, %arg16: memref<1x32xf32, #tpu.memory_space<vmem>>, %arg17: memref<1x8x32xf32, #tpu.memory_space<vmem>>) attributes {dimension_semantics = [#tpu.dimension_semantics<parallel>, #tpu.dimension_semantics<parallel>], iteration_bounds = array<i64: 2, 1>, scalar_prefetch = 0 : i64, scratch_operands = 0 : i64, tpu.core_type = #tpu.core_type<tc>, window_params = [{transform_indices = @transform_0, window_bounds = array<i64: 1, 8, 32>}, {transform_indices = @transform_1, window_bounds = array<i64: 1, 8, 32>}, {pipeline_mode = #tpu.pipeline_mode<synchronous>, transform_indices = @transform_2, window_bounds = array<i64: 1, 32>}, {pipeline_mode = #tpu.pipeline_mode<synchronous>, transform_indices = @transform_3, window_bounds = array<i64: 1, 32>}, {pipeline_mode = #tpu.pipeline_mode<synchronous>, transform_indices = @transform_4, window_bounds = array<i64: 32, 32>}, {pipeline_mode = #tpu.pipeline_mode<synchronous>, transform_indices = @transform_5, window_bounds = array<i64: 32, 32>}, {pipeline_mode = #tpu.pipeline_mode<synchronous>, transform_indices = @transform_6, window_bounds = array<i64: 32, 32>}, {pipeline_mode = #tpu.pipeline_mode<synchronous>, transform_indices = @transform_7, window_bounds = array<i64: 32, 32>}, {pipeline_mode = #tpu.pipeline_mode<synchronous>, transform_indices = @transform_8, window_bounds = array<i64: 1, 32>}, {pipeline_mode = #tpu.pipeline_mode<synchronous>, transform_indices = @transform_9, window_bounds = array<i64: 1, 32>}, {pipeline_mode = #tpu.pipeline_mode<synchronous>, transform_indices = @transform_10, window_bounds = array<i64: 1, 32>}, {pipeline_mode = #tpu.pipeline_mode<synchronous>, transform_indices = @transform_11, window_bounds = array<i64: 32, 128>}, {pipeline_mode = #tpu.pipeline_mode<synchronous>, transform_indices = @transform_12, window_bounds = array<i64: 1, 128>}, {pipeline_mode = #tpu.pipeline_mode<synchronous>, transform_indices = @transform_13, window_bounds = array<i64: 128, 32>}, {pipeline_mode = #tpu.pipeline_mode<synchronous>, transform_indices = @transform_14, window_bounds = array<i64: 1, 32>}, {transform_indices = @transform_15, window_bounds = array<i64: 1, 8, 32>}]} {
    %c0 = arith.constant 0 : index
    %c0_0 = arith.constant 0 : index
    %c0_1 = arith.constant 0 : index
    %0 = vector.load %arg2[%c0, %c0_0, %c0_1] : memref<1x8x32xf32, #tpu.memory_space<vmem>>, vector<1x8x32xf32>
    %1 = vector.shape_cast %0 : vector<1x8x32xf32> to vector<8x32xf32>
    %c0_2 = arith.constant 0 : index
    %c0_3 = arith.constant 0 : index
    %c0_4 = arith.constant 0 : index
    %2 = vector.load %arg3[%c0_2, %c0_3, %c0_4] : memref<1x8x32xf32, #tpu.memory_space<vmem>>, vector<1x8x32xf32>
    %3 = vector.shape_cast %2 : vector<1x8x32xf32> to vector<8x32xf32>
    %c8_i32 = arith.constant 8 : i32
    %4 = arith.muli %arg1, %c8_i32 : i32
    %c0_5 = arith.constant 0 : index
    %c0_6 = arith.constant 0 : index
    %5 = vector.load %arg4[%c0_5, %c0_6] : memref<1x32xf32, #tpu.memory_space<vmem>>, vector<1x32xf32>
    %6 = vector.shape_cast %5 : vector<1x32xf32> to vector<32xf32>
    %c0_7 = arith.constant 0 : index
    %c0_8 = arith.constant 0 : index
    %7 = vector.load %arg5[%c0_7, %c0_8] : memref<1x32xf32, #tpu.memory_space<vmem>>, vector<1x32xf32>
    %8 = vector.shape_cast %7 : vector<1x32xf32> to vector<32xf32>
    %cst = arith.constant dense<0.000000e+00> : vector<8xf32>
    %9 = vector.multi_reduction <add>, %1, %cst [1] : vector<8x32xf32> to vector<8xf32>
    %10 = vector.shape_cast %9 : vector<8xf32> to vector<8x1xf32>
    %cst_9 = arith.constant 3.200000e+01 : f32
    %11 = vector.broadcast %cst_9 : f32 to vector<8x1xf32>
    %12 = arith.divf %10, %11 : vector<8x1xf32>
    %13 = vector.broadcast %12 : vector<8x1xf32> to vector<8x32xf32>
    %14 = arith.subf %1, %13 : vector<8x32xf32>
    %15 = arith.mulf %14, %14 : vector<8x32xf32>
    %cst_10 = arith.constant dense<0.000000e+00> : vector<8xf32>
    %16 = vector.multi_reduction <add>, %15, %cst_10 [1] : vector<8x32xf32> to vector<8xf32>
    %17 = vector.shape_cast %16 : vector<8xf32> to vector<8x1xf32>
    %cst_11 = arith.constant 3.200000e+01 : f32
    %18 = vector.broadcast %cst_11 : f32 to vector<8x1xf32>
    %19 = arith.divf %17, %18 : vector<8x1xf32>
    %cst_12 = arith.constant 9.99999974E-6 : f32
    %20 = vector.broadcast %cst_12 : f32 to vector<8x1xf32>
    %21 = arith.addf %19, %20 : vector<8x1xf32>
    %22 = math.rsqrt %21 : vector<8x1xf32>
    %23 = vector.broadcast %22 : vector<8x1xf32> to vector<8x32xf32>
    %24 = arith.mulf %14, %23 : vector<8x32xf32>
    %25 = vector.shape_cast %6 : vector<32xf32> to vector<1x32xf32>
    %26 = vector.broadcast %25 : vector<1x32xf32> to vector<8x32xf32>
    %27 = arith.mulf %24, %26 : vector<8x32xf32>
    %28 = vector.shape_cast %8 : vector<32xf32> to vector<1x32xf32>
    %29 = vector.broadcast %28 : vector<1x32xf32> to vector<8x32xf32>
    %30 = arith.addf %27, %29 : vector<8x32xf32>
    %cst_13 = arith.constant dense<0.000000e+00> : vector<8xf32>
    %31 = vector.multi_reduction <add>, %3, %cst_13 [1] : vector<8x32xf32> to vector<8xf32>
    %32 = vector.shape_cast %31 : vector<8xf32> to vector<8x1xf32>
    %cst_14 = arith.constant 3.200000e+01 : f32
    %33 = vector.broadcast %cst_14 : f32 to vector<8x1xf32>
    %34 = arith.divf %32, %33 : vector<8x1xf32>
    %35 = vector.broadcast %34 : vector<8x1xf32> to vector<8x32xf32>
    %36 = arith.subf %3, %35 : vector<8x32xf32>
    %37 = arith.mulf %36, %36 : vector<8x32xf32>
    %cst_15 = arith.constant dense<0.000000e+00> : vector<8xf32>
    %38 = vector.multi_reduction <add>, %37, %cst_15 [1] : vector<8x32xf32> to vector<8xf32>
    %39 = vector.shape_cast %38 : vector<8xf32> to vector<8x1xf32>
    %cst_16 = arith.constant 3.200000e+01 : f32
    %40 = vector.broadcast %cst_16 : f32 to vector<8x1xf32>
    %41 = arith.divf %39, %40 : vector<8x1xf32>
    %cst_17 = arith.constant 9.99999974E-6 : f32
    %42 = vector.broadcast %cst_17 : f32 to vector<8x1xf32>
    %43 = arith.addf %41, %42 : vector<8x1xf32>
    %44 = math.rsqrt %43 : vector<8x1xf32>
    %45 = vector.broadcast %44 : vector<8x1xf32> to vector<8x32xf32>
    %46 = arith.mulf %36, %45 : vector<8x32xf32>
    %47 = vector.shape_cast %6 : vector<32xf32> to vector<1x32xf32>
    %48 = vector.broadcast %47 : vector<1x32xf32> to vector<8x32xf32>
    %49 = arith.mulf %46, %48 : vector<8x32xf32>
    %50 = vector.shape_cast %8 : vector<32xf32> to vector<1x32xf32>
    %51 = vector.broadcast %50 : vector<1x32xf32> to vector<8x32xf32>
    %52 = arith.addf %49, %51 : vector<8x32xf32>
    %53 = arith.truncf %30 : vector<8x32xf32> to vector<8x32xbf16>
    %c0_18 = arith.constant 0 : index
    %c0_19 = arith.constant 0 : index
    %54 = vector.load %arg6[%c0_18, %c0_19] : memref<32x32xbf16, #tpu.memory_space<vmem>>, vector<32x32xbf16>
    %cst_20 = arith.constant dense<0.000000e+00> : vector<8x32xf32>
    %55 = tpu.matmul %53, %54, %cst_20 {dimension_numbers = #tpu.dot_dimension_numbers<[1], [0], [0], [1], [0, 0, 1, 1], [], []>} : vector<8x32xbf16>, vector<32x32xbf16>, vector<8x32xf32> -> vector<8x32xf32>
    %cst_21 = arith.constant 0.353553385 : f32
    %56 = vector.broadcast %cst_21 : f32 to vector<8x32xf32>
    %57 = arith.mulf %55, %56 : vector<8x32xf32>
    %58 = arith.truncf %52 : vector<8x32xf32> to vector<8x32xbf16>
    %c0_22 = arith.constant 0 : index
    %c0_23 = arith.constant 0 : index
    %59 = vector.load %arg7[%c0_22, %c0_23] : memref<32x32xbf16, #tpu.memory_space<vmem>>, vector<32x32xbf16>
    %cst_24 = arith.constant dense<0.000000e+00> : vector<8x32xf32>
    %60 = tpu.matmul %58, %59, %cst_24 {dimension_numbers = #tpu.dot_dimension_numbers<[1], [0], [0], [1], [0, 0, 1, 1], [], []>} : vector<8x32xbf16>, vector<32x32xbf16>, vector<8x32xf32> -> vector<8x32xf32>
    %61 = arith.truncf %52 : vector<8x32xf32> to vector<8x32xbf16>
    %c0_25 = arith.constant 0 : index
    %c0_26 = arith.constant 0 : index
    %62 = vector.load %arg8[%c0_25, %c0_26] : memref<32x32xbf16, #tpu.memory_space<vmem>>, vector<32x32xbf16>
    %cst_27 = arith.constant dense<0.000000e+00> : vector<8x32xf32>
    %63 = tpu.matmul %61, %62, %cst_27 {dimension_numbers = #tpu.dot_dimension_numbers<[1], [0], [0], [1], [0, 0, 1, 1], [], []>} : vector<8x32xbf16>, vector<32x32xbf16>, vector<8x32xf32> -> vector<8x32xf32>
    %64 = tpu.iota {dimensions = array<i32: 0>} : vector<8x8xi32>
    %65 = vector.broadcast %4 : i32 to vector<8x8xi32>
    %66 = arith.addi %65, %64 : vector<8x8xi32>
    %67 = tpu.iota {dimensions = array<i32: 1>} : vector<8x8xi32>
    %68 = arith.cmpi sge, %66, %67 : vector<8x8xi32>
    %cst_28 = arith.constant 0.000000e+00 : f32
    %cst_29 = arith.constant -1.000000e+30 : f32
    %69 = vector.broadcast %cst_28 : f32 to vector<8x8xf32>
    %70 = vector.broadcast %cst_29 : f32 to vector<8x8xf32>
    %71 = arith.select %68, %69, %70 : vector<8x8xi1>, vector<8x8xf32>
    %72 = vector.shape_cast %57 : vector<8x32xf32> to vector<8x4x8xf32>
    %73 = tpu.transpose %72, [1, 0, 2] : vector<8x4x8xf32> -> vector<4x8x8xf32>
    %74 = arith.truncf %73 : vector<4x8x8xf32> to vector<4x8x8xbf16>
    %75 = vector.shape_cast %60 : vector<8x32xf32> to vector<8x4x8xf32>
    %76 = tpu.transpose %75, [1, 0, 2] : vector<8x4x8xf32> -> vector<4x8x8xf32>
    %77 = arith.truncf %76 : vector<4x8x8xf32> to vector<4x8x8xbf16>
    %78 = vector.shape_cast %63 : vector<8x32xf32> to vector<8x4x8xf32>
    %79 = tpu.transpose %78, [1, 0, 2] : vector<8x4x8xf32> -> vector<4x8x8xf32>
    %80 = arith.truncf %79 : vector<4x8x8xf32> to vector<4x8x8xbf16>
    "tpu.trace_start"() <{level = 10 : i32, message = "hqd,hkd->hqk"}> : () -> ()
    %cst_30 = arith.constant dense<0.000000e+00> : vector<4x8x8xf32>
    %81 = tpu.matmul %74, %77, %cst_30 {dimension_numbers = #tpu.dot_dimension_numbers<[2], [2], [1], [1], [0, 0, 0, 1, 1, 1], [0], [0]>} : vector<4x8x8xbf16>, vector<4x8x8xbf16>, vector<4x8x8xf32> -> vector<4x8x8xf32>
    "tpu.trace_stop"() : () -> ()
    %82 = vector.shape_cast %71 : vector<8x8xf32> to vector<1x8x8xf32>
    %83 = vector.broadcast %82 : vector<1x8x8xf32> to vector<4x8x8xf32>
    %84 = arith.addf %81, %83 : vector<4x8x8xf32>
    %cst_31 = arith.constant dense<0xFF800000> : vector<4x8xf32>
    %85 = vector.multi_reduction <maximumf>, %84, %cst_31 [2] : vector<4x8x8xf32> to vector<4x8xf32>
    %86 = vector.shape_cast %85 : vector<4x8xf32> to vector<4x8x1xf32>
    %87 = vector.broadcast %86 : vector<4x8x1xf32> to vector<4x8x8xf32>
    %88 = arith.subf %84, %87 : vector<4x8x8xf32>
    %89 = math.exp %88 : vector<4x8x8xf32>
    %cst_32 = arith.constant dense<0.000000e+00> : vector<4x8xf32>
    %90 = vector.multi_reduction <add>, %89, %cst_32 [2] : vector<4x8x8xf32> to vector<4x8xf32>
    %91 = vector.shape_cast %90 : vector<4x8xf32> to vector<4x8x1xf32>
    %92 = tpu.reciprocal %91 {approx = true} : vector<4x8x1xf32> -> vector<4x8x1xf32>
    %93 = vector.broadcast %92 : vector<4x8x1xf32> to vector<4x8x8xf32>
    %94 = arith.mulf %89, %93 : vector<4x8x8xf32>
    %95 = arith.truncf %94 : vector<4x8x8xf32> to vector<4x8x8xbf16>
    "tpu.trace_start"() <{level = 10 : i32, message = "hqk,hkd->hqd"}> : () -> ()
    %cst_33 = arith.constant dense<0.000000e+00> : vector<4x8x8xf32>
    %96 = tpu.matmul %95, %80, %cst_33 {dimension_numbers = #tpu.dot_dimension_numbers<[2], [1], [1], [2], [0, 0, 0, 1, 1, 2], [0], [0]>} : vector<4x8x8xbf16>, vector<4x8x8xbf16>, vector<4x8x8xf32> -> vector<4x8x8xf32>
    "tpu.trace_stop"() : () -> ()
    %97 = tpu.transpose %96, [1, 0, 2] : vector<4x8x8xf32> -> vector<8x4x8xf32>
    %98 = vector.shape_cast %97 : vector<8x4x8xf32> to vector<8x32xf32>
    %99 = arith.truncf %98 : vector<8x32xf32> to vector<8x32xbf16>
    %c0_34 = arith.constant 0 : index
    %c0_35 = arith.constant 0 : index
    %100 = vector.load %arg9[%c0_34, %c0_35] : memref<32x32xbf16, #tpu.memory_space<vmem>>, vector<32x32xbf16>
    %cst_36 = arith.constant dense<0.000000e+00> : vector<8x32xf32>
    %101 = tpu.matmul %99, %100, %cst_36 {dimension_numbers = #tpu.dot_dimension_numbers<[1], [0], [0], [1], [0, 0, 1, 1], [], []>} : vector<8x32xbf16>, vector<32x32xbf16>, vector<8x32xf32> -> vector<8x32xf32>
    %c0_37 = arith.constant 0 : index
    %c0_38 = arith.constant 0 : index
    %102 = vector.load %arg10[%c0_37, %c0_38] : memref<1x32xf32, #tpu.memory_space<vmem>>, vector<1x32xf32>
    %103 = vector.shape_cast %102 : vector<1x32xf32> to vector<32xf32>
    %104 = vector.shape_cast %103 : vector<32xf32> to vector<1x32xf32>
    %105 = vector.broadcast %104 : vector<1x32xf32> to vector<8x32xf32>
    %106 = arith.addf %101, %105 : vector<8x32xf32>
    %107 = arith.addf %1, %106 : vector<8x32xf32>
    %c0_39 = arith.constant 0 : index
    %c0_40 = arith.constant 0 : index
    %108 = vector.load %arg11[%c0_39, %c0_40] : memref<1x32xf32, #tpu.memory_space<vmem>>, vector<1x32xf32>
    %109 = vector.shape_cast %108 : vector<1x32xf32> to vector<32xf32>
    %c0_41 = arith.constant 0 : index
    %c0_42 = arith.constant 0 : index
    %110 = vector.load %arg12[%c0_41, %c0_42] : memref<1x32xf32, #tpu.memory_space<vmem>>, vector<1x32xf32>
    %111 = vector.shape_cast %110 : vector<1x32xf32> to vector<32xf32>
    %cst_43 = arith.constant dense<0.000000e+00> : vector<8xf32>
    %112 = vector.multi_reduction <add>, %107, %cst_43 [1] : vector<8x32xf32> to vector<8xf32>
    %113 = vector.shape_cast %112 : vector<8xf32> to vector<8x1xf32>
    %cst_44 = arith.constant 3.200000e+01 : f32
    %114 = vector.broadcast %cst_44 : f32 to vector<8x1xf32>
    %115 = arith.divf %113, %114 : vector<8x1xf32>
    %116 = vector.broadcast %115 : vector<8x1xf32> to vector<8x32xf32>
    %117 = arith.subf %107, %116 : vector<8x32xf32>
    %118 = arith.mulf %117, %117 : vector<8x32xf32>
    %cst_45 = arith.constant dense<0.000000e+00> : vector<8xf32>
    %119 = vector.multi_reduction <add>, %118, %cst_45 [1] : vector<8x32xf32> to vector<8xf32>
    %120 = vector.shape_cast %119 : vector<8xf32> to vector<8x1xf32>
    %cst_46 = arith.constant 3.200000e+01 : f32
    %121 = vector.broadcast %cst_46 : f32 to vector<8x1xf32>
    %122 = arith.divf %120, %121 : vector<8x1xf32>
    %cst_47 = arith.constant 9.99999974E-6 : f32
    %123 = vector.broadcast %cst_47 : f32 to vector<8x1xf32>
    %124 = arith.addf %122, %123 : vector<8x1xf32>
    %125 = math.rsqrt %124 : vector<8x1xf32>
    %126 = vector.broadcast %125 : vector<8x1xf32> to vector<8x32xf32>
    %127 = arith.mulf %117, %126 : vector<8x32xf32>
    %128 = vector.shape_cast %109 : vector<32xf32> to vector<1x32xf32>
    %129 = vector.broadcast %128 : vector<1x32xf32> to vector<8x32xf32>
    %130 = arith.mulf %127, %129 : vector<8x32xf32>
    %131 = vector.shape_cast %111 : vector<32xf32> to vector<1x32xf32>
    %132 = vector.broadcast %131 : vector<1x32xf32> to vector<8x32xf32>
    %133 = arith.addf %130, %132 : vector<8x32xf32>
    %134 = arith.truncf %133 : vector<8x32xf32> to vector<8x32xbf16>
    %c0_48 = arith.constant 0 : index
    %c0_49 = arith.constant 0 : index
    %135 = vector.load %arg13[%c0_48, %c0_49] : memref<32x128xbf16, #tpu.memory_space<vmem>>, vector<32x128xbf16>
    %cst_50 = arith.constant dense<0.000000e+00> : vector<8x128xf32>
    %136 = tpu.matmul %134, %135, %cst_50 {dimension_numbers = #tpu.dot_dimension_numbers<[1], [0], [0], [1], [0, 0, 1, 1], [], []>} : vector<8x32xbf16>, vector<32x128xbf16>, vector<8x128xf32> -> vector<8x128xf32>
    %c0_51 = arith.constant 0 : index
    %c0_52 = arith.constant 0 : index
    %137 = vector.load %arg14[%c0_51, %c0_52] : memref<1x128xf32, #tpu.memory_space<vmem>>, vector<1x128xf32>
    %138 = vector.shape_cast %137 : vector<1x128xf32> to vector<128xf32>
    %139 = vector.shape_cast %138 : vector<128xf32> to vector<1x128xf32>
    %140 = vector.broadcast %139 : vector<1x128xf32> to vector<8x128xf32>
    %141 = arith.addf %136, %140 : vector<8x128xf32>
    %cst_53 = arith.constant 0.000000e+00 : f32
    %142 = vector.broadcast %cst_53 : f32 to vector<8x128xf32>
    %143 = arith.maximumf %141, %142 : vector<8x128xf32>
    %144 = arith.truncf %143 : vector<8x128xf32> to vector<8x128xbf16>
    %c0_54 = arith.constant 0 : index
    %c0_55 = arith.constant 0 : index
    %145 = vector.load %arg15[%c0_54, %c0_55] : memref<128x32xbf16, #tpu.memory_space<vmem>>, vector<128x32xbf16>
    %cst_56 = arith.constant dense<0.000000e+00> : vector<8x32xf32>
    %146 = tpu.matmul %144, %145, %cst_56 {dimension_numbers = #tpu.dot_dimension_numbers<[1], [0], [0], [1], [0, 0, 1, 1], [], []>} : vector<8x128xbf16>, vector<128x32xbf16>, vector<8x32xf32> -> vector<8x32xf32>
    %c0_57 = arith.constant 0 : index
    %c0_58 = arith.constant 0 : index
    %147 = vector.load %arg16[%c0_57, %c0_58] : memref<1x32xf32, #tpu.memory_space<vmem>>, vector<1x32xf32>
    %148 = vector.shape_cast %147 : vector<1x32xf32> to vector<32xf32>
    %149 = vector.shape_cast %148 : vector<32xf32> to vector<1x32xf32>
    %150 = vector.broadcast %149 : vector<1x32xf32> to vector<8x32xf32>
    %151 = arith.addf %146, %150 : vector<8x32xf32>
    %152 = arith.addf %107, %151 : vector<8x32xf32>
    %c0_59 = arith.constant 0 : index
    %c0_60 = arith.constant 0 : index
    %c0_61 = arith.constant 0 : index
    %153 = vector.load %arg17[%c0_59, %c0_60, %c0_61] : memref<1x8x32xf32, #tpu.memory_space<vmem>>, vector<1x8x32xf32>
    %154 = vector.shape_cast %153 : vector<1x8x32xf32> to vector<8x32xf32>
    %155 = vector.shape_cast %152 : vector<8x32xf32> to vector<1x8x32xf32>
    tpu.vector_store %arg17[%c0_59, %c0_60, %c0_61], %155 {strides = array<i32>} : memref<1x8x32xf32, #tpu.memory_space<vmem>>, vector<1x8x32xf32>,
    return
  }
  func.func @transform_0(%arg0: i32, %arg1: i32) -> (i32, i32, i32) {
    %c0_i32 = arith.constant 0 : i32
    %c0_i32_0 = arith.constant 0 : i32
    return %arg0, %arg1, %c0_i32 : i32, i32, i32
  }
  func.func @transform_1(%arg0: i32, %arg1: i32) -> (i32, i32, i32) {
    %c0_i32 = arith.constant 0 : i32
    %c0_i32_0 = arith.constant 0 : i32
    %c0_i32_1 = arith.constant 0 : i32
    return %arg0, %c0_i32, %c0_i32_0 : i32, i32, i32
  }
  func.func @transform_2(%arg0: i32, %arg1: i32) -> (i32, i32) {
    %c0_i32 = arith.constant 0 : i32
    %c0_i32_0 = arith.constant 0 : i32
    %c0_i32_1 = arith.constant 0 : i32
    return %c0_i32, %c0_i32_0 : i32, i32
  }
  func.func @transform_3(%arg0: i32, %arg1: i32) -> (i32, i32) {
    %c0_i32 = arith.constant 0 : i32
    %c0_i32_0 = arith.constant 0 : i32
    %c0_i32_1 = arith.constant 0 : i32
    return %c0_i32, %c0_i32_0 : i32, i32
  }
  func.func @transform_4(%arg0: i32, %arg1: i32) -> (i32, i32) {
    %c0_i32 = arith.constant 0 : i32
    %c0_i32_0 = arith.constant 0 : i32
    %c0_i32_1 = arith.constant 0 : i32
    return %c0_i32, %c0_i32_0 : i32, i32
  }
  func.func @transform_5(%arg0: i32, %arg1: i32) -> (i32, i32) {
    %c0_i32 = arith.constant 0 : i32
    %c0_i32_0 = arith.constant 0 : i32
    %c0_i32_1 = arith.constant 0 : i32
    return %c0_i32, %c0_i32_0 : i32, i32
  }
  func.func @transform_6(%arg0: i32, %arg1: i32) -> (i32, i32) {
    %c0_i32 = arith.constant 0 : i32
    %c0_i32_0 = arith.constant 0 : i32
    %c0_i32_1 = arith.constant 0 : i32
    return %c0_i32, %c0_i32_0 : i32, i32
  }
  func.func @transform_7(%arg0: i32, %arg1: i32) -> (i32, i32) {
    %c0_i32 = arith.constant 0 : i32
    %c0_i32_0 = arith.constant 0 : i32
    %c0_i32_1 = arith.constant 0 : i32
    return %c0_i32, %c0_i32_0 : i32, i32
  }
  func.func @transform_8(%arg0: i32, %arg1: i32) -> (i32, i32) {
    %c0_i32 = arith.constant 0 : i32
    %c0_i32_0 = arith.constant 0 : i32
    %c0_i32_1 = arith.constant 0 : i32
    return %c0_i32, %c0_i32_0 : i32, i32
  }
  func.func @transform_9(%arg0: i32, %arg1: i32) -> (i32, i32) {
    %c0_i32 = arith.constant 0 : i32
    %c0_i32_0 = arith.constant 0 : i32
    %c0_i32_1 = arith.constant 0 : i32
    return %c0_i32, %c0_i32_0 : i32, i32
  }
  func.func @transform_10(%arg0: i32, %arg1: i32) -> (i32, i32) {
    %c0_i32 = arith.constant 0 : i32
    %c0_i32_0 = arith.constant 0 : i32
    %c0_i32_1 = arith.constant 0 : i32
    return %c0_i32, %c0_i32_0 : i32, i32
  }
  func.func @transform_11(%arg0: i32, %arg1: i32) -> (i32, i32) {
    %c0_i32 = arith.constant 0 : i32
    %c0_i32_0 = arith.constant 0 : i32
    %c0_i32_1 = arith.constant 0 : i32
    return %c0_i32, %c0_i32_0 : i32, i32
  }
  func.func @transform_12(%arg0: i32, %arg1: i32) -> (i32, i32) {
    %c0_i32 = arith.constant 0 : i32
    %c0_i32_0 = arith.constant 0 : i32
    %c0_i32_1 = arith.constant 0 : i32
    return %c0_i32, %c0_i32_0 : i32, i32
  }
  func.func @transform_13(%arg0: i32, %arg1: i32) -> (i32, i32) {
    %c0_i32 = arith.constant 0 : i32
    %c0_i32_0 = arith.constant 0 : i32
    %c0_i32_1 = arith.constant 0 : i32
    return %c0_i32, %c0_i32_0 : i32, i32
  }
  func.func @transform_14(%arg0: i32, %arg1: i32) -> (i32, i32) {
    %c0_i32 = arith.constant 0 : i32
    %c0_i32_0 = arith.constant 0 : i32
    %c0_i32_1 = arith.constant 0 : i32
    return %c0_i32, %c0_i32_0 : i32, i32
  }
  func.func @transform_15(%arg0: i32, %arg1: i32) -> (i32, i32, i32) {
    %c0_i32 = arith.constant 0 : i32
    %c0_i32_0 = arith.constant 0 : i32
    return %arg0, %arg1, %c0_i32 : i32, i32, i32
  }
}

module attributes {stable_mosaic.version = 11 : i64} {
  func.func @block_kernel(%arg0: i32, %arg1: i32, %arg2: memref<1x8x32xf32, #tpu.memory_space<vmem>>, %arg3: memref<1x8x32xf32, #tpu.memory_space<vmem>>, %arg4: memref<1x32xf32, #tpu.memory_space<vmem>>, %arg5: memref<1x32xf32, #tpu.memory_space<vmem>>, %arg6: memref<32x32xbf16, #tpu.memory_space<vmem>>, %arg7: memref<32x32xbf16, #tpu.memory_space<vmem>>, %arg8: memref<32x32xbf16, #tpu.memory_space<vmem>>, %arg9: memref<32x32xbf16, #tpu.memory_space<vmem>>, %arg10: memref<1x32xf32, #tpu.memory_space<vmem>>, %arg11: memref<1x32xf32, #tpu.memory_space<vmem>>, %arg12: memref<1x32xf32, #tpu.memory_space<vmem>>, %arg13: memref<32x128xbf16, #tpu.memory_space<vmem>>, %arg14: memref<1x128xf32, #tpu.memory_space<vmem>>, %arg15: memref<128x32xbf16, #tpu.memory_space<vmem>>, %arg16: memref<1x32xf32, #tpu.memory_space<vmem>>, %arg17: memref<1x8x32xf32, #tpu.memory_space<vmem>>) attributes {dimension_semantics = [#tpu.dimension_semantics<parallel>, #tpu.dimension_semantics<parallel>], iteration_bounds = array<i64: 2, 1>, scalar_prefetch = 0 : i64, scratch_operands = 0 : i64, tpu.core_type = #tpu.core_type<tc>, window_params = [{transform_indices = @transform_0, window_bounds = array<i64: 1, 8, 32>}, {transform_indices = @transform_1, window_bounds = array<i64: 1, 8, 32>}, {pipeline_mode = #tpu.pipeline_mode<synchronous>, transform_indices = @transform_2, window_bounds = array<i64: 1, 32>}, {pipeline_mode = #tpu.pipeline_mode<synchronous>, transform_indices = @transform_3, window_bounds = array<i64: 1, 32>}, {pipeline_mode = #tpu.pipeline_mode<synchronous>, transform_indices = @transform_4, window_bounds = array<i64: 32, 32>}, {pipeline_mode = #tpu.pipeline_mode<synchronous>, transform_indices = @transform_5, window_bounds = array<i64: 32, 32>}, {pipeline_mode = #tpu.pipeline_mode<synchronous>, transform_indices = @transform_6, window_bounds = array<i64: 32, 32>}, {pipeline_mode = #tpu.pipeline_mode<synchronous>, transform_indices = @transform_7, window_bounds = array<i64: 32, 32>}, {pipeline_mode = #tpu.pipeline_mode<synchronous>, transform_indices = @transform_8, window_bounds = array<i64: 1, 32>}, {pipeline_mode = #tpu.pipeline_mode<synchronous>, transform_indices = @transform_9, window_bounds = array<i64: 1, 32>}, {pipeline_mode = #tpu.pipeline_mode<synchronous>, transform_indices = @transform_10, window_bounds = array<i64: 1, 32>}, {pipeline_mode = #tpu.pipeline_mode<synchronous>, transform_indices = @transform_11, window_bounds = array<i64: 32, 128>}, {pipeline_mode = #tpu.pipeline_mode<synchronous>, transform_indices = @transform_12, window_bounds = array<i64: 1, 128>}, {pipeline_mode = #tpu.pipeline_mode<synchronous>, transform_indices = @transform_13, window_bounds = array<i64: 128, 32>}, {pipeline_mode = #tpu.pipeline_mode<synchronous>, transform_indices = @transform_14, window_bounds = array<i64: 1, 32>}, {transform_indices = @transform_15, window_bounds = array<i64: 1, 8, 32>}]} {
    %c0 = arith.constant 0 : index
    %c0_0 = arith.constant 0 : index
    %c0_1 = arith.constant 0 : index
    %0 = vector.load %arg2[%c0, %c0_0, %c0_1] : memref<1x8x32xf32, #tpu.memory_space<vmem>>, vector<1x8x32xf32>
    %1 = vector.shape_cast %0 : vector<1x8x32xf32> to vector<8x32xf32>
    %c0_2 = arith.constant 0 : index
    %c0_3 = arith.constant 0 : index
    %c0_4 = arith.constant 0 : index
    %2 = vector.load %arg3[%c0_2, %c0_3, %c0_4] : memref<1x8x32xf32, #tpu.memory_space<vmem>>, vector<1x8x32xf32>
    %3 = vector.shape_cast %2 : vector<1x8x32xf32> to vector<8x32xf32>
    %c8_i32 = arith.constant 8 : i32
    %4 = arith.muli %arg1, %c8_i32 : i32
    %c0_5 = arith.constant 0 : index
    %c0_6 = arith.constant 0 : index
    %5 = vector.load %arg4[%c0_5, %c0_6] : memref<1x32xf32, #tpu.memory_space<vmem>>, vector<1x32xf32>
    %6 = vector.shape_cast %5 : vector<1x32xf32> to vector<32xf32>
    %c0_7 = arith.constant 0 : index
    %c0_8 = arith.constant 0 : index
    %7 = vector.load %arg5[%c0_7, %c0_8] : memref<1x32xf32, #tpu.memory_space<vmem>>, vector<1x32xf32>
    %8 = vector.shape_cast %7 : vector<1x32xf32> to vector<32xf32>
    %cst = arith.constant dense<0.000000e+00> : vector<8xf32>
    %9 = vector.multi_reduction <add>, %1, %cst [1] : vector<8x32xf32> to vector<8xf32>
    %10 = vector.shape_cast %9 : vector<8xf32> to vector<8x1xf32>
    %cst_9 = arith.constant 3.200000e+01 : f32
    %11 = vector.broadcast %cst_9 : f32 to vector<8x1xf32>
    %12 = arith.divf %10, %11 : vector<8x1xf32>
    %13 = vector.broadcast %12 : vector<8x1xf32> to vector<8x32xf32>
    %14 = arith.subf %1, %13 : vector<8x32xf32>
    %15 = arith.mulf %14, %14 : vector<8x32xf32>
    %cst_10 = arith.constant dense<0.000000e+00> : vector<8xf32>
    %16 = vector.multi_reduction <add>, %15, %cst_10 [1] : vector<8x32xf32> to vector<8xf32>
    %17 = vector.shape_cast %16 : vector<8xf32> to vector<8x1xf32>
    %cst_11 = arith.constant 3.200000e+01 : f32
    %18 = vector.broadcast %cst_11 : f32 to vector<8x1xf32>
    %19 = arith.divf %17, %18 : vector<8x1xf32>
    %cst_12 = arith.constant 9.99999974E-6 : f32
    %20 = vector.broadcast %cst_12 : f32 to vector<8x1xf32>
    %21 = arith.addf %19, %20 : vector<8x1xf32>
    %22 = math.rsqrt %21 : vector<8x1xf32>
    %23 = vector.broadcast %22 : vector<8x1xf32> to vector<8x32xf32>
    %24 = arith.mulf %14, %23 : vector<8x32xf32>
    %25 = vector.shape_cast %6 : vector<32xf32> to vector<1x32xf32>
    %26 = vector.broadcast %25 : vector<1x32xf32> to vector<8x32xf32>
    %27 = arith.mulf %24, %26 : vector<8x32xf32>
    %28 = vector.shape_cast %8 : vector<32xf32> to vector<1x32xf32>
    %29 = vector.broadcast %28 : vector<1x32xf32> to vector<8x32xf32>
    %30 = arith.addf %27, %29 : vector<8x32xf32>
    %cst_13 = arith.constant dense<0.000000e+00> : vector<8xf32>
    %31 = vector.multi_reduction <add>, %3, %cst_13 [1] : vector<8x32xf32> to vector<8xf32>
    %32 = vector.shape_cast %31 : vector<8xf32> to vector<8x1xf32>
    %cst_14 = arith.constant 3.200000e+01 : f32
    %33 = vector.broadcast %cst_14 : f32 to vector<8x1xf32>
    %34 = arith.divf %32, %33 : vector<8x1xf32>
    %35 = vector.broadcast %34 : vector<8x1xf32> to vector<8x32xf32>
    %36 = arith.subf %3, %35 : vector<8x32xf32>
    %37 = arith.mulf %36, %36 : vector<8x32xf32>
    %cst_15 = arith.constant dense<0.000000e+00> : vector<8xf32>
    %38 = vector.multi_reduction <add>, %37, %cst_15 [1] : vector<8x32xf32> to vector<8xf32>
    %39 = vector.shape_cast %38 : vector<8xf32> to vector<8x1xf32>
    %cst_16 = arith.constant 3.200000e+01 : f32
    %40 = vector.broadcast %cst_16 : f32 to vector<8x1xf32>
    %41 = arith.divf %39, %40 : vector<8x1xf32>
    %cst_17 = arith.constant 9.99999974E-6 : f32
    %42 = vector.broadcast %cst_17 : f32 to vector<8x1xf32>
    %43 = arith.addf %41, %42 : vector<8x1xf32>
    %44 = math.rsqrt %43 : vector<8x1xf32>
    %45 = vector.broadcast %44 : vector<8x1xf32> to vector<8x32xf32>
    %46 = arith.mulf %36, %45 : vector<8x32xf32>
    %47 = vector.shape_cast %6 : vector<32xf32> to vector<1x32xf32>
    %48 = vector.broadcast %47 : vector<1x32xf32> to vector<8x32xf32>
    %49 = arith.mulf %46, %48 : vector<8x32xf32>
    %50 = vector.shape_cast %8 : vector<32xf32> to vector<1x32xf32>
    %51 = vector.broadcast %50 : vector<1x32xf32> to vector<8x32xf32>
    %52 = arith.addf %49, %51 : vector<8x32xf32>
    %53 = arith.truncf %30 : vector<8x32xf32> to vector<8x32xbf16>
    %c0_18 = arith.constant 0 : index
    %c0_19 = arith.constant 0 : index
    %54 = vector.load %arg6[%c0_18, %c0_19] : memref<32x32xbf16, #tpu.memory_space<vmem>>, vector<32x32xbf16>
    %cst_20 = arith.constant dense<0.000000e+00> : vector<8x32xf32>
    %55 = tpu.matmul %53, %54, %cst_20 {dimension_numbers = #tpu.dot_dimension_numbers<[1], [0], [0], [1], [0, 0, 1, 1], [], []>} : vector<8x32xbf16>, vector<32x32xbf16>, vector<8x32xf32> -> vector<8x32xf32>
    %cst_21 = arith.constant 0.353553385 : f32
    %56 = vector.broadcast %cst_21 : f32 to vector<8x32xf32>
    %57 = arith.mulf %55, %56 : vector<8x32xf32>
    %58 = arith.truncf %52 : vector<8x32xf32> to vector<8x32xbf16>
    %c0_22 = arith.constant 0 : index
    %c0_23 = arith.constant 0 : index
    %59 = vector.load %arg7[%c0_22, %c0_23] : memref<32x32xbf16, #tpu.memory_space<vmem>>, vector<32x32xbf16>
    %cst_24 = arith.constant dense<0.000000e+00> : vector<8x32xf32>
    %60 = tpu.matmul %58, %59, %cst_24 {dimension_numbers = #tpu.dot_dimension_numbers<[1], [0], [0], [1], [0, 0, 1, 1], [], []>} : vector<8x32xbf16>, vector<32x32xbf16>, vector<8x32xf32> -> vector<8x32xf32>
    %61 = arith.truncf %52 : vector<8x32xf32> to vector<8x32xbf16>
    %c0_25 = arith.constant 0 : index
    %c0_26 = arith.constant 0 : index
    %62 = vector.load %arg8[%c0_25, %c0_26] : memref<32x32xbf16, #tpu.memory_space<vmem>>, vector<32x32xbf16>
    %cst_27 = arith.constant dense<0.000000e+00> : vector<8x32xf32>
    %63 = tpu.matmul %61, %62, %cst_27 {dimension_numbers = #tpu.dot_dimension_numbers<[1], [0], [0], [1], [0, 0, 1, 1], [], []>} : vector<8x32xbf16>, vector<32x32xbf16>, vector<8x32xf32> -> vector<8x32xf32>
    %64 = tpu.iota {dimensions = array<i32: 0>} : vector<8x8xi32>
    %65 = vector.broadcast %4 : i32 to vector<8x8xi32>
    %66 = arith.addi %65, %64 : vector<8x8xi32>
    %67 = tpu.iota {dimensions = array<i32: 1>} : vector<8x8xi32>
    %68 = arith.cmpi sge, %66, %67 : vector<8x8xi32>
    %cst_28 = arith.constant 0.000000e+00 : f32
    %cst_29 = arith.constant -1.000000e+30 : f32
    %69 = vector.broadcast %cst_28 : f32 to vector<8x8xf32>
    %70 = vector.broadcast %cst_29 : f32 to vector<8x8xf32>
    %71 = arith.select %68, %69, %70 : vector<8x8xi1>, vector<8x8xf32>
    %72 = vector.extract_strided_slice %57 {offsets = [0, 0], sizes = [8, 8], strides = [1, 1]} : vector<8x32xf32> to vector<8x8xf32>
    %73 = arith.truncf %72 : vector<8x8xf32> to vector<8x8xbf16>
    %74 = vector.extract_strided_slice %60 {offsets = [0, 0], sizes = [8, 8], strides = [1, 1]} : vector<8x32xf32> to vector<8x8xf32>
    %75 = arith.truncf %74 : vector<8x8xf32> to vector<8x8xbf16>
    %76 = vector.extract_strided_slice %63 {offsets = [0, 0], sizes = [8, 8], strides = [1, 1]} : vector<8x32xf32> to vector<8x8xf32>
    %77 = arith.truncf %76 : vector<8x8xf32> to vector<8x8xbf16>
    "tpu.trace_start"() <{level = 10 : i32, message = "qd,kd->qk"}> : () -> ()
    %cst_30 = arith.constant dense<0.000000e+00> : vector<8x8xf32>
    %78 = tpu.matmul %73, %75, %cst_30 {dimension_numbers = #tpu.dot_dimension_numbers<[1], [1], [0], [0], [0, 0, 1, 0], [], []>} : vector<8x8xbf16>, vector<8x8xbf16>, vector<8x8xf32> -> vector<8x8xf32>
    "tpu.trace_stop"() : () -> ()
    %79 = arith.addf %78, %71 : vector<8x8xf32>
    %cst_31 = arith.constant dense<0xFF800000> : vector<8xf32>
    %80 = vector.multi_reduction <maximumf>, %79, %cst_31 [1] : vector<8x8xf32> to vector<8xf32>
    %81 = vector.shape_cast %80 : vector<8xf32> to vector<8x1xf32>
    %82 = vector.broadcast %81 : vector<8x1xf32> to vector<8x8xf32>
    %83 = arith.subf %79, %82 : vector<8x8xf32>
    %84 = math.exp %83 : vector<8x8xf32>
    %cst_32 = arith.constant dense<0.000000e+00> : vector<8xf32>
    %85 = vector.multi_reduction <add>, %84, %cst_32 [1] : vector<8x8xf32> to vector<8xf32>
    %86 = vector.shape_cast %85 : vector<8xf32> to vector<8x1xf32>
    %87 = tpu.reciprocal %86 {approx = true} : vector<8x1xf32> -> vector<8x1xf32>
    %88 = vector.broadcast %87 : vector<8x1xf32> to vector<8x8xf32>
    %89 = arith.mulf %84, %88 : vector<8x8xf32>
    %90 = arith.truncf %89 : vector<8x8xf32> to vector<8x8xbf16>
    "tpu.trace_start"() <{level = 10 : i32, message = "qk,kd->qd"}> : () -> ()
    %cst_33 = arith.constant dense<0.000000e+00> : vector<8x8xf32>
    %91 = tpu.matmul %90, %77, %cst_33 {dimension_numbers = #tpu.dot_dimension_numbers<[1], [0], [0], [1], [0, 0, 1, 1], [], []>} : vector<8x8xbf16>, vector<8x8xbf16>, vector<8x8xf32> -> vector<8x8xf32>
    "tpu.trace_stop"() : () -> ()
    %92 = vector.extract_strided_slice %57 {offsets = [0, 8], sizes = [8, 8], strides = [1, 1]} : vector<8x32xf32> to vector<8x8xf32>
    %93 = arith.truncf %92 : vector<8x8xf32> to vector<8x8xbf16>
    %94 = vector.extract_strided_slice %60 {offsets = [0, 8], sizes = [8, 8], strides = [1, 1]} : vector<8x32xf32> to vector<8x8xf32>
    %95 = arith.truncf %94 : vector<8x8xf32> to vector<8x8xbf16>
    %96 = vector.extract_strided_slice %63 {offsets = [0, 8], sizes = [8, 8], strides = [1, 1]} : vector<8x32xf32> to vector<8x8xf32>
    %97 = arith.truncf %96 : vector<8x8xf32> to vector<8x8xbf16>
    "tpu.trace_start"() <{level = 10 : i32, message = "qd,kd->qk"}> : () -> ()
    %cst_34 = arith.constant dense<0.000000e+00> : vector<8x8xf32>
    %98 = tpu.matmul %93, %95, %cst_34 {dimension_numbers = #tpu.dot_dimension_numbers<[1], [1], [0], [0], [0, 0, 1, 0], [], []>} : vector<8x8xbf16>, vector<8x8xbf16>, vector<8x8xf32> -> vector<8x8xf32>
    "tpu.trace_stop"() : () -> ()
    %99 = arith.addf %98, %71 : vector<8x8xf32>
    %cst_35 = arith.constant dense<0xFF800000> : vector<8xf32>
    %100 = vector.multi_reduction <maximumf>, %99, %cst_35 [1] : vector<8x8xf32> to vector<8xf32>
    %101 = vector.shape_cast %100 : vector<8xf32> to vector<8x1xf32>
    %102 = vector.broadcast %101 : vector<8x1xf32> to vector<8x8xf32>
    %103 = arith.subf %99, %102 : vector<8x8xf32>
    %104 = math.exp %103 : vector<8x8xf32>
    %cst_36 = arith.constant dense<0.000000e+00> : vector<8xf32>
    %105 = vector.multi_reduction <add>, %104, %cst_36 [1] : vector<8x8xf32> to vector<8xf32>
    %106 = vector.shape_cast %105 : vector<8xf32> to vector<8x1xf32>
    %107 = tpu.reciprocal %106 {approx = true} : vector<8x1xf32> -> vector<8x1xf32>
    %108 = vector.broadcast %107 : vector<8x1xf32> to vector<8x8xf32>
    %109 = arith.mulf %104, %108 : vector<8x8xf32>
    %110 = arith.truncf %109 : vector<8x8xf32> to vector<8x8xbf16>
    "tpu.trace_start"() <{level = 10 : i32, message = "qk,kd->qd"}> : () -> ()
    %cst_37 = arith.constant dense<0.000000e+00> : vector<8x8xf32>
    %111 = tpu.matmul %110, %97, %cst_37 {dimension_numbers = #tpu.dot_dimension_numbers<[1], [0], [0], [1], [0, 0, 1, 1], [], []>} : vector<8x8xbf16>, vector<8x8xbf16>, vector<8x8xf32> -> vector<8x8xf32>
    "tpu.trace_stop"() : () -> ()
    %112 = vector.extract_strided_slice %57 {offsets = [0, 16], sizes = [8, 8], strides = [1, 1]} : vector<8x32xf32> to vector<8x8xf32>
    %113 = arith.truncf %112 : vector<8x8xf32> to vector<8x8xbf16>
    %114 = vector.extract_strided_slice %60 {offsets = [0, 16], sizes = [8, 8], strides = [1, 1]} : vector<8x32xf32> to vector<8x8xf32>
    %115 = arith.truncf %114 : vector<8x8xf32> to vector<8x8xbf16>
    %116 = vector.extract_strided_slice %63 {offsets = [0, 16], sizes = [8, 8], strides = [1, 1]} : vector<8x32xf32> to vector<8x8xf32>
    %117 = arith.truncf %116 : vector<8x8xf32> to vector<8x8xbf16>
    "tpu.trace_start"() <{level = 10 : i32, message = "qd,kd->qk"}> : () -> ()
    %cst_38 = arith.constant dense<0.000000e+00> : vector<8x8xf32>
    %118 = tpu.matmul %113, %115, %cst_38 {dimension_numbers = #tpu.dot_dimension_numbers<[1], [1], [0], [0], [0, 0, 1, 0], [], []>} : vector<8x8xbf16>, vector<8x8xbf16>, vector<8x8xf32> -> vector<8x8xf32>
    "tpu.trace_stop"() : () -> ()
    %119 = arith.addf %118, %71 : vector<8x8xf32>
    %cst_39 = arith.constant dense<0xFF800000> : vector<8xf32>
    %120 = vector.multi_reduction <maximumf>, %119, %cst_39 [1] : vector<8x8xf32> to vector<8xf32>
    %121 = vector.shape_cast %120 : vector<8xf32> to vector<8x1xf32>
    %122 = vector.broadcast %121 : vector<8x1xf32> to vector<8x8xf32>
    %123 = arith.subf %119, %122 : vector<8x8xf32>
    %124 = math.exp %123 : vector<8x8xf32>
    %cst_40 = arith.constant dense<0.000000e+00> : vector<8xf32>
    %125 = vector.multi_reduction <add>, %124, %cst_40 [1] : vector<8x8xf32> to vector<8xf32>
    %126 = vector.shape_cast %125 : vector<8xf32> to vector<8x1xf32>
    %127 = tpu.reciprocal %126 {approx = true} : vector<8x1xf32> -> vector<8x1xf32>
    %128 = vector.broadcast %127 : vector<8x1xf32> to vector<8x8xf32>
    %129 = arith.mulf %124, %128 : vector<8x8xf32>
    %130 = arith.truncf %129 : vector<8x8xf32> to vector<8x8xbf16>
    "tpu.trace_start"() <{level = 10 : i32, message = "qk,kd->qd"}> : () -> ()
    %cst_41 = arith.constant dense<0.000000e+00> : vector<8x8xf32>
    %131 = tpu.matmul %130, %117, %cst_41 {dimension_numbers = #tpu.dot_dimension_numbers<[1], [0], [0], [1], [0, 0, 1, 1], [], []>} : vector<8x8xbf16>, vector<8x8xbf16>, vector<8x8xf32> -> vector<8x8xf32>
    "tpu.trace_stop"() : () -> ()
    %132 = vector.extract_strided_slice %57 {offsets = [0, 24], sizes = [8, 8], strides = [1, 1]} : vector<8x32xf32> to vector<8x8xf32>
    %133 = arith.truncf %132 : vector<8x8xf32> to vector<8x8xbf16>
    %134 = vector.extract_strided_slice %60 {offsets = [0, 24], sizes = [8, 8], strides = [1, 1]} : vector<8x32xf32> to vector<8x8xf32>
    %135 = arith.truncf %134 : vector<8x8xf32> to vector<8x8xbf16>
    %136 = vector.extract_strided_slice %63 {offsets = [0, 24], sizes = [8, 8], strides = [1, 1]} : vector<8x32xf32> to vector<8x8xf32>
    %137 = arith.truncf %136 : vector<8x8xf32> to vector<8x8xbf16>
    "tpu.trace_start"() <{level = 10 : i32, message = "qd,kd->qk"}> : () -> ()
    %cst_42 = arith.constant dense<0.000000e+00> : vector<8x8xf32>
    %138 = tpu.matmul %133, %135, %cst_42 {dimension_numbers = #tpu.dot_dimension_numbers<[1], [1], [0], [0], [0, 0, 1, 0], [], []>} : vector<8x8xbf16>, vector<8x8xbf16>, vector<8x8xf32> -> vector<8x8xf32>
    "tpu.trace_stop"() : () -> ()
    %139 = arith.addf %138, %71 : vector<8x8xf32>
    %cst_43 = arith.constant dense<0xFF800000> : vector<8xf32>
    %140 = vector.multi_reduction <maximumf>, %139, %cst_43 [1] : vector<8x8xf32> to vector<8xf32>
    %141 = vector.shape_cast %140 : vector<8xf32> to vector<8x1xf32>
    %142 = vector.broadcast %141 : vector<8x1xf32> to vector<8x8xf32>
    %143 = arith.subf %139, %142 : vector<8x8xf32>
    %144 = math.exp %143 : vector<8x8xf32>
    %cst_44 = arith.constant dense<0.000000e+00> : vector<8xf32>
    %145 = vector.multi_reduction <add>, %144, %cst_44 [1] : vector<8x8xf32> to vector<8xf32>
    %146 = vector.shape_cast %145 : vector<8xf32> to vector<8x1xf32>
    %147 = tpu.reciprocal %146 {approx = true} : vector<8x1xf32> -> vector<8x1xf32>
    %148 = vector.broadcast %147 : vector<8x1xf32> to vector<8x8xf32>
    %149 = arith.mulf %144, %148 : vector<8x8xf32>
    %150 = arith.truncf %149 : vector<8x8xf32> to vector<8x8xbf16>
    "tpu.trace_start"() <{level = 10 : i32, message = "qk,kd->qd"}> : () -> ()
    %cst_45 = arith.constant dense<0.000000e+00> : vector<8x8xf32>
    %151 = tpu.matmul %150, %137, %cst_45 {dimension_numbers = #tpu.dot_dimension_numbers<[1], [0], [0], [1], [0, 0, 1, 1], [], []>} : vector<8x8xbf16>, vector<8x8xbf16>, vector<8x8xf32> -> vector<8x8xf32>
    "tpu.trace_stop"() : () -> ()
    %152 = tpu.concatenate %91, %111, %131, %151 in 1 : vector<8x8xf32>, vector<8x8xf32>, vector<8x8xf32>, vector<8x8xf32> -> vector<8x32xf32>
    %153 = arith.truncf %152 : vector<8x32xf32> to vector<8x32xbf16>
    %c0_46 = arith.constant 0 : index
    %c0_47 = arith.constant 0 : index
    %154 = vector.load %arg9[%c0_46, %c0_47] : memref<32x32xbf16, #tpu.memory_space<vmem>>, vector<32x32xbf16>
    %cst_48 = arith.constant dense<0.000000e+00> : vector<8x32xf32>
    %155 = tpu.matmul %153, %154, %cst_48 {dimension_numbers = #tpu.dot_dimension_numbers<[1], [0], [0], [1], [0, 0, 1, 1], [], []>} : vector<8x32xbf16>, vector<32x32xbf16>, vector<8x32xf32> -> vector<8x32xf32>
    %c0_49 = arith.constant 0 : index
    %c0_50 = arith.constant 0 : index
    %156 = vector.load %arg10[%c0_49, %c0_50] : memref<1x32xf32, #tpu.memory_space<vmem>>, vector<1x32xf32>
    %157 = vector.shape_cast %156 : vector<1x32xf32> to vector<32xf32>
    %158 = vector.shape_cast %157 : vector<32xf32> to vector<1x32xf32>
    %159 = vector.broadcast %158 : vector<1x32xf32> to vector<8x32xf32>
    %160 = arith.addf %155, %159 : vector<8x32xf32>
    %161 = arith.addf %1, %160 : vector<8x32xf32>
    %c0_51 = arith.constant 0 : index
    %c0_52 = arith.constant 0 : index
    %162 = vector.load %arg11[%c0_51, %c0_52] : memref<1x32xf32, #tpu.memory_space<vmem>>, vector<1x32xf32>
    %163 = vector.shape_cast %162 : vector<1x32xf32> to vector<32xf32>
    %c0_53 = arith.constant 0 : index
    %c0_54 = arith.constant 0 : index
    %164 = vector.load %arg12[%c0_53, %c0_54] : memref<1x32xf32, #tpu.memory_space<vmem>>, vector<1x32xf32>
    %165 = vector.shape_cast %164 : vector<1x32xf32> to vector<32xf32>
    %cst_55 = arith.constant dense<0.000000e+00> : vector<8xf32>
    %166 = vector.multi_reduction <add>, %161, %cst_55 [1] : vector<8x32xf32> to vector<8xf32>
    %167 = vector.shape_cast %166 : vector<8xf32> to vector<8x1xf32>
    %cst_56 = arith.constant 3.200000e+01 : f32
    %168 = vector.broadcast %cst_56 : f32 to vector<8x1xf32>
    %169 = arith.divf %167, %168 : vector<8x1xf32>
    %170 = vector.broadcast %169 : vector<8x1xf32> to vector<8x32xf32>
    %171 = arith.subf %161, %170 : vector<8x32xf32>
    %172 = arith.mulf %171, %171 : vector<8x32xf32>
    %cst_57 = arith.constant dense<0.000000e+00> : vector<8xf32>
    %173 = vector.multi_reduction <add>, %172, %cst_57 [1] : vector<8x32xf32> to vector<8xf32>
    %174 = vector.shape_cast %173 : vector<8xf32> to vector<8x1xf32>
    %cst_58 = arith.constant 3.200000e+01 : f32
    %175 = vector.broadcast %cst_58 : f32 to vector<8x1xf32>
    %176 = arith.divf %174, %175 : vector<8x1xf32>
    %cst_59 = arith.constant 9.99999974E-6 : f32
    %177 = vector.broadcast %cst_59 : f32 to vector<8x1xf32>
    %178 = arith.addf %176, %177 : vector<8x1xf32>
    %179 = math.rsqrt %178 : vector<8x1xf32>
    %180 = vector.broadcast %179 : vector<8x1xf32> to vector<8x32xf32>
    %181 = arith.mulf %171, %180 : vector<8x32xf32>
    %182 = vector.shape_cast %163 : vector<32xf32> to vector<1x32xf32>
    %183 = vector.broadcast %182 : vector<1x32xf32> to vector<8x32xf32>
    %184 = arith.mulf %181, %183 : vector<8x32xf32>
    %185 = vector.shape_cast %165 : vector<32xf32> to vector<1x32xf32>
    %186 = vector.broadcast %185 : vector<1x32xf32> to vector<8x32xf32>
    %187 = arith.addf %184, %186 : vector<8x32xf32>
    %188 = arith.truncf %187 : vector<8x32xf32> to vector<8x32xbf16>
    %c0_60 = arith.constant 0 : index
    %c0_61 = arith.constant 0 : index
    %189 = vector.load %arg13[%c0_60, %c0_61] : memref<32x128xbf16, #tpu.memory_space<vmem>>, vector<32x128xbf16>
    %cst_62 = arith.constant dense<0.000000e+00> : vector<8x128xf32>
    %190 = tpu.matmul %188, %189, %cst_62 {dimension_numbers = #tpu.dot_dimension_numbers<[1], [0], [0], [1], [0, 0, 1, 1], [], []>} : vector<8x32xbf16>, vector<32x128xbf16>, vector<8x128xf32> -> vector<8x128xf32>
    %c0_63 = arith.constant 0 : index
    %c0_64 = arith.constant 0 : index
    %191 = vector.load %arg14[%c0_63, %c0_64] : memref<1x128xf32, #tpu.memory_space<vmem>>, vector<1x128xf32>
    %192 = vector.shape_cast %191 : vector<1x128xf32> to vector<128xf32>
    %193 = vector.shape_cast %192 : vector<128xf32> to vector<1x128xf32>
    %194 = vector.broadcast %193 : vector<1x128xf32> to vector<8x128xf32>
    %195 = arith.addf %190, %194 : vector<8x128xf32>
    %cst_65 = arith.constant 0.000000e+00 : f32
    %196 = vector.broadcast %cst_65 : f32 to vector<8x128xf32>
    %197 = arith.maximumf %195, %196 : vector<8x128xf32>
    %198 = arith.truncf %197 : vector<8x128xf32> to vector<8x128xbf16>
    %c0_66 = arith.constant 0 : index
    %c0_67 = arith.constant 0 : index
    %199 = vector.load %arg15[%c0_66, %c0_67] : memref<128x32xbf16, #tpu.memory_space<vmem>>, vector<128x32xbf16>
    %cst_68 = arith.constant dense<0.000000e+00> : vector<8x32xf32>
    %200 = tpu.matmul %198, %199, %cst_68 {dimension_numbers = #tpu.dot_dimension_numbers<[1], [0], [0], [1], [0, 0, 1, 1], [], []>} : vector<8x128xbf16>, vector<128x32xbf16>, vector<8x32xf32> -> vector<8x32xf32>
    %c0_69 = arith.constant 0 : index
    %c0_70 = arith.constant 0 : index
    %201 = vector.load %arg16[%c0_69, %c0_70] : memref<1x32xf32, #tpu.memory_space<vmem>>, vector<1x32xf32>
    %202 = vector.shape_cast %201 : vector<1x32xf32> to vector<32xf32>
    %203 = vector.shape_cast %202 : vector<32xf32> to vector<1x32xf32>
    %204 = vector.broadcast %203 : vector<1x32xf32> to vector<8x32xf32>
    %205 = arith.addf %200, %204 : vector<8x32xf32>
    %206 = arith.addf %161, %205 : vector<8x32xf32>
    %c0_71 = arith.constant 0 : index
    %c0_72 = arith.constant 0 : index
    %c0_73 = arith.constant 0 : index
    %207 = vector.load %arg17[%c0_71, %c0_72, %c0_73] : memref<1x8x32xf32, #tpu.memory_space<vmem>>, vector<1x8x32xf32>
    %208 = vector.shape_cast %207 : vector<1x8x32xf32> to vector<8x32xf32>
    %209 = vector.shape_cast %206 : vector<8x32xf32> to vector<1x8x32xf32>
    tpu.vector_store %arg17[%c0_71, %c0_72, %c0_73], %209 {strides = array<i32>} : memref<1x8x32xf32, #tpu.memory_space<vmem>>, vector<1x8x32xf32>,
    return
  }
  func.func @transform_0(%arg0: i32, %arg1: i32) -> (i32, i32, i32) {
    %c0_i32 = arith.constant 0 : i32
    %c0_i32_0 = arith.constant 0 : i32
    return %arg0, %arg1, %c0_i32 : i32, i32, i32
  }
  func.func @transform_1(%arg0: i32, %arg1: i32) -> (i32, i32, i32) {
    %c0_i32 = arith.constant 0 : i32
    %c0_i32_0 = arith.constant 0 : i32
    %c0_i32_1 = arith.constant 0 : i32
    return %arg0, %c0_i32, %c0_i32_0 : i32, i32, i32
  }
  func.func @transform_2(%arg0: i32, %arg1: i32) -> (i32, i32) {
    %c0_i32 = arith.constant 0 : i32
    %c0_i32_0 = arith.constant 0 : i32
    %c0_i32_1 = arith.constant 0 : i32
    return %c0_i32, %c0_i32_0 : i32, i32
  }
  func.func @transform_3(%arg0: i32, %arg1: i32) -> (i32, i32) {
    %c0_i32 = arith.constant 0 : i32
    %c0_i32_0 = arith.constant 0 : i32
    %c0_i32_1 = arith.constant 0 : i32
    return %c0_i32, %c0_i32_0 : i32, i32
  }
  func.func @transform_4(%arg0: i32, %arg1: i32) -> (i32, i32) {
    %c0_i32 = arith.constant 0 : i32
    %c0_i32_0 = arith.constant 0 : i32
    %c0_i32_1 = arith.constant 0 : i32
    return %c0_i32, %c0_i32_0 : i32, i32
  }
  func.func @transform_5(%arg0: i32, %arg1: i32) -> (i32, i32) {
    %c0_i32 = arith.constant 0 : i32
    %c0_i32_0 = arith.constant 0 : i32
    %c0_i32_1 = arith.constant 0 : i32
    return %c0_i32, %c0_i32_0 : i32, i32
  }
  func.func @transform_6(%arg0: i32, %arg1: i32) -> (i32, i32) {
    %c0_i32 = arith.constant 0 : i32
    %c0_i32_0 = arith.constant 0 : i32
    %c0_i32_1 = arith.constant 0 : i32
    return %c0_i32, %c0_i32_0 : i32, i32
  }
  func.func @transform_7(%arg0: i32, %arg1: i32) -> (i32, i32) {
    %c0_i32 = arith.constant 0 : i32
    %c0_i32_0 = arith.constant 0 : i32
    %c0_i32_1 = arith.constant 0 : i32
    return %c0_i32, %c0_i32_0 : i32, i32
  }
  func.func @transform_8(%arg0: i32, %arg1: i32) -> (i32, i32) {
    %c0_i32 = arith.constant 0 : i32
    %c0_i32_0 = arith.constant 0 : i32
    %c0_i32_1 = arith.constant 0 : i32
    return %c0_i32, %c0_i32_0 : i32, i32
  }
  func.func @transform_9(%arg0: i32, %arg1: i32) -> (i32, i32) {
    %c0_i32 = arith.constant 0 : i32
    %c0_i32_0 = arith.constant 0 : i32
    %c0_i32_1 = arith.constant 0 : i32
    return %c0_i32, %c0_i32_0 : i32, i32
  }
  func.func @transform_10(%arg0: i32, %arg1: i32) -> (i32, i32) {
    %c0_i32 = arith.constant 0 : i32
    %c0_i32_0 = arith.constant 0 : i32
    %c0_i32_1 = arith.constant 0 : i32
    return %c0_i32, %c0_i32_0 : i32, i32
  }
  func.func @transform_11(%arg0: i32, %arg1: i32) -> (i32, i32) {
    %c0_i32 = arith.constant 0 : i32
    %c0_i32_0 = arith.constant 0 : i32
    %c0_i32_1 = arith.constant 0 : i32
    return %c0_i32, %c0_i32_0 : i32, i32
  }
  func.func @transform_12(%arg0: i32, %arg1: i32) -> (i32, i32) {
    %c0_i32 = arith.constant 0 : i32
    %c0_i32_0 = arith.constant 0 : i32
    %c0_i32_1 = arith.constant 0 : i32
    return %c0_i32, %c0_i32_0 : i32, i32
  }
  func.func @transform_13(%arg0: i32, %arg1: i32) -> (i32, i32) {
    %c0_i32 = arith.constant 0 : i32
    %c0_i32_0 = arith.constant 0 : i32
    %c0_i32_1 = arith.constant 0 : i32
    return %c0_i32, %c0_i32_0 : i32, i32
  }
  func.func @transform_14(%arg0: i32, %arg1: i32) -> (i32, i32) {
    %c0_i32 = arith.constant 0 : i32
    %c0_i32_0 = arith.constant 0 : i32
    %c0_i32_1 = arith.constant 0 : i32
    return %c0_i32, %c0_i32_0 : i32, i32
  }
  func.func @transform_15(%arg0: i32, %arg1: i32) -> (i32, i32, i32) {
    %c0_i32 = arith.constant 0 : i32
    %c0_i32_0 = arith.constant 0 : i32
    return %arg0, %arg1, %c0_i32 : i32, i32, i32
  }
}

</mosaic_0001>

<bundles_post_ra>
// kernel: tpu_custom_call.1
= control target key start
LH: loop header
LB: loop body
LE: loop exit
PB: predicated region body
PF: predicated region fallthrough
CT: control target
= control target key end

     0   :  { %s4384_s0 = inlined_call_operand.hbm [shape: f32[2,8,32], index: 0, kind: input, shape index: {}]   ;;  %s4385_s1 = inlined_call_operand.hbm [shape: f32[2,8,32], index: 1, kind: input, shape index: {}]   ;;  %s4386_s2 = inlined_call_operand.hbm [shape: f32[1,32], index: 2, kind: input, shape index: {}]   ;;  %s4387_s3 = inlined_call_operand.hbm [shape: f32[1,32], index: 3, kind: input, shape index: {}]   ;;  %s4388_s4 = inlined_call_operand.hbm [shape: bf16[32,32], index: 4, kind: input, shape index: {}]   ;;  %s4389_s5 = inlined_call_operand.hbm [shape: bf16[32,32], index: 5, kind: input, shape index: {}]   ;;  %s4390_s6 = inlined_call_operand.hbm [shape: bf16[32,32], index: 6, kind: input, shape index: {}]   ;;  %s4391_s7 = inlined_call_operand.hbm [shape: bf16[32,32], index: 7, kind: input, shape index: {}]   ;;  %s4392_s8 = inlined_call_operand.hbm [shape: f32[1,32], index: 8, kind: input, shape index: {}]   ;;  %s4393_s9 = inlined_call_operand.hbm [shape: f32[1,32], index: 9, kind: input, shape index: {}]   ;;  %s4394_s10 = inlined_call_operand.hbm [shape: f32[1,32], index: 10, kind: input, shape index: {}]   ;;  %s4395_s11 = inlined_call_operand.hbm [shape: bf16[32,128], index: 11, kind: input, shape index: {}]   ;;  %s4396_s12 = inlined_call_operand.hbm [shape: f32[1,128], index: 12, kind: input, shape index: {}]   ;;  %s4397_s13 = inlined_call_operand.hbm [shape: bf16[128,32], index: 13, kind: input, shape index: {}]   ;;  %s4398_s14 = inlined_call_operand.hbm [shape: f32[1,32], index: 14, kind: input, shape index: {}]   ;;  %s4399_s15 = inlined_call_operand.hbm [shape: f32[2,8,32], index: 15, kind: output, shape index: {}]  }
   0x1   :  { %4413 = sst [smem:[#allocation43_spill]] %s4384_s0 }
   0x2   :  { %4414 = sst [smem:[#allocation44_spill]] %s4385_s1 }
   0x3   :  { %4415 = sst [smem:[#allocation45_spill]] %s4386_s2 }
   0x4   :  { %4416 = sst [smem:[#allocation46_spill]] %s4387_s3 }
   0x5   :  { %4417 = sst [smem:[#allocation47_spill]] %s4388_s4 }
   0x6   :  { %4418 = sst [smem:[#allocation48_spill]] %s4389_s5 }
   0x7   :  { %4419 = sst [smem:[#allocation49_spill]] %s4390_s6 }
   0x8   :  { %4420 = sst [smem:[#allocation50_spill]] %s4391_s7 }
   0x9   :  { %4421 = sst [smem:[#allocation51_spill]] %s4392_s8 }
   0xa   :  { %4422 = sst [smem:[#allocation52_spill]] %s4399_s15 }
   0xb   :  { %20 = vsyncpa [#allocation3], 0 }
   0xc   :  { %22 = vsyncpa [#allocation3 + $0x1], 0 }
   0xd   :  { %23 = vsyncpa [#allocation6], 0 }
   0xe   :  { %25 = vsyncpa [#allocation6 + $0x1], 0 }
   0xf   :  { %26 = vsyncpa [#allocation9], 0 }
  0x10   :  { %27 = vsyncpa [#allocation12], 0 }
  0x11   :  { %28 = vsyncpa [#allocation15], 0 }
  0x12   :  { %29 = vsyncpa [#allocation18], 0 }
  0x13   :  { %30 = vsyncpa [#allocation21], 0 }
  0x14   :  { %31 = vsyncpa [#allocation24], 0 }
  0x15   :  { %32 = vsyncpa [#allocation4], 0 }
  0x16   :  { %34 = vsyncpa [#allocation4 + $0x1], 0  ;;  %s3650_s18 = smov 0   ;;  %s3652_s19 = smov 0  }
  0x17   :  { %s3654_s20 = smov 0   ;;  %s3656_s21 = smov 0  }
  0x18   :  { %s3658_s22 = smov 0   ;;  %s3660_s23 = smov 0  }
  0x19 LB: > { %4423 = sst [smem:[#allocation37_spill]] %s3519_s18  ;;  %s3681_s24 = sadd.s32 4294967295, %s3539_s23   ;;  %s3539_s23 = sphi %s3660_s23, %s40_s23   ;;  %s3535_s22 = sphi %s3658_s22, %s4480_s22   ;;  %s3531_s21 = sphi %s3656_s21, %s4479_s21   ;;  %s3527_s20 = sphi %s3654_s20, %s3997_s20   ;;  %s3523_s19 = sphi %s3652_s19, %s4478_s19   ;;  %s3519_s18 = sphi %s3650_s18, %s4477_s18  }
  0x1a   : > { %4424 = sst [smem:[#allocation38_spill]] %s3523_s19  ;;  %p2516_p0 = scmp.ge.s32.totalorder %s3539_s23, 1 }
  0x1b   : > { %4425 = sst [smem:[#allocation39_spill]] %s3527_s20  ;;  %p4404_p1 = scmp.eq.s32.totalorder %s3681_s24, 0 }
  0x1c   : > { %4426 = sst [smem:[#allocation40_spill]] %s3531_s21  ;;  %p412_p2 = scmp.lt.s32.totalorder %s3539_s23, 3 }
  0x1d   : > { %4427 = sst [smem:[#allocation41_spill]] %s3681_s24  ;;  %s3541_s26 = smov [#allocation7]  }
  0x1e   : > { %p3686_p3 = pnand %p2516_p0, %p412_p2  ;;  %s425_s27 = sshll.u32 %s3541_s26, 4  ;;  %s426_s27 = int_to_ptr.vmem [resolvable:$true] %s425_s27 }
  0x1f   : > { %s3542_s28 = smov [#allocation8]   ;;  %s3543_s16 = smov [#allocation11]  }
  0x20   : > { %s4428_s25 = scalar_select %p3686_p3, 1, 0 }
  0x21   : > { %p2808_p5 = pneg %p3686_p3  ;;  %s436_s29 = sshll.u32 %s3542_s28, 4  ;;  %s3699_s29 = int_to_ptr.vmem [resolvable:$true] %s436_s29 }
  0x22   : > { %4429 = sst [smem:[#allocation42_spill]] %s4428_s25  ;;  %s3701_s17 = sshll.u32 %s3543_s16, 4  ;;  %s460_s17 = int_to_ptr.vmem [resolvable:$true] %s3701_s17 }
  0x23   : > { %p3695_p6 = pnand %p2808_p5, %p4404_p1  ;;  %s4431_s2 = sld [smem:[#allocation45_spill]] }
  0x25   : > { %p3711_p8 = pneg %p3695_p6 }
  0x29   : > { %s3001_s26 = scalar_lea.hbm %s4431_s2, 16 }
  0x2a   : > { %p3002_p7 = scmp.ne.s32.totalorder %s4431_s2, %s3001_s26  ;;  %p3008_p11 = scmp.lt.u32.totalorder %s3001_s26, %s4431_s2 }
  0x2c   : > { %p3004_p9 = pnand %p3711_p8, %p3002_p7 }
  0x2e   : > { %p3005_p10 = pneg %p3004_p9 }
  0x30   : > { %p3010_p12 = pnand %p3008_p11, %p3005_p10 }
  0x32   : > { %3013 = shalt.err (!%p3010_p12)
}
  0x33   : > { %s3014_s15 = scalar_lea.vmem %s426_s27, 16  ;;  %s3021_s1 = scalar_lea.vmem %s426_s27, 32 }
  0x34   : > { %p3015_p13 = scmp.ne.s32.totalorder %s426_s27, %s3014_s15  ;;  %p3022_p5 = scmp.lt.s32.totalorder %s426_s27, %s426_s27 }
  0x35   : > { %p3023_p4 = scmp.lt.s32.totalorder %s3021_s1, %s3014_s15 }
  0x36   : > { %p3017_p0 = pnand %p3015_p13, %p3711_p8 }
  0x37   : > { %p3024_p1 = por %p3023_p4, %p3022_p5 }
  0x38   : > { %p3018_p2 = pneg %p3017_p0 }
  0x3a   : > { %p3025_p3 = pnand %p3024_p1, %p3018_p2 }
  0x3c   : > { %3028 = shalt.err (!%p3025_p3)
}
  0x3d   : > { %2811 = dma.hbm_to_vmem [thread:$0]  (!%p3695_p6), %s4431_s2, 16, %s426_s27, [#allocation6]  }
  0x3e   : > { %s4433_s3 = sld [smem:[#allocation46_spill]] }
  0x44   : > { %s3029_s16 = scalar_lea.hbm %s4433_s3, 16 }
  0x45   : > { %p3030_p7 = scmp.ne.s32.totalorder %s4433_s3, %s3029_s16  ;;  %p3036_p1 = scmp.lt.u32.totalorder %s3029_s16, %s4433_s3 }
  0x47   : > { %p3032_p9 = pnand %p3030_p7, %p3711_p8 }
  0x49   : > { %p3033_p4 = pneg %p3032_p9 }
  0x4b   : > { %p3038_p3 = pnand %p3036_p1, %p3033_p4 }
  0x4d   : > { %3041 = shalt.err (!%p3038_p3)
}
  0x4e   : > { %s3042_s27 = scalar_lea.vmem %s3699_s29, 16  ;;  %s3049_s18 = scalar_lea.vmem %s3699_s29, 32 }
  0x4f   : > { %p3043_p10 = scmp.ne.s32.totalorder %s3699_s29, %s3042_s27  ;;  %p3050_p13 = scmp.lt.s32.totalorder %s3699_s29, %s3699_s29 }
  0x50   : > { %p3051_p0 = scmp.lt.s32.totalorder %s3049_s18, %s3042_s27 }
  0x51   : > { %p3045_p11 = pnand %p3043_p10, %p3711_p8 }
  0x52   : > { %p3052_p2 = por %p3051_p0, %p3050_p13 }
  0x53   : > { %p3046_p12 = pneg %p3045_p11 }
  0x55   : > { %p3053_p5 = pnand %p3052_p2, %p3046_p12 }
  0x57   : > { %3056 = shalt.err (!%p3053_p5)
}
  0x58   : > { %2814 = dma.hbm_to_vmem [thread:$0]  (!%p3695_p6), %s4433_s3, 16, %s3699_s29, [#allocation9]  }
  0x59   : > { %s4434_s5 = sld [smem:[#allocation48_spill]] }
  0x5f   : > { %s3057_s26 = scalar_lea.hbm %s4434_s5, 256 }
  0x60   : > { %p3058_p7 = scmp.ne.s32.totalorder %s4434_s5, %s3057_s26  ;;  %p3064_p1 = scmp.lt.u32.totalorder %s3057_s26, %s4434_s5 }
  0x62   : > { %p3060_p9 = pnand %p3058_p7, %p3711_p8 }
  0x64   : > { %p3061_p4 = pneg %p3060_p9 }
  0x66   : > { %p3066_p3 = pnand %p3064_p1, %p3061_p4 }
  0x68   : > { %3069 = shalt.err (!%p3066_p3)
}
  0x69   : > { %s3070_s18 = scalar_lea.vmem %s460_s17, 256  ;;  %p3078_p13 = scmp.lt.s32.totalorder %s460_s17, %s460_s17 }
  0x6a   : > { %p3071_p10 = scmp.ne.s32.totalorder %s460_s17, %s3070_s18  ;;  %p3079_p0 = scmp.lt.s32.totalorder %s3070_s18, %s3070_s18 }
  0x6c   : > { %p3073_p11 = pnand %p3071_p10, %p3711_p8  ;;  %p3080_p2 = por %p3079_p0, %p3078_p13 }
  0x6e   : > { %p3074_p12 = pneg %p3073_p11 }
  0x70   : > { %p3081_p5 = pnand %p3080_p2, %p3074_p12 }
  0x72   : > { %3084 = shalt.err (!%p3081_p5)
}
  0x73   : > { %s3544_s29 = smov 64   ;;  %s3545_s24 = smov 4  }
  0x74   : > { %2820 = dma.hbm_to_vmem [thread:$0]  (!%p3695_p6), %s4434_s5, 256, %s460_s17, [#allocation12], %s3544_s29, %s3544_s29, %s3545_s24  }
  0x75   : > { %s3546_s0 = smov [#allocation14]   ;;  %s3547_s16 = smov [#allocation17]  }
  0x76   : > { %s485_s26 = sshll.u32 %s3546_s0, 4  ;;  %s510_s15 = sshll.u32 %s3547_s16, 4  ;;  %s486_s26 = int_to_ptr.vmem [resolvable:$true] %s485_s26  ;;  %s511_s15 = int_to_ptr.vmem [resolvable:$true] %s510_s15 }
  0x77   : > { %s4435_s7 = sld [smem:[#allocation50_spill]] }
  0x7d   : > { %s3085_s18 = scalar_lea.hbm %s4435_s7, 256 }
  0x7e   : > { %p3086_p7 = scmp.ne.s32.totalorder %s4435_s7, %s3085_s18  ;;  %p3092_p1 = scmp.lt.u32.totalorder %s3085_s18, %s4435_s7 }
  0x80   : > { %p3088_p9 = pnand %p3086_p7, %p3711_p8 }
  0x82   : > { %p3089_p4 = pneg %p3088_p9 }
  0x84   : > { %p3094_p3 = pnand %p3092_p1, %p3089_p4 }
  0x86   : > { %3097 = shalt.err (!%p3094_p3)
}
  0x87   : > { %s3098_s17 = scalar_lea.vmem %s486_s26, 256  ;;  %p3106_p13 = scmp.lt.s32.totalorder %s486_s26, %s486_s26 }
  0x88   : > { %p3099_p10 = scmp.ne.s32.totalorder %s486_s26, %s3098_s17  ;;  %p3107_p0 = scmp.lt.s32.totalorder %s3098_s17, %s3098_s17 }
  0x8a   : > { %p3101_p11 = pnand %p3099_p10, %p3711_p8  ;;  %p3108_p2 = por %p3107_p0, %p3106_p13 }
  0x8c   : > { %p3102_p12 = pneg %p3101_p11 }
  0x8e   : > { %p3109_p5 = pnand %p3108_p2, %p3102_p12 }
  0x90   : > { %3112 = shalt.err (!%p3109_p5)
}
  0x91   : > { %2826 = dma.hbm_to_vmem [thread:$0]  (!%p3695_p6), %s4435_s7, 256, %s486_s26, [#allocation15], %s3544_s29, %s3544_s29, %s3545_s24  }
  0x92   : > { %s3113_s21 = scalar_lea.hbm %s4393_s9, 16 }
  0x93   : > { %p3114_p7 = scmp.ne.s32.totalorder %s4393_s9, %s3113_s21  ;;  %p3120_p1 = scmp.lt.u32.totalorder %s3113_s21, %s4393_s9 }
  0x95   : > { %p3116_p9 = pnand %p3114_p7, %p3711_p8 }
  0x97   : > { %p3117_p4 = pneg %p3116_p9 }
  0x99   : > { %p3122_p3 = pnand %p3120_p1, %p3117_p4 }
  0x9b   : > { %3125 = shalt.err (!%p3122_p3)
}
  0x9c   : > { %s3126_s27 = scalar_lea.vmem %s511_s15, 16  ;;  %s3133_s26 = scalar_lea.vmem %s511_s15, 32 }
  0x9d   : > { %p3127_p10 = scmp.ne.s32.totalorder %s511_s15, %s3126_s27  ;;  %p3134_p13 = scmp.lt.s32.totalorder %s511_s15, %s511_s15 }
  0x9e   : > { %p3135_p0 = scmp.lt.s32.totalorder %s3133_s26, %s3126_s27 }
  0x9f   : > { %p3129_p11 = pnand %p3127_p10, %p3711_p8 }
  0xa0   : > { %p3136_p2 = por %p3135_p0, %p3134_p13 }
  0xa1   : > { %p3130_p12 = pneg %p3129_p11 }
  0xa3   : > { %p3137_p5 = pnand %p3136_p2, %p3130_p12 }
  0xa5   : > { %3140 = shalt.err (!%p3137_p5)
}
  0xa6   : > { %2832 = dma.hbm_to_vmem [thread:$0]  (!%p3695_p6), %s4393_s9, 16, %s511_s15, [#allocation18]  }
  0xa7   : > { %s3548_s2 = smov [#allocation20]   ;;  %s3549_s19 = smov [#allocation23]  }
  0xa8   : > { %s531_s3 = sshll.u32 %s3548_s2, 4  ;;  %s555_s20 = sshll.u32 %s3549_s19, 4  ;;  %s532_s3 = int_to_ptr.vmem [resolvable:$true] %s531_s3  ;;  %s556_s20 = int_to_ptr.vmem [resolvable:$true] %s555_s20 }
  0xa9   : > { %s3141_s0 = scalar_lea.hbm %s4395_s11, 256 }
  0xaa   : > { %p3142_p7 = scmp.ne.s32.totalorder %s4395_s11, %s3141_s0  ;;  %p3148_p1 = scmp.lt.u32.totalorder %s3141_s0, %s4395_s11 }
  0xac   : > { %p3144_p9 = pnand %p3142_p7, %p3711_p8 }
  0xae   : > { %p3145_p4 = pneg %p3144_p9 }
  0xb0   : > { %p3150_p3 = pnand %p3148_p1, %p3145_p4 }
  0xb2   : > { %3153 = shalt.err (!%p3150_p3)
}
  0xb3   : > { %s3154_s15 = scalar_lea.vmem %s532_s3, 256  ;;  %p3162_p13 = scmp.lt.s32.totalorder %s532_s3, %s532_s3 }
  0xb4   : > { %p3155_p10 = scmp.ne.s32.totalorder %s532_s3, %s3154_s15  ;;  %p3163_p0 = scmp.lt.s32.totalorder %s3154_s15, %s3154_s15 }
  0xb6   : > { %p3157_p11 = pnand %p3155_p10, %p3711_p8  ;;  %p3164_p2 = por %p3163_p0, %p3162_p13 }
  0xb8   : > { %p3158_p12 = pneg %p3157_p11 }
  0xba   : > { %p3165_p5 = pnand %p3164_p2, %p3158_p12 }
  0xbc   : > { %3168 = shalt.err (!%p3165_p5)
}
  0xbd   : > { %2838 = dma.hbm_to_vmem [thread:$0]  (!%p3695_p6), %s4395_s11, 256, %s532_s3, [#allocation21], %s3544_s29, %s3544_s29, %s3545_s24  }
  0xbe   : > { %s3169_s21 = scalar_lea.hbm %s4397_s13, 1024 }
  0xbf   : > { %p3170_p7 = scmp.ne.s32.totalorder %s4397_s13, %s3169_s21  ;;  %p3176_p1 = scmp.lt.u32.totalorder %s3169_s21, %s4397_s13 }
  0xc1   : > { %p3172_p9 = pnand %p3170_p7, %p3711_p8 }
  0xc3   : > { %p3173_p4 = pneg %p3172_p9 }
  0xc5   : > { %p3178_p3 = pnand %p3176_p1, %p3173_p4 }
  0xc7   : > { %3181 = shalt.err (!%p3178_p3)
}
  0xc8   : > { %s3182_s27 = scalar_lea.vmem %s556_s20, 1024  ;;  %p3190_p13 = scmp.lt.s32.totalorder %s556_s20, %s556_s20 }
  0xc9   : > { %p3183_p10 = scmp.ne.s32.totalorder %s556_s20, %s3182_s27  ;;  %p3191_p0 = scmp.lt.s32.totalorder %s3182_s27, %s3182_s27 }
  0xcb   : > { %p3185_p11 = pnand %p3183_p10, %p3711_p8  ;;  %p3192_p2 = por %p3191_p0, %p3190_p13 }
  0xcd   : > { %p3186_p12 = pneg %p3185_p11 }
  0xcf   : > { %p3193_p5 = pnand %p3192_p2, %p3186_p12 }
  0xd1   : > { %3196 = shalt.err (!%p3193_p5)
}
  0xd2   : > { %2844 = dma.hbm_to_vmem [thread:$0]  (!%p3695_p6), %s4397_s13, 1024, %s556_s20, [#allocation24], %s3544_s29, %s3544_s29, %s3545_s24  }
  0xd3   : > { %s3550_s15 = smov [#allocation10]   ;;  %s3551_s17 = smov [#allocation13]  }
  0xd4   : > { %s446_s18 = sshll.u32 %s3550_s15, 4  ;;  %s472_s2 = sshll.u32 %s3551_s17, 4  ;;  %s447_s18 = int_to_ptr.vmem [resolvable:$true] %s446_s18  ;;  %s473_s2 = int_to_ptr.vmem [resolvable:$true] %s472_s2 }
  0xd5   : > { %s4436_s4 = sld [smem:[#allocation47_spill]] }
  0xdb   : > { %s3197_s25 = scalar_lea.hbm %s4436_s4, 256 }
  0xdc   : > { %p3198_p7 = scmp.ne.s32.totalorder %s4436_s4, %s3197_s25  ;;  %p3204_p1 = scmp.lt.u32.totalorder %s3197_s25, %s4436_s4 }
  0xde   : > { %p3200_p9 = pnand %p3198_p7, %p3711_p8 }
  0xe0   : > { %p3201_p4 = pneg %p3200_p9 }
  0xe2   : > { %p3206_p3 = pnand %p3204_p1, %p3201_p4 }
  0xe4   : > { %3209 = shalt.err (!%p3206_p3)
}
  0xe5   : > { %s3210_s20 = scalar_lea.vmem %s447_s18, 256  ;;  %p3218_p13 = scmp.lt.s32.totalorder %s447_s18, %s447_s18 }
  0xe6   : > { %p3211_p10 = scmp.ne.s32.totalorder %s447_s18, %s3210_s20  ;;  %p3219_p0 = scmp.lt.s32.totalorder %s3210_s20, %s3210_s20 }
  0xe8   : > { %p3213_p11 = pnand %p3211_p10, %p3711_p8  ;;  %p3220_p2 = por %p3219_p0, %p3218_p13 }
  0xea   : > { %p3214_p12 = pneg %p3213_p11 }
  0xec   : > { %p3221_p5 = pnand %p3220_p2, %p3214_p12 }
  0xee   : > { %3224 = shalt.err (!%p3221_p5)
}
  0xef   : > { %2817 = dma.hbm_to_vmem [thread:$0]  (!%p3695_p6), %s4436_s4, 256, %s447_s18, [#allocation9], %s3544_s29, %s3544_s29, %s3545_s24  }
  0xf0   : > { %s4437_s6 = sld [smem:[#allocation49_spill]] }
  0xf6   : > { %s3225_s19 = scalar_lea.hbm %s4437_s6, 256 }
  0xf7   : > { %p3226_p7 = scmp.ne.s32.totalorder %s4437_s6, %s3225_s19  ;;  %p3232_p1 = scmp.lt.u32.totalorder %s3225_s19, %s4437_s6 }
  0xf9   : > { %p3228_p9 = pnand %p3226_p7, %p3711_p8 }
  0xfb   : > { %p3229_p4 = pneg %p3228_p9 }
  0xfd   : > { %p3234_p3 = pnand %p3232_p1, %p3229_p4 }
  0xff   : > { %3237 = shalt.err (!%p3234_p3)
}
 0x100   : > { %s3238_s1 = scalar_lea.vmem %s473_s2, 256  ;;  %p3246_p13 = scmp.lt.s32.totalorder %s473_s2, %s473_s2 }
 0x101   : > { %p3239_p10 = scmp.ne.s32.totalorder %s473_s2, %s3238_s1  ;;  %p3247_p0 = scmp.lt.s32.totalorder %s3238_s1, %s3238_s1 }
 0x103   : > { %p3241_p11 = pnand %p3239_p10, %p3711_p8  ;;  %p3248_p2 = por %p3247_p0, %p3246_p13 }
 0x105   : > { %p3242_p12 = pneg %p3241_p11 }
 0x107   : > { %p3249_p5 = pnand %p3248_p2, %p3242_p12 }
 0x109   : > { %3252 = shalt.err (!%p3249_p5)
}
 0x10a   : > { %2823 = dma.hbm_to_vmem [thread:$0]  (!%p3695_p6), %s4437_s6, 256, %s473_s2, [#allocation12], %s3544_s29, %s3544_s29, %s3545_s24  }
 0x10b   : > { %s3552_s20 = smov [#allocation16]   ;;  %s3553_s26 = smov [#allocation19]  }
 0x10c   : > { %s499_s3 = sshll.u32 %s3552_s20, 4  ;;  %s521_s15 = sshll.u32 %s3553_s26, 4  ;;  %s500_s3 = int_to_ptr.vmem [resolvable:$true] %s499_s3  ;;  %s522_s15 = int_to_ptr.vmem [resolvable:$true] %s521_s15 }
 0x10d   : > { %s4438_s8 = sld [smem:[#allocation51_spill]] }
 0x113   : > { %s3253_s21 = scalar_lea.hbm %s4438_s8, 16 }
 0x114   : > { %p3254_p7 = scmp.ne.s32.totalorder %s4438_s8, %s3253_s21  ;;  %p3260_p1 = scmp.lt.u32.totalorder %s3253_s21, %s4438_s8 }
 0x116   : > { %p3256_p9 = pnand %p3254_p7, %p3711_p8 }
 0x118   : > { %p3257_p4 = pneg %p3256_p9 }
 0x11a   : > { %p3262_p3 = pnand %p3260_p1, %p3257_p4 }
 0x11c   : > { %3265 = shalt.err (!%p3262_p3)
}
 0x11d   : > { %s3266_s29 = scalar_lea.vmem %s500_s3, 16  ;;  %s3273_s24 = scalar_lea.vmem %s500_s3, 32 }
 0x11e   : > { %p3267_p10 = scmp.ne.s32.totalorder %s500_s3, %s3266_s29  ;;  %p3274_p13 = scmp.lt.s32.totalorder %s500_s3, %s500_s3 }
 0x11f   : > { %p3275_p0 = scmp.lt.s32.totalorder %s3273_s24, %s3266_s29 }
 0x120   : > { %p3269_p11 = pnand %p3267_p10, %p3711_p8 }
 0x121   : > { %p3276_p2 = por %p3275_p0, %p3274_p13 }
 0x122   : > { %p3270_p12 = pneg %p3269_p11 }
 0x124   : > { %p3277_p5 = pnand %p3276_p2, %p3270_p12 }
 0x126   : > { %3280 = shalt.err (!%p3277_p5)
}
 0x127   : > { %2829 = dma.hbm_to_vmem [thread:$0]  (!%p3695_p6), %s4438_s8, 16, %s500_s3, [#allocation15]  }
 0x128   : > { %s3281_s26 = scalar_lea.hbm %s4394_s10, 16 }
 0x129   : > { %p3282_p7 = scmp.ne.s32.totalorder %s4394_s10, %s3281_s26  ;;  %p3288_p1 = scmp.lt.u32.totalorder %s3281_s26, %s4394_s10 }
 0x12b   : > { %p3284_p9 = pnand %p3282_p7, %p3711_p8 }
 0x12d   : > { %p3285_p4 = pneg %p3284_p9 }
 0x12f   : > { %p3290_p3 = pnand %p3288_p1, %p3285_p4 }
 0x131   : > { %3293 = shalt.err (!%p3290_p3)
}
 0x132   : > { %s3294_s0 = scalar_lea.vmem %s522_s15, 16  ;;  %s3301_s3 = scalar_lea.vmem %s522_s15, 32 }
 0x133   : > { %p3295_p10 = scmp.ne.s32.totalorder %s522_s15, %s3294_s0  ;;  %p3302_p13 = scmp.lt.s32.totalorder %s522_s15, %s522_s15 }
 0x134   : > { %p3303_p0 = scmp.lt.s32.totalorder %s3301_s3, %s3294_s0 }
 0x135   : > { %p3297_p11 = pnand %p3295_p10, %p3711_p8 }
 0x136   : > { %p3304_p2 = por %p3303_p0, %p3302_p13 }
 0x137   : > { %p3298_p12 = pneg %p3297_p11 }
 0x139   : > { %p3305_p5 = pnand %p3304_p2, %p3298_p12 }
 0x13b   : > { %3308 = shalt.err (!%p3305_p5)
}
 0x13c   : > { %2835 = dma.hbm_to_vmem [thread:$0]  (!%p3695_p6), %s4394_s10, 16, %s522_s15, [#allocation18]  }
 0x13d   : > { %s3554_s29 = smov [#allocation22]   ;;  %s3555_s2 = smov [#allocation25]  }
 0x13e   : > { %s545_s24 = sshll.u32 %s3554_s29, 4  ;;  %s569_s18 = sshll.u32 %s3555_s2, 4  ;;  %s546_s24 = int_to_ptr.vmem [resolvable:$true] %s545_s24  ;;  %s570_s18 = int_to_ptr.vmem [resolvable:$true] %s569_s18 }
 0x13f   : > { %s3309_s26 = scalar_lea.hbm %s4396_s12, 16 }
 0x140   : > { %p3310_p7 = scmp.ne.s32.totalorder %s4396_s12, %s3309_s26  ;;  %p3316_p1 = scmp.lt.u32.totalorder %s3309_s26, %s4396_s12 }
 0x142   : > { %p3312_p9 = pnand %p3310_p7, %p3711_p8 }
 0x144   : > { %p3313_p4 = pneg %p3312_p9 }
 0x146   : > { %p3318_p3 = pnand %p3316_p1, %p3313_p4 }
 0x148   : > { %3321 = shalt.err (!%p3318_p3)
}
 0x149   : > { %s3322_s15 = scalar_lea.vmem %s546_s24, 16  ;;  %s3329_s0 = scalar_lea.vmem %s546_s24, 32 }
 0x14a   : > { %p3323_p10 = scmp.ne.s32.totalorder %s546_s24, %s3322_s15  ;;  %p3330_p13 = scmp.lt.s32.totalorder %s546_s24, %s546_s24 }
 0x14b   : > { %p3331_p0 = scmp.lt.s32.totalorder %s3329_s0, %s3322_s15 }
 0x14c   : > { %p3325_p11 = pnand %p3323_p10, %p3711_p8 }
 0x14d   : > { %p3332_p2 = por %p3331_p0, %p3330_p13 }
 0x14e   : > { %p3326_p12 = pneg %p3325_p11 }
 0x150   : > { %p3333_p5 = pnand %p3332_p2, %p3326_p12 }
 0x152   : > { %3336 = shalt.err (!%p3333_p5)
}
 0x153   : > { %2841 = dma.hbm_to_vmem [thread:$0]  (!%p3695_p6), %s4396_s12, 16, %s546_s24, [#allocation21]  }
 0x154   : > { %s3337_s2 = scalar_lea.hbm %s4398_s14, 16 }
 0x155   : > { %p3338_p7 = scmp.ne.s32.totalorder %s4398_s14, %s3337_s2  ;;  %p3344_p1 = scmp.lt.u32.totalorder %s3337_s2, %s4398_s14 }
 0x157   : > { %p3340_p9 = pnand %p3338_p7, %p3711_p8 }
 0x159   : > { %p3341_p4 = pneg %p3340_p9 }
 0x15b   : > { %p3346_p3 = pnand %p3344_p1, %p3341_p4 }
 0x15d   : > { %3349 = shalt.err (!%p3346_p3)
}
 0x15e   : > { %s3350_s19 = scalar_lea.vmem %s570_s18, 16  ;;  %s3357_s24 = scalar_lea.vmem %s570_s18, 32 }
 0x15f   : > { %p3351_p10 = scmp.ne.s32.totalorder %s570_s18, %s3350_s19  ;;  %p3358_p13 = scmp.lt.s32.totalorder %s570_s18, %s570_s18 }
 0x160   : > { %p3359_p0 = scmp.lt.s32.totalorder %s3357_s24, %s3350_s19 }
 0x161   : > { %p3353_p11 = pnand %p3351_p10, %p3711_p8 }
 0x162   : > { %p3360_p2 = por %p3359_p0, %p3358_p13 }
 0x163   : > { %p3354_p12 = pneg %p3353_p11 }
 0x165   : > { %p3361_p5 = pnand %p3360_p2, %p3354_p12 }
 0x167   : > { %3364 = shalt.err (!%p3361_p5)
}
 0x168   : > { %s4439_s15 = sld [smem:[#allocation39_spill]]  ;;  %s4440_s0 = sld [smem:[#allocation38_spill]] }
 0x169   : > { %s4441_s28 = sld [smem:[#allocation37_spill]]  ;;  %s4442_s3 = sld [smem:[#allocation41_spill]] }
 0x16a   : > { %2847 = dma.hbm_to_vmem [thread:$0]  (!%p3695_p6), %s4398_s14, 16, %s570_s18, [#allocation24]  }
 0x16b   : > { %s2515_s16 = sadd.s32 4294967294, %s3539_s23   ;;  %s52_s1 = sadd.s32 1, %s3535_s22 }
 0x16c   : > { %p54_p8 = scmp.ge.s32.totalorder %s52_s1, 2  ;;  %p69_p9 = scmp.eq.s32.totalorder %s3539_s23, 0 }
 0x16d   : > { %p405_p12 = scmp.eq.s32.totalorder %s2515_s16, 1  ;;  %p2872_p0 = scmp.lt.s32.totalorder %s3539_s23, 2 }
 0x16e   : > { %s61_s30 = sadd.s32 1, %s4439_s15  ;;  %p68_p7 = scmp.ne.s32.totalorder %s4439_s15, %s4440_s0 }
 0x16f   : > { %p74_p4 = scmp.ne.s32.totalorder %s4440_s0, %s4441_s28  ;;  %s4482_s1 = smov (%p54_p8, %s52_s1), 0 }
 0x170   : > { %p3978_p1 = por %p69_p9, %p68_p7  ;;  %p4444_p3 = scmp.eq.s32.totalorder %s4442_s3, 0 }
 0x171   : > { %s56_s2 = ssub.s32 %s3535_s22, %s4482_s1  ;;  %p399_p10 = scmp.eq.s32.totalorder %s4442_s3, 1 }
 0x172   : > { %p3984_p6 = por %p4444_p3, %p74_p4  ;;  %p59_p11 = scmp.eq.s32.totalorder %s56_s2, 0 }
 0x173   : > { %p3991_p13 = por %p399_p10, %p68_p7  ;;  %p3999_p2 = por %p405_p12, %p74_p4 }
 0x174   : > { %s4445_s18 = scalar_select %p3984_p6, 1, 0 }
 0x175   : > { %s4446_s27 = scalar_select %p3991_p13, 1, 0 }
 0x176   : > { %s3997_s20 = scalar_select %p59_p11, %s4439_s15, %s61_s30  }
 0x177   : > { %s4447_s26 = scalar_select %p3999_p2, 1, 0 }
 0x178   : > { %s580_s17 = sand.u32 1, %s4439_s15   ;;  %s2532_s24 = sshll.u32 %s3535_s22, 7 }
 0x179   : > { %s4004_s19 = sshll.u32 %s580_s17, 3  ;;  %s4448_s0 = sld [smem:[#allocation43_spill]] }
 0x17a   : > { %s584_s3 = scalar_lea.vmem [#allocation2], %s4004_s19  ;;  %p4017_p5 = pnand %p2872_p0, %p3978_p1 }
 0x17b   : > { %s592_s16 = sshll.u32 %s584_s3, 4  ;;  %s4450_s4 = sld [smem:[#allocation44_spill]]  ;;  %s4013_s16 = int_to_ptr.vmem [resolvable:$true] %s592_s16 }
 0x17c   : > { %s599_s25 = sand.u32 1, %s3539_s23   ;;  %s581_s5 = scalar_lea.sflag [#allocation3], %s580_s17 }
 0x17d   : > { %p3367_p7 = pneg %p4017_p5 }
 0x17f   : > { %s4010_s28 = scalar_lea.hbm %s4448_s0, %s2532_s24  ;;  %s3370_s7 = scalar_lea.hbm %s4448_s0, 256 }
 0x180   : > { %s3365_s6 = scalar_lea.hbm %s4010_s28, 128  ;;  %p3371_p1 = scmp.lt.u32.totalorder %s4010_s28, %s4448_s0 }
 0x181   : > { %s4024_s21 = scalar_lea.hbm %s4450_s4, %s2532_s24  ;;  %p3366_p8 = scmp.ne.s32.totalorder %s4010_s28, %s3365_s6 }
 0x182   : > { %p3372_p3 = scmp.lt.u32.totalorder %s3370_s7, %s3365_s6  ;;  %p3374_p11 = scmp.lt.u32.totalorder %s3365_s6, %s4010_s28 }
 0x183   : > { %p3368_p9 = pnand %p3367_p7, %p3366_p8 }
 0x184   : > { %p3373_p10 = por %p3372_p3, %p3371_p1 }
 0x185   : > { %p3369_p4 = pneg %p3368_p9 }
 0x186   : > { %p3375_p12 = por %p3374_p11, %p3373_p10 }
 0x188   : > { %p3376_p0 = pnand %p3375_p12, %p3369_p4 }
 0x18a   : > { %3379 = shalt.err (!%p3376_p0)
}
 0x18b   : > { %s3380_s17 = scalar_lea.vmem %s4013_s16, 128  ;;  %s3556_s24 = smov [#allocation2]  }
 0x18c   : > { %p3381_p8 = scmp.ne.s32.totalorder %s4013_s16, %s3380_s17  ;;  %s3385_s2 = sshll.u32 %s3556_s24, 4  ;;  %s3386_s2 = int_to_ptr.vmem [resolvable:$false] %s3385_s2 }
 0x18d   : > { %s3387_s8 = scalar_lea.vmem %s3386_s2, 256  ;;  %p3388_p13 = scmp.lt.s32.totalorder %s4013_s16, %s3386_s2 }
 0x18e   : > { %p3383_p9 = pnand %p3381_p8, %p3367_p7  ;;  %p3389_p1 = scmp.lt.s32.totalorder %s3387_s8, %s3380_s17 }
 0x190   : > { %p3384_p2 = pneg %p3383_p9  ;;  %p3390_p3 = por %p3389_p1, %p3388_p13 }
 0x192   : > { %p3391_p10 = pnand %p3390_p3, %p3384_p2 }
 0x194   : > { %3394 = shalt.err (!%p3391_p10)
}
 0x195   : > { %2851 = dma.hbm_to_vmem [thread:$0]  (!%p4017_p5), %s4010_s28, 128, %s4013_s16, %s581_s5  }
 0x196   : > { %s603_s6 = scalar_lea.vmem [#allocation5], %s4004_s19  ;;  %s600_s29 = scalar_lea.sflag [#allocation6], %s599_s25 }
 0x197   : > { %s610_s7 = sshll.u32 %s603_s6, 4  ;;  %s3395_s3 = scalar_lea.hbm %s4024_s21, 128  ;;  %s611_s7 = int_to_ptr.vmem [resolvable:$true] %s610_s7 }
 0x198   : > { %p3396_p13 = scmp.ne.s32.totalorder %s4024_s21, %s3395_s3  ;;  %s3400_s24 = scalar_lea.hbm %s4450_s4, 256 }
 0x199   : > { %p3401_p11 = scmp.lt.u32.totalorder %s4024_s21, %s4450_s4  ;;  %p3402_p12 = scmp.lt.u32.totalorder %s3400_s24, %s3395_s3 }
 0x19a   : > { %p3398_p2 = pnand %p3396_p13, %p3367_p7  ;;  %p3404_p8 = scmp.lt.u32.totalorder %s3395_s3, %s4024_s21 }
 0x19b   : > { %p3403_p0 = por %p3402_p12, %p3401_p11 }
 0x19c   : > { %p3399_p4 = pneg %p3398_p2 }
 0x19d   : > { %p3405_p9 = por %p3404_p8, %p3403_p0 }
 0x19f   : > { %p3406_p1 = pnand %p3405_p9, %p3399_p4 }
 0x1a1   : > { %3409 = shalt.err (!%p3406_p1)
}
 0x1a2   : > { %s3410_s5 = scalar_lea.vmem %s611_s7, 128  ;;  %s3557_s19 = smov [#allocation5]  }
 0x1a3   : > { %p3411_p3 = scmp.ne.s32.totalorder %s611_s7, %s3410_s5  ;;  %s3415_s28 = sshll.u32 %s3557_s19, 4  ;;  %s3416_s28 = int_to_ptr.vmem [resolvable:$false] %s3415_s28 }
 0x1a4   : > { %s3417_s16 = scalar_lea.vmem %s3416_s28, 256  ;;  %p3418_p2 = scmp.lt.s32.totalorder %s611_s7, %s3416_s28 }
 0x1a5   : > { %p3413_p10 = pnand %p3411_p3, %p3367_p7  ;;  %p3419_p6 = scmp.lt.s32.totalorder %s3417_s16, %s3410_s5 }
 0x1a7   : > { %p3414_p13 = pneg %p3413_p10  ;;  %p3420_p11 = por %p3419_p6, %p3418_p2 }
 0x1a9   : > { %p3421_p12 = pnand %p3420_p11, %p3414_p13 }
 0x1ab   : > { %3424 = shalt.err (!%p3421_p12)
}
 0x1ac   : > { %2854 = dma.hbm_to_vmem [thread:$0]  (!%p4017_p5), %s4024_s21, 128, %s611_s7, %s600_s29  }
 0x1ad   : > { %s4451_s25 = sld [smem:[#allocation42_spill]] }
 0x1b3   : > { %p4452_p4 = scmp.ne.s32.totalorder %s4451_s25, 0 }
 0x1b4   : > { %s4453_s6 = sld [smem:[#allocation38_spill]] (!%p4452_p4)  ;;  %p4454_p6 = scmp.ne.s32.totalorder (!%p4452_p4), %s4445_s18, 0 }
 0x1b5   : > { %619 = sbr.rel (%p4452_p4) target bundleno = 3075 (0xc03), region = 80 }
 0x1ba   : > { %s4077_s3 = sand.u32 (!%p4452_p4), 1, %s4453_s6  }
 0x1bb   : > { %s4080_s30 = sshll.u32 (!%p4452_p4), %s4077_s3, 3  ;;  %s622_s17 = scalar_lea.sflag (!%p4452_p4), [#allocation3], %s4077_s3 }
 0x1bc   : > { %s625_s24 = scalar_lea.vmem [#allocation2], %s4080_s30 }
 0x1bd   : > { %3478 = dma.done.wait (%p4454_p6), %s622_s17, 128  }
 0x1be   : > { %3480 = vsyncadd (%p4454_p6), %s622_s17, 4294967168  ;;  %s4455_s15 = sld [smem:[#allocation41_spill]]  ;;  %s634_s29 = scalar_lea.vmem [#allocation5], %s4080_s30 }
 0x1c4   : > { %s630_s21 = sand.u32 1, %s4455_s15  }
 0x1c5   : > { %s631_s7 = scalar_lea.sflag [#allocation6], %s630_s21 }
 0x1c6   : > { %3482 = dma.done.wait (%p4454_p6), %s631_s7, 128  }
 0x1c7   : > { %3484 = vsyncadd (%p4454_p6), %s631_s7, 4294967168  ;;  %p4456_p5 = scmp.eq.s32.totalorder %s4455_s15, 0 }
 0x1c9   : > { %3486 = dma.done.wait (%p4456_p5), [#allocation6], 16   ;;  %p4457_p7 = pmov %p4456_p5 }
 0x1ca   : > { %p4458_p0 = pmov %p4456_p5 }
 0x1cb   : > { %3488 = vsyncadd (%p4457_p7), [#allocation6], 4294967280 }
 0x1cc   : > { %3490 = dma.done.wait (%p4458_p0), [#allocation9], 272   ;;  %p4459_p8 = pmov %p4458_p0 }
 0x1cd   : > { %p4460_p9 = pmov %p4458_p0 }
 0x1ce   : > { %3492 = vsyncadd (%p4459_p8), [#allocation9], 4294967024 }
 0x1cf   : > { %3494 = dma.done.wait (%p4460_p9), [#allocation12], 512   ;;  %p4461_p1 = pmov %p4458_p0 }
 0x1d0   : > { %p4462_p3 = pmov %p4458_p0 }
 0x1d1   : > { %3496 = vsyncadd (%p4461_p1), [#allocation12], 4294966784 }
 0x1d2   : > { %3498 = dma.done.wait (%p4462_p3), [#allocation15], 272   ;;  %p4463_p10 = pmov %p4458_p0 }
 0x1d3   : > { %p4464_p13 = pmov %p4458_p0 }
 0x1d4   : > { %3500 = vsyncadd (%p4463_p10), [#allocation15], 4294967024 }
 0x1d5   : > { %3502 = dma.done.wait (%p4464_p13), [#allocation18], 32   ;;  %p4465_p2 = pmov %p4458_p0 }
 0x1d6   : > { %p4466_p11 = pmov %p4458_p0 }
 0x1d7   : > { %3504 = vsyncadd (%p4465_p2), [#allocation18], 4294967264 }
 0x1d8   : > { %3506 = dma.done.wait (%p4466_p11), [#allocation21], 272   ;;  %p4467_p12 = pmov %p4458_p0 }
 0x1d9   : > { %p4468_p4 = pmov %p4458_p0 }
 0x1da   : > { %3508 = vsyncadd (%p4467_p12), [#allocation21], 4294967024 }
 0x1db   : > { %3510 = dma.done.wait (%p4468_p4), [#allocation24], 1040   ;;  %p4469_p6 = pmov %p4458_p0 }
 0x1dc   : > { %vm744_vm0 = vcmask 261120   ;;  %v4122_v0 = vld [vmem:[%s625_s24] sm:$0xff]  ;;  %v740_v1 = vld [vmem:[%s634_s29] sm:$0xff]  ;;  %v3558_v15 = vmov 0.0   ;;  %vm3559_vm1 = vmmov 0   ;;  %s3560_s18 = smov 112   ;;  %v965_v52 = vlaneseq }
 0x1dd   : > { %3512 = vsyncadd (%p4469_p6), [#allocation24], 4294966256  ;;  %v745_v2 = vsel %vm744_vm0, %v4122_v0, 0.0  ;;  %v773_v3 = vsel %vm744_vm0, %v740_v1, 0.0  ;;  %v2961_v14 = vld [vmem:[#allocation10] sm:$0xff]   ;;  %2642 = vmatprep.subr.bf16.mxu0 %v3558_v15  ;;  %2666 = vmatprep.subr.bf16.mxu1 %v3558_v15  ;;  %v2962_v16 = vld [vmem:[#allocation10 + $0x8] sm:$0xff]  }
 0x1de   : > { %746 = vadd.xlane.f32.xlu0 %v745_v2  ;;  %2643 = vmatpush3.bf16.msra.mxu0 %v2961_v14  ;;  %v2552_v24 = vld [vmem:[#allocation7] ss:$0 sm:$0xff]  ;;  %v2553_v26 = vld [vmem:[#allocation8] ss:$0 sm:$0xff]  ;;  %v2963_v31 = vld [vmem:[#allocation11] sm:$0xff]   ;;  %s3561_s2 = smov 120  }
 0x1df   : > { %2644 = vmatprep.subr.bf16.mxu0 %v3558_v15  ;;  %2646 = vmatprep.mubr.msk.bf16.mxu0 %vm3559_vm1, %v3558_v15  ;;  %v2964_v34 = vld [vmem:[#allocation11 + $0x8] sm:$0xff]   ;;  %v2965_v36 = vld [vmem:[#allocation13] sm:$0xff]   ;;  %v2966_v38 = vld [vmem:[#allocation13 + $0x8] sm:$0xff]   ;;  %s3562_s8 = smov 104   ;;  %v3563_v53 = vmov 1983009808  }
 0x1e0   : > { %2668 = vmatprep.mubr.msk.bf16.mxu1 %vm3559_vm1, %v3558_v15  ;;  %v986_v54 = vunpack.c.l.s4 %v3563_v53  ;;  %v3564_v55 = vmov 1934713408   ;;  %v4160_v57 = vshrl.u32 %v965_v52, 7  ;;  %vm1423_vm2 = vcmask 64512   ;;  %s3566_s5 = smov 16   ;;  %s3567_s19 = smov 8  }
 0x1e1   : > { %v1018_v56 = vunpack.c.l.s4 %v3564_v55  ;;  %vm1659_vm4 = vcmask 1043456   ;;  %s3568_s28 = smov 24   ;;  %vm1990_vm5 = vcmask 130048   ;;  %vm1992_vm6 = vcmask 195584   ;;  %s4470_s16 = sld [smem:[#allocation40_spill]] }
 0x1e2   : > { %774 = vadd.xlane.f32.xlu0 %v773_v3  ;;  %2645 = vmatpush3.bf16.msra.mxu0 %v2962_v16  ;;  %v987_v58 = vunpack.c.0.s8 %v986_v54  ;;  %s737_s6 = scalar_lea.vmem [#allocation26], %s4080_s30  ;;  %s4471_s21 = sld [smem:[#allocation52_spill]] }
 0x1e3   : > { %2650 = vmatprep.subr.bf16.mxu0 %v3558_v15  ;;  %v1019_v60 = vunpack.c.0.s8 %v1018_v56  ;;  %s2288_s17 = sshll.u32 %s737_s6, 4  ;;  %s2274_s30 = scalar_lea.sflag [#allocation4], %s4077_s3  ;;  %s4336_s17 = int_to_ptr.vmem [resolvable:$true] %s2288_s17 }
 0x1e4   : > { %v4163_v61 = vsub.s32 %v987_v58, %v4160_v57  ;;  %p4473_p7 = scmp.ne.s32.totalorder %s4446_s27, 0 }
 0x1e7   : > { %s2599_s25 = sshll.u32 %s4470_s16, 7 }
 0x1e8   : > { %s4472_s7 = smov %s4471_s21  ;;  %s4334_s29 = scalar_lea.hbm %s4471_s21, %s2599_s25 }
 0x26b   : > { %v747_v4 = vpop.xlane.xlu0 %746 }
 0x26c   : > { %v749_v5 = vmul.f32 0.03125, %v747_v4 }
 0x26e   : > { %v750_v6 = vsub.f32 %v4122_v0, %v749_v5  ;;  %v4166_v5 = vsub.s32 %v1019_v60, %v4160_v57 }
 0x26f   : > { %v775_v7 = vpop.xlane.xlu0 %774 }
 0x270   : > { %v776_v8 = vmul.f32 0.03125, %v775_v7  ;;  %v751_v9 = vmul.f32 %v750_v6, %v750_v6 }
 0x272   : > { %v777_v10 = vsub.f32 %v740_v1, %v776_v8  ;;  %v752_v11 = vsel %vm744_vm0, %v751_v9, 0.0 }
 0x273   : > { %753 = vadd.xlane.f32.xlu1 %v752_v11 }
 0x274   : > { %v778_v12 = vmul.f32 %v777_v10, %v777_v10 }
 0x276   : > { %v779_v13 = vsel %vm744_vm0, %v778_v12, 0.0 }
 0x277   : > { %780 = vadd.xlane.f32.xlu1 %v779_v13 }
 0x300   : > { %v754_v17 = vpop.xlane.xlu1 %753 }
 0x301   : > { %v755_v18 = vmul.f32 0.03125, %v754_v17 }
 0x303   : > { %v756_v19 = vadd.f32 1e-05, %v755_v18 }
 0x304   : > { %v781_v20 = vpop.xlane.xlu1 %780 }
 0x305   : > { %2979 = vrsqrt.f32 %v756_v19  ;;  %v782_v21 = vmul.f32 0.03125, %v781_v20 }
 0x307   : > { %v783_v22 = vadd.f32 1e-05, %v782_v21 }
 0x309   : > { %2981 = vrsqrt.f32 %v783_v22 }
 0x30f   : > { %v2980_v23 = vpop.eup %2979 }
 0x310   : > { %v758_v25 = vmul.f32 %v2980_v23, %v750_v6 }
 0x312   : > { %v765_v27 = vmul.f32 %v2552_v24, %v758_v25 }
 0x313   : > { %v2982_v28 = vpop.eup %2981 }
 0x314   : > { %v785_v29 = vmul.f32 %v2982_v28, %v777_v10  ;;  %v772_v30 = vadd.f32 %v2553_v26, %v765_v27 }
 0x316   : > { %v786_v32 = vmul.f32 %v2552_v24, %v785_v29  ;;  %v788_v33 = vpack.c.bf16 %v772_v30, %v772_v30 }
 0x318   : > { %2647 = vmatmul.mubr.msk.bf16.vlgmr.msra.gmra.mrb[0].mxu0 %vm744_vm0, %v788_v33  ;;  %v787_v35 = vadd.f32 %v2553_v26, %v786_v32 }
 0x319   : > { %2651 = vmatpush3.bf16.msra.mxu0 %v2963_v31  ;;  %2654 = vmatprep.mubr.msk.bf16.mxu0 %vm3559_vm1, %v3558_v15 }
 0x31a   : > { %2652 = vmatprep.subr.bf16.mxu0 %v3558_v15  ;;  %v849_v37 = vpack.c.bf16 %v787_v35, %v787_v35 }
 0x31d   : > { %2653 = vmatpush3.bf16.msra.mxu0 %v2964_v34 }
 0x31e   : > { %2658 = vmatprep.subr.bf16.mxu0 %v3558_v15 }
 0x320   : > { %2655 = vmatmul.mubr.msk.bf16.vlgmr.msra.gmra.mrb[4].mxu0 %vm744_vm0, %v849_v37 }
 0x321   : > { %2659 = vmatpush3.bf16.msra.mxu0 %v2965_v36  ;;  %2662 = vmatprep.mubr.msk.bf16.mxu0 %vm3559_vm1, %v3558_v15 }
 0x322   : > { %2660 = vmatprep.subr.bf16.mxu0 %v3558_v15 }
 0x325   : > { %2661 = vmatpush3.bf16.msra.mxu0 %v2966_v38 }
 0x326   : > { %2672 = vmatprep.subr.bf16.mxu0 %v3558_v15 }
 0x328   : > { %2663 = vmatmul.mubr.msk.bf16.vlgmr.msra.gmra.mrb[8].mxu0 %vm744_vm0, %v849_v37 }
 0x329   : > { %2674 = vmatprep.mubr.msk.bf16.mxu0 %vm3559_vm1, %v3558_v15 }
 0x3eb   : > { %v842_v39 = vpop.f32.mrb[0].mxu0 }
 0x3ec   : > { %v2648_v40 = vpop.f32.mrb[1].mxu0  ;;  %v848_v46 = vmul.f32 0.35355338, %v842_v39 }
 0x3ed   : > { %v845_v41 = vpop.f32.mrb[2].mxu0 }
 0x3ee   : > { %v2649_v42 = vpop.f32.mrb[3].mxu0 }
 0x3f3   : > { %v903_v43 = vpop.f32.mrb[4].mxu0 }
 0x3f4   : > { %1127 = vrot.lane.b32.xlu1 %v903_v43, %s3560_s18  ;;  %1124 = vrot.lane.b32.xlu0 %v903_v43, %s3561_s2  ;;  %v2656_v44 = vpop.f32.mrb[5].mxu0 }
 0x3f5   : > { %v906_v45 = vpop.f32.mrb[6].mxu0 }
 0x3f6   : > { %v2657_v47 = vpop.f32.mrb[7].mxu0 }
 0x3f8   : > { %1130 = vrot.lane.b32.xlu1 %v903_v43, %s3562_s8  ;;  %977 = vrot.lane.b32.xlu0 %v848_v46, %s3560_s18 }
 0x3fb   : > { %v4155_v48 = vpop.f32.mrb[8].mxu0 }
 0x3fc   : > { %974 = vrot.lane.b32.xlu1 %v848_v46, %s3561_s2  ;;  %v2664_v49 = vpop.f32.mrb[9].mxu0 }
 0x3fd   : > { %v962_v50 = vpop.f32.mrb[10].mxu0 }
 0x3fe   : > { %v2665_v51 = vpop.f32.mrb[11].mxu0 }
 0x400   : > { %980 = vrot.lane.b32.xlu1 %v848_v46, %s3562_s8 }
 0x466   : > { %v1128_v59 = vpop.permute.xlu1 %1127  ;;  %v1125_v1 = vpop.permute.xlu0 %1124 }
 0x467   : > { %v1133_v62 = vcombine.low %v903_v43, %v1128_v59  ;;  %v1134_v63 = vcombine.high %v903_v43, %v1128_v59 }
 0x469   : > { %v1141_v6 = vrot.slane %v1133_v62, %v4163_v61  ;;  %v1148_v7 = vrot.slane %v1134_v63, %v4163_v61 }
 0x46a   : > { %v1131_v2 = vpop.permute.xlu1 %1130  ;;  %v978_v16 = vpop.permute.xlu0 %977 }
 0x46b   : > { %v1149_v3 = vcombine.low %v1125_v1, %v1131_v2  ;;  %v1150_v4 = vcombine.high %v1125_v1, %v1131_v2  ;;  %v983_v21 = vcombine.low %v848_v46, %v978_v16  ;;  %v984_v22 = vcombine.high %v848_v46, %v978_v16 }
 0x46d   : > { %v1157_v8 = vrot.slane %v1149_v3, %v4163_v61  ;;  %v1164_v9 = vrot.slane %v1150_v4, %v4163_v61  ;;  %v991_v34 = vrot.slane %v983_v21, %v4163_v61  ;;  %v998_v35 = vrot.slane %v984_v22, %v4163_v61 }
 0x46e   : > { %v975_v10 = vpop.permute.xlu1 %974 }
 0x46f   : > { %v1165_v11 = vcombine.low %v1141_v6, %v1157_v8  ;;  %v1166_v12 = vcombine.high %v1141_v6, %v1157_v8  ;;  %v1181_v13 = vcombine.low %v1148_v7, %v1164_v9  ;;  %v1182_v14 = vcombine.high %v1148_v7, %v1164_v9 }
 0x471   : > { %v1173_v17 = vrot.slane %v1165_v11, %v4166_v5  ;;  %v1180_v18 = vrot.slane %v1166_v12, %v4166_v5  ;;  %v1189_v19 = vrot.slane %v1181_v13, %v4166_v5  ;;  %v1196_v20 = vrot.slane %v1182_v14, %v4166_v5 }
 0x472   : > { %v981_v23 = vpop.permute.xlu1 %980 }
 0x473   : > { %v1201_v24 = vcombine.low %v1173_v17, %v1180_v18  ;;  %v2565_v25 = vcombine.high %v1173_v17, %v1180_v18  ;;  %v1217_v26 = vcombine.low %v1189_v19, %v1196_v20  ;;  %v2566_v27 = vcombine.high %v1189_v19, %v1196_v20 }
 0x474   : > { %v999_v28 = vcombine.low %v975_v10, %v981_v23  ;;  %v1000_v29 = vcombine.high %v975_v10, %v981_v23 }
 0x475   : > { %v1208_v30 = vrot.slane %v1201_v24, %v4163_v61  ;;  %v1216_v31 = vrot.slane %v2565_v25, %v4163_v61  ;;  %v1224_v32 = vrot.slane %v1217_v26, %v4163_v61  ;;  %v1232_v33 = vrot.slane %v2566_v27, %v4163_v61 }
 0x476   : > { %v1007_v36 = vrot.slane %v999_v28, %v4163_v61  ;;  %v1014_v37 = vrot.slane %v1000_v29, %v4163_v61 }
 0x477   : > { %v1233_v38 = vcombine.low %v1208_v30, %v1216_v31  ;;  %v1249_v39 = vcombine.low %v1224_v32, %v1232_v33  ;;  %v1234_v46 = vcombine.high %v1208_v30, %v1216_v31  ;;  %v1250_v47 = vcombine.high %v1224_v32, %v1232_v33 }
 0x478   : > { %v1015_v40 = vcombine.low %v991_v34, %v1007_v36  ;;  %v1016_v41 = vcombine.high %v991_v34, %v1007_v36  ;;  %v1031_v42 = vcombine.low %v998_v35, %v1014_v37  ;;  %v1032_v43 = vcombine.high %v998_v35, %v1014_v37 }
 0x479   : > { %v1241_v44 = vrot.slane %v1233_v38, %v4166_v5  ;;  %v1257_v45 = vrot.slane %v1249_v39, %v4166_v5  ;;  %v1248_v1 = vrot.slane %v1234_v46, %v4166_v5  ;;  %v1264_v2 = vrot.slane %v1250_v47, %v4166_v5 }
 0x47a   : > { %v1023_v49 = vrot.slane %v1015_v40, %v4166_v5  ;;  %v1030_v50 = vrot.slane %v1016_v41, %v4166_v5  ;;  %v1039_v51 = vrot.slane %v1031_v42, %v4166_v5  ;;  %v1046_v53 = vrot.slane %v1032_v43, %v4166_v5 }
 0x47b   : > { %v1265_v54 = vcombine.low %v1241_v44, %v1257_v45  ;;  %v1266_v55 = vcombine.high %v1241_v44, %v1257_v45  ;;  %v1267_v12 = vcombine.low %v1248_v1, %v1264_v2  ;;  %v1268_v13 = vcombine.high %v1248_v1, %v1264_v2 }
 0x47c   : > { %v1051_v56 = vcombine.low %v1023_v49, %v1030_v50  ;;  %v2563_v58 = vcombine.high %v1023_v49, %v1030_v50  ;;  %v1067_v59 = vcombine.low %v1039_v51, %v1046_v53  ;;  %v2564_v60 = vcombine.high %v1039_v51, %v1046_v53 }
 0x47d   : > { %v1269_v62 = vpack.c.bf16 %v1265_v54, %v1265_v54  ;;  %v1270_v63 = vpack.c.bf16 %v1266_v55, %v1266_v55  ;;  %v1271_v21 = vpack.c.bf16 %v1267_v12, %v1267_v12  ;;  %v1272_v22 = vpack.c.bf16 %v1268_v13, %v1268_v13 }
 0x47e   : > { %v1058_v3 = vrot.slane %v1051_v56, %v4163_v61  ;;  %v1066_v4 = vrot.slane %v2563_v58, %v4163_v61  ;;  %v1074_v6 = vrot.slane %v1067_v59, %v4163_v61  ;;  %v1082_v7 = vrot.slane %v2564_v60, %v4163_v61 }
 0x47f   : > { %v1428_v8 = vsel %vm1423_vm2, %v1269_v62, 0  ;;  %v1474_v9 = vsel %vm1423_vm2, %v1270_v63, 0  ;;  %v1520_v27 = vsel %vm1423_vm2, %v1271_v21, 0  ;;  %v1566_v28 = vsel %vm1423_vm2, %v1272_v22, 0 }
 0x480   : > { %2667 = vmatpush3.bf16.xpose.msra.mxu1 %v1428_v8  ;;  %2673 = vmatpush3.bf16.xpose.msra.mxu0 %v1474_v9  ;;  %v1083_v10 = vcombine.low %v1058_v3, %v1066_v4  ;;  %v1099_v11 = vcombine.low %v1074_v6, %v1082_v7  ;;  %v1084_v16 = vcombine.high %v1058_v3, %v1066_v4  ;;  %v970_v33 = vand.u32 127, %v965_v52 }
 0x481   : > { %2678 = vmatprep.subr.bf16.mxu1 %v3558_v15  ;;  %2684 = vmatprep.subr.bf16.mxu0 %v3558_v15  ;;  %v1100_v17 = vcombine.high %v1074_v6, %v1082_v7  ;;  %v3565_v34 = vmov -1e+30  }
 0x482   : > { %v1091_v14 = vrot.slane %v1083_v10, %v4166_v5  ;;  %v1107_v18 = vrot.slane %v1099_v11, %v4166_v5  ;;  %v1098_v25 = vrot.slane %v1084_v16, %v4166_v5  ;;  %vm971_vm3 = vcmp.ge.s32.totalorder %v4160_v57, %v970_v33 }
 0x483   : > { %v1114_v26 = vrot.slane %v1100_v17, %v4166_v5  ;;  %v972_v35 = vsel %vm971_vm3, 0.0, %v3565_v34 }
 0x484   : > { %v1115_v19 = vcombine.low %v1091_v14, %v1107_v18  ;;  %v1116_v20 = vcombine.high %v1091_v14, %v1107_v18 }
 0x485   : > { %v1117_v29 = vcombine.low %v1098_v25, %v1114_v26  ;;  %v1118_v30 = vcombine.high %v1098_v25, %v1114_v26 }
 0x486   : > { %v1119_v23 = vpack.c.bf16 %v1115_v19, %v1115_v19  ;;  %v1120_v24 = vpack.c.bf16 %v1116_v20, %v1116_v20 }
 0x487   : > { %v1121_v31 = vpack.c.bf16 %v1117_v29, %v1117_v29  ;;  %v1122_v32 = vpack.c.bf16 %v1118_v30, %v1118_v30 }
 0x488   : > { %2669 = vmatmul.mubr.msk.bf16.vlgmr.msra.gmra.mrb[0].mxu1 %vm1423_vm2, %v1119_v23  ;;  %2675 = vmatmul.mubr.msk.bf16.vlgmr.msra.gmra.mrb[12].mxu0 %vm1423_vm2, %v1120_v24 }
 0x489   : > { %2679 = vmatpush3.bf16.xpose.msra.mxu1 %v1520_v27  ;;  %2685 = vmatpush3.bf16.xpose.msra.mxu0 %v1566_v28 }
 0x48a   : > { %2680 = vmatprep.mubr.msk.bf16.mxu1 %vm3559_vm1, %v3558_v15  ;;  %2686 = vmatprep.mubr.msk.bf16.mxu0 %vm3559_vm1, %v3558_v15 }
 0x48b   : > { %2690 = vmatprep.subr.bf16.mxu1 %v3558_v15  ;;  %2696 = vmatprep.subr.bf16.mxu0 %v3558_v15 }
 0x490   : > { %2681 = vmatmul.mubr.msk.bf16.vlgmr.msra.gmra.mrb[4].mxu1 %vm1423_vm2, %v1121_v31  ;;  %2687 = vmatmul.mubr.msk.bf16.vlgmr.msra.gmra.mrb[16].mxu0 %vm1423_vm2, %v1122_v32 }
 0x491   : > { %2692 = vmatprep.mubr.msk.bf16.mxu1 %vm3559_vm1, %v3558_v15  ;;  %2698 = vmatprep.mubr.msk.bf16.mxu0 %vm3559_vm1, %v3558_v15 }
 0x55b   : > { %v1464_v36 = vpop.f32.mrb[0].mxu1  ;;  %v1510_v37 = vpop.f32.mrb[12].mxu0 }
 0x55c   : > { %v1465_v38 = vadd.f32 %v1464_v36, %v972_v35  ;;  %v1511_v39 = vadd.f32 %v1510_v37, %v972_v35  ;;  %v2670_v40 = vpop.f32.mrb[1].mxu1  ;;  %v2676_v41 = vpop.f32.mrb[13].mxu0 }
 0x55d   : > { %v1467_v42 = vpop.f32.mrb[2].mxu1  ;;  %v1513_v43 = vpop.f32.mrb[14].mxu0 }
 0x55e   : > { %v2671_v44 = vpop.f32.mrb[3].mxu1  ;;  %v2677_v45 = vpop.f32.mrb[15].mxu0  ;;  %v1608_v46 = vsel %vm1423_vm2, %v1465_v38, -inf  ;;  %v1611_v47 = vsel %vm1423_vm2, %v1511_v39, -inf }
 0x55f   : > { %1609 = vmax.xlane.f32.xlu0 %v1608_v46  ;;  %1612 = vmax.xlane.f32.xlu1 %v1611_v47 }
 0x563   : > { %v1556_v52 = vpop.f32.mrb[4].mxu1  ;;  %v1602_v57 = vpop.f32.mrb[16].mxu0 }
 0x564   : > { %v1557_v49 = vadd.f32 %v1556_v52, %v972_v35  ;;  %v2682_v50 = vpop.f32.mrb[5].mxu1  ;;  %v2688_v51 = vpop.f32.mrb[17].mxu0  ;;  %v1603_v55 = vadd.f32 %v1602_v57, %v972_v35 }
 0x565   : > { %v1559_v53 = vpop.f32.mrb[6].mxu1  ;;  %v1605_v54 = vpop.f32.mrb[18].mxu0 }
 0x566   : > { %v2683_v56 = vpop.f32.mrb[7].mxu1  ;;  %v2689_v58 = vpop.f32.mrb[19].mxu0  ;;  %v1614_v59 = vsel %vm1423_vm2, %v1557_v49, -inf  ;;  %v1617_v60 = vsel %vm1423_vm2, %v1603_v55, -inf }
 0x567   : > { %1615 = vmax.xlane.f32.xlu0 %v1614_v59 }
 0x56b   : > { %1618 = vmax.xlane.f32.xlu0 %v1617_v60 }
 0x570   : > { %1277 = vrot.lane.b32.xlu1 %v4155_v48, %s3560_s18  ;;  %s3425_s18 = scalar_lea.vmem %s4336_s17, 128 }
 0x571   : > { %p3426_p5 = scmp.ne.s32.totalorder %s4336_s17, %s3425_s18 }
 0x573   : > { %p3427_p0 = pnand %p3426_p5, %p4473_p7 }
 0x575   : > { %p3428_p8 = pneg %p3427_p0 }
 0x5ec   : > { %v1610_v62 = vpop.xlane.xlu0 %1609  ;;  %v1613_v63 = vpop.xlane.xlu1 %1612 }
 0x5ed   : > { %v1620_v1 = vsub.f32 %v1465_v38, %v1610_v62  ;;  %v1621_v2 = vsub.f32 %v1511_v39, %v1613_v63 }
 0x5ef   : > { %v1624_v3 = vmul.f32 1.442695, %v1620_v1  ;;  %v1626_v4 = vmul.f32 1.442695, %v1621_v2 }
 0x5f0   : > { %v1278_v21 = vpop.permute.xlu1 %1277 }
 0x5f1   : > { %2983 = vpow2.f32 %v1624_v3  ;;  %v1283_v24 = vcombine.low %v4155_v48, %v1278_v21  ;;  %v1284_v25 = vcombine.high %v4155_v48, %v1278_v21 }
 0x5f2   : > { %2985 = vpow2.f32 %v1626_v4 }
 0x5f3   : > { %v1291_v30 = vrot.slane %v1283_v24, %v4163_v61  ;;  %v1298_v31 = vrot.slane %v1284_v25, %v4163_v61 }
 0x5f4   : > { %v1616_v10 = vpop.xlane.xlu0 %1615 }
 0x5f5   : > { %v1622_v13 = vsub.f32 %v1557_v49, %v1616_v10 }
 0x5f7   : > { %v1628_v16 = vmul.f32 1.442695, %v1622_v13 }
 0x5f8   : > { %v1619_v11 = vpop.xlane.xlu0 %1618 }
 0x5f9   : > { %v1623_v12 = vsub.f32 %v1603_v55, %v1619_v11 }
 0x5fb   : > { %v4228_v6 = vpop.eup %2983  ;;  %v1630_v14 = vmul.f32 1.442695, %v1623_v12 }
 0x5fc   : > { %v4230_v7 = vpop.eup %2985  ;;  %v1632_v8 = vsel %vm1423_vm2, %v4228_v6, 0.0 }
 0x5fd   : > { %v1635_v9 = vsel %vm1423_vm2, %v4230_v7, 0.0  ;;  %1633 = vadd.xlane.f32.xlu0 %v1632_v8  ;;  %2987 = vpow2.f32 %v1630_v14 }
 0x5fe   : > { %1636 = vadd.xlane.f32.xlu1 %v1635_v9  ;;  %2989 = vpow2.f32 %v1628_v16 }
 0x607   : > { %v4240_v17 = vpop.eup %2987 }
 0x608   : > { %v4242_v18 = vpop.eup %2989  ;;  %v1641_v19 = vsel %vm1423_vm2, %v4240_v17, 0.0 }
 0x609   : > { %v1638_v20 = vsel %vm1423_vm2, %v4242_v18, 0.0 }
 0x60f   : > { %1280 = vrot.lane.b32.xlu1 %v4155_v48, %s3562_s8 }
 0x613   : > { %1274 = vrot.lane.b32.xlu0 %v4155_v48, %s3561_s2  ;;  %s3569_s2 = smov [#allocation26]  }
 0x614   : > { %s3429_s8 = sshll.u32 %s3569_s2, 4  ;;  %s3430_s8 = int_to_ptr.vmem [resolvable:$false] %s3429_s8 }
 0x615   : > { %p3432_p9 = scmp.lt.s32.totalorder %s4336_s17, %s3430_s8 }
 0x632   : > { %1642 = vadd.xlane.f32.xlu0 %v1641_v19 }
 0x633   : > { %1639 = vadd.xlane.f32.xlu1 %v1638_v20 }
 0x68a   : > { %v1634_v22 = vpop.xlane.xlu0 %1633 }
 0x68b   : > { %v1637_v23 = vpop.xlane.xlu1 %1636  ;;  %2991 = vrcp.f32 %v1634_v22 }
 0x68c   : > { %2993 = vrcp.f32 %v1637_v23 }
 0x68e   : > { %v1275_v26 = vpop.permute.xlu0 %1274 }
 0x68f   : > { %v1281_v27 = vpop.permute.xlu1 %1280 }
 0x690   : > { %v1299_v28 = vcombine.low %v1275_v26, %v1281_v27  ;;  %v1300_v29 = vcombine.high %v1275_v26, %v1281_v27 }
 0x692   : > { %v1307_v32 = vrot.slane %v1299_v28, %v4163_v61  ;;  %v1314_v33 = vrot.slane %v1300_v29, %v4163_v61 }
 0x694   : > { %v1315_v34 = vcombine.low %v1291_v30, %v1307_v32  ;;  %v1316_v35 = vcombine.high %v1291_v30, %v1307_v32  ;;  %v1331_v36 = vcombine.low %v1298_v31, %v1314_v33  ;;  %v1332_v37 = vcombine.high %v1298_v31, %v1314_v33 }
 0x695   : > { %v2992_v55 = vpop.eup %2991 }
 0x696   : > { %v1323_v48 = vrot.slane %v1315_v34, %v4166_v5  ;;  %v1330_v38 = vrot.slane %v1316_v35, %v4166_v5  ;;  %v1339_v39 = vrot.slane %v1331_v36, %v4166_v5  ;;  %v1346_v40 = vrot.slane %v1332_v37, %v4166_v5  ;;  %v2994_v59 = vpop.eup %2993 }
 0x697   : > { %v1649_v2 = vmul.f32 %v2994_v59, %v4230_v7  ;;  %v1648_v3 = vmul.f32 %v2992_v55, %v4228_v6 }
 0x698   : > { %v1351_v41 = vcombine.low %v1323_v48, %v1330_v38  ;;  %v2567_v42 = vcombine.high %v1323_v48, %v1330_v38  ;;  %v1367_v43 = vcombine.low %v1339_v39, %v1346_v40  ;;  %v2568_v44 = vcombine.high %v1339_v39, %v1346_v40 }
 0x699   : > { %v1652_v13 = vpack.c.bf16 %v1648_v3, %v1648_v3  ;;  %v1653_v14 = vpack.c.bf16 %v1649_v2, %v1649_v2 }
 0x69a   : > { %v1358_v45 = vrot.slane %v1351_v41, %v4163_v61  ;;  %v1366_v46 = vrot.slane %v2567_v42, %v4163_v61  ;;  %v1374_v47 = vrot.slane %v1367_v43, %v4163_v61  ;;  %v1382_v52 = vrot.slane %v2568_v44, %v4163_v61 }
 0x69c   : > { %v1383_v57 = vcombine.low %v1358_v45, %v1366_v46  ;;  %v1384_v49 = vcombine.high %v1358_v45, %v1366_v46  ;;  %v1399_v50 = vcombine.low %v1374_v47, %v1382_v52  ;;  %v1400_v51 = vcombine.high %v1374_v47, %v1382_v52 }
 0x69e   : > { %v1391_v53 = vrot.slane %v1383_v57, %v4166_v5  ;;  %v1398_v54 = vrot.slane %v1384_v49, %v4166_v5  ;;  %v1407_v56 = vrot.slane %v1399_v50, %v4166_v5  ;;  %v1414_v58 = vrot.slane %v1400_v51, %v4166_v5  ;;  %v2967_v50 = vld [vmem:[#allocation14] sm:$0xff]  }
 0x6a0   : > { %v1415_v60 = vcombine.low %v1391_v53, %v1407_v56  ;;  %v1416_v62 = vcombine.high %v1391_v53, %v1407_v56  ;;  %v1417_v63 = vcombine.low %v1398_v54, %v1414_v58  ;;  %v1418_v1 = vcombine.high %v1398_v54, %v1414_v58 }
 0x6a2   : > { %v1419_v4 = vpack.c.bf16 %v1415_v60, %v1415_v60  ;;  %v1420_v8 = vpack.c.bf16 %v1416_v62, %v1416_v62  ;;  %v1421_v11 = vpack.c.bf16 %v1417_v63, %v1417_v63  ;;  %v1422_v12 = vpack.c.bf16 %v1418_v1, %v1418_v1  ;;  %v2968_v62 = vld [vmem:[#allocation14 + $0x8] sm:$0xff]  }
 0x6a4   : > { %v1661_v9 = vsel %vm1659_vm4, %v1419_v4, 0  ;;  %v1707_v10 = vsel %vm1659_vm4, %v1420_v8, 0  ;;  %v1753_v6 = vsel %vm1659_vm4, %v1421_v11, 0  ;;  %v1799_v7 = vsel %vm1659_vm4, %v1422_v12, 0 }
 0x6a5   : > { %2691 = vmatpush3.bf16.msra.mxu1 %v1661_v9  ;;  %2697 = vmatpush3.bf16.msra.mxu0 %v1707_v10 }
 0x6a6   : > { %2702 = vmatprep.subr.bf16.mxu1 %v3558_v15  ;;  %2708 = vmatprep.subr.bf16.mxu0 %v3558_v15 }
 0x6a8   : > { %2693 = vmatmul.mubr.msk.bf16.vlgmr.msra.gmra.mrb[8].mxu1 %vm1423_vm2, %v1652_v13  ;;  %2699 = vmatmul.mubr.msk.bf16.vlgmr.msra.gmra.mrb[20].mxu0 %vm1423_vm2, %v1653_v14 }
 0x6a9   : > { %2703 = vmatpush3.bf16.msra.mxu1 %v1753_v6  ;;  %2709 = vmatpush3.bf16.msra.mxu0 %v1799_v7 }
 0x6aa   : > { %2704 = vmatprep.mubr.msk.bf16.mxu1 %vm3559_vm1, %v3558_v15  ;;  %2710 = vmatprep.mubr.msk.bf16.mxu0 %vm3559_vm1, %v3558_v15 }
 0x6ab   : > { %2714 = vmatprep.subr.bf16.mxu1 %v3558_v15  ;;  %2722 = vmatprep.subr.bf16.mxu0 %v3558_v15 }
 0x6bf   : > { %v1643_v16 = vpop.xlane.xlu0 %1642 }
 0x6c0   : > { %v1640_v19 = vpop.xlane.xlu1 %1639  ;;  %2995 = vrcp.f32 %v1643_v16 }
 0x6c1   : > { %2997 = vrcp.f32 %v1640_v19 }
 0x6ca   : > { %v2996_v20 = vpop.eup %2995 }
 0x6cb   : > { %v2998_v21 = vpop.eup %2997  ;;  %v1651_v22 = vmul.f32 %v2996_v20, %v4240_v17 }
 0x6cc   : > { %v1650_v23 = vmul.f32 %v2998_v21, %v4242_v18 }
 0x6cd   : > { %v1655_v24 = vpack.c.bf16 %v1651_v22, %v1651_v22 }
 0x6ce   : > { %v1654_v25 = vpack.c.bf16 %v1650_v23, %v1650_v23 }
 0x6cf   : > { %2711 = vmatmul.mubr.msk.bf16.vlgmr.msra.gmra.mrb[24].mxu0 %vm1423_vm2, %v1655_v24 }
 0x6d0   : > { %2705 = vmatmul.mubr.msk.bf16.vlgmr.msra.gmra.mrb[12].mxu1 %vm1423_vm2, %v1654_v25  ;;  %2726 = vmatprep.mubr.msk.bf16.mxu0 %vm3559_vm1, %v3558_v15  ;;  %v2579_v25 = vld [vmem:[#allocation16] ss:$0 sm:$0xff] }
 0x6d1   : > { %2718 = vmatprep.mubr.msk.bf16.mxu1 %vm3559_vm1, %v3558_v15  ;;  %2715 = vmatpush3.bf16.msra.mxu1 %v2967_v50 }
 0x6d2   : > { %2716 = vmatprep.subr.bf16.mxu1 %v3558_v15 }
 0x6d5   : > { %2717 = vmatpush3.bf16.msra.mxu1 %v2968_v62 }
 0x6d6   : > { %2730 = vmatprep.subr.bf16.mxu1 %v3558_v15 }
 0x77b   : > { %v1697_v26 = vpop.f32.mrb[8].mxu1  ;;  %v1743_v27 = vpop.f32.mrb[20].mxu0 }
 0x77c   : > { %v2694_v28 = vpop.f32.mrb[9].mxu1  ;;  %v2700_v29 = vpop.f32.mrb[21].mxu0 }
 0x77d   : > { %v1700_v30 = vpop.f32.mrb[10].mxu1  ;;  %v1746_v17 = vpop.f32.mrb[22].mxu0 }
 0x77e   : > { %v2695_v31 = vpop.f32.mrb[11].mxu1  ;;  %v2701_v18 = vpop.f32.mrb[23].mxu0 }
 0x7a2   : > { %v1835_v32 = vpop.f32.mrb[24].mxu0 }
 0x7a3   : > { %v1789_v33 = vpop.f32.mrb[12].mxu1  ;;  %v1857_v34 = vcombine.low %v1743_v27, %v1835_v32  ;;  %v1858_v35 = vcombine.high %v1743_v27, %v1835_v32  ;;  %v2712_v36 = vpop.f32.mrb[25].mxu0 }
 0x7a4   : > { %v1841_v37 = vcombine.low %v1697_v26, %v1789_v33  ;;  %v1842_v48 = vcombine.high %v1697_v26, %v1789_v33  ;;  %v2706_v38 = vpop.f32.mrb[13].mxu1  ;;  %v1838_v39 = vpop.f32.mrb[26].mxu0  ;;  %v2969_v36 = vld [vmem:[#allocation20] sm:$0xff]  }
 0x7a5   : > { %v1865_v40 = vrot.slane %v1857_v34, %v4163_v61  ;;  %v1872_v41 = vrot.slane %v1858_v35, %v4163_v61  ;;  %v1792_v42 = vpop.f32.mrb[14].mxu1  ;;  %v2713_v43 = vpop.f32.mrb[27].mxu0  ;;  %2723 = vmatpush3.bf16.msra.mxu0 %v2969_v36  ;;  %v2973_v38 = vld [vmem:[#allocation23 + $0x10] sm:$0xff]   ;;  %v2974_v39 = vld [vmem:[#allocation23 + $0x18] sm:$0xff]  }
 0x7a6   : > { %v1849_v44 = vrot.slane %v1841_v37, %v4163_v61  ;;  %v1856_v45 = vrot.slane %v1842_v48, %v4163_v61  ;;  %v2707_v46 = vpop.f32.mrb[15].mxu1  ;;  %v2970_v37 = vld [vmem:[#allocation20 + $0x8] sm:$0xff]   ;;  %2724 = vmatprep.subr.bf16.mxu0 %v3558_v15  ;;  %v2972_v48 = vld [vmem:[#allocation23 + $0x8] sm:$0xff]  }
 0x7a7   : > { %v2583_v46 = vld [vmem:[#allocation17] ss:$0 sm:$0xff] }
 0x7a8   : > { %v1873_v47 = vcombine.low %v1849_v44, %v1865_v40  ;;  %v1874_v52 = vcombine.high %v1849_v44, %v1865_v40  ;;  %v1889_v57 = vcombine.low %v1856_v45, %v1872_v41  ;;  %v1890_v49 = vcombine.high %v1856_v45, %v1872_v41  ;;  %v2975_v40 = vld [vmem:[#allocation23 + $0x20] sm:$0xff]   ;;  %v2976_v41 = vld [vmem:[#allocation23 + $0x28] sm:$0xff]  }
 0x7a9   : > { %2725 = vmatpush3.bf16.msra.mxu0 %v2970_v37 }
 0x7aa   : > { %v1881_v51 = vrot.slane %v1873_v47, %v4166_v5  ;;  %v1888_v53 = vrot.slane %v1874_v52, %v4166_v5  ;;  %v1897_v54 = vrot.slane %v1889_v57, %v4166_v5  ;;  %v1904_v55 = vrot.slane %v1890_v49, %v4166_v5  ;;  %v2584_v52 = vld [vmem:[#allocation19] ss:$0 sm:$0xff] }
 0x7ac   : > { %v1909_v56 = vcombine.low %v1881_v51, %v1888_v53  ;;  %v2577_v58 = vcombine.high %v1881_v51, %v1888_v53  ;;  %v1925_v59 = vcombine.low %v1897_v54, %v1904_v55  ;;  %v2578_v60 = vcombine.high %v1897_v54, %v1904_v55  ;;  %v2977_v51 = vld [vmem:[#allocation23 + $0x30] sm:$0xff]   ;;  %v2978_v53 = vld [vmem:[#allocation23 + $0x38] sm:$0xff]  }
 0x7ad   : > { %v2585_v54 = vld [vmem:[#allocation22] ss:$0 sm:$0xff] }
 0x7ae   : > { %v1916_v63 = vrot.slane %v1909_v56, %v4163_v61  ;;  %v1924_v1 = vrot.slane %v2577_v58, %v4163_v61  ;;  %v1932_v2 = vrot.slane %v1925_v59, %v4163_v61  ;;  %v1940_v3 = vrot.slane %v2578_v60, %v4163_v61 }
 0x7b0   : > { %v1942_v4 = vcombine.high %v1916_v63, %v1924_v1  ;;  %v1958_v8 = vcombine.high %v1932_v2, %v1940_v3  ;;  %v1941_v9 = vcombine.low %v1916_v63, %v1924_v1  ;;  %v1957_v10 = vcombine.low %v1932_v2, %v1940_v3  ;;  %v2589_v1 = vld [vmem:[#allocation25] ss:$0 sm:$0xff] }
 0x7b2   : > { %v1956_v11 = vrot.slane %v1942_v4, %v4166_v5  ;;  %v1972_v12 = vrot.slane %v1958_v8, %v4166_v5  ;;  %v1949_v13 = vrot.slane %v1941_v9, %v4166_v5  ;;  %v1965_v14 = vrot.slane %v1957_v10, %v4166_v5 }
 0x7b4   : > { %v1975_v6 = vcombine.low %v1956_v11, %v1972_v12  ;;  %v1974_v7 = vcombine.high %v1949_v13, %v1965_v14  ;;  %v1976_v16 = vcombine.high %v1956_v11, %v1972_v12  ;;  %v1973_v19 = vcombine.low %v1949_v13, %v1965_v14 }
 0x7b6   : > { %1982 = vrot.lane.b32.xlu1 %v1975_v6, %s3566_s5  ;;  %1978 = vrot.lane.b32.xlu0 %v1974_v7, %s3567_s19  ;;  %s3431_s5 = scalar_lea.vmem %s3430_s8, 256 }
 0x7b7   : > { %p3433_p1 = scmp.lt.s32.totalorder %s3431_s5, %s3425_s18 }
 0x7b9   : > { %p3434_p3 = por %p3433_p1, %p3432_p9 }
 0x7ba   : > { %1986 = vrot.lane.b32.xlu1 %v1976_v16, %s3568_s28 }
 0x7bb   : > { %p3435_p10 = pnand %p3434_p3, %p3428_p8 }
 0x828   : > { %v1983_v61 = vpop.permute.xlu1 %1982  ;;  %v1979_v20 = vpop.permute.xlu0 %1978 }
 0x829   : > { %v1989_v21 = vsel %vm1423_vm2, %v1973_v19, %v1979_v20 }
 0x82a   : > { %v1991_v23 = vsel %vm1990_vm5, %v1989_v21, %v1983_v61 }
 0x82c   : > { %v1987_v22 = vpop.permute.xlu1 %1986 }
 0x82d   : > { %v1993_v24 = vsel %vm1992_vm6, %v1991_v23, %v1987_v22 }
 0x82e   : > { %v1994_v5 = vpack.c.bf16 %v1993_v24, %v1993_v24 }
 0x830   : > { %2719 = vmatmul.mubr.msk.bf16.vlgmr.msra.gmra.mrb[16].mxu1 %vm744_vm0, %v1994_v5 }
 0x831   : > { %2746 = vmatprep.mubr.msk.bf16.mxu1 %vm3559_vm1, %v3558_v15 }
 0x903   : > { %v2055_v26 = vpop.f32.mrb[16].mxu1 }
 0x904   : > { %v2056_v27 = vadd.f32 %v2579_v25, %v2055_v26  ;;  %v2720_v28 = vpop.f32.mrb[17].mxu1 }
 0x905   : > { %v2058_v29 = vpop.f32.mrb[18].mxu1 }
 0x906   : > { %v4313_v30 = vadd.f32 %v2056_v27, %v4122_v0  ;;  %v2721_v17 = vpop.f32.mrb[19].mxu1  ;;  %v2971_v0 = vld [vmem:[#allocation23] sm:$0xff]  }
 0x907   : > { %2731 = vmatpush3.bf16.msra.mxu1 %v2971_v0 }
 0x908   : > { %v2064_v31 = vsel %vm744_vm0, %v4313_v30, 0.0  ;;  %2732 = vmatprep.subr.bf16.mxu1 %v3558_v15 }
 0x909   : > { %2065 = vadd.xlane.f32.xlu0 %v2064_v31 }
 0x90b   : > { %2733 = vmatpush3.bf16.msra.mxu1 %v2972_v48 }
 0x90c   : > { %2734 = vmatprep.subr.bf16.mxu1 %v3558_v15 }
 0x90f   : > { %2735 = vmatpush3.bf16.msra.mxu1 %v2973_v38 }
 0x910   : > { %2736 = vmatprep.subr.bf16.mxu1 %v3558_v15 }
 0x913   : > { %2737 = vmatpush3.bf16.msra.mxu1 %v2974_v39 }
 0x914   : > { %2738 = vmatprep.subr.bf16.mxu1 %v3558_v15 }
 0x917   : > { %2739 = vmatpush3.bf16.msra.mxu1 %v2975_v40 }
 0x918   : > { %2740 = vmatprep.subr.bf16.mxu1 %v3558_v15 }
 0x91b   : > { %2741 = vmatpush3.bf16.msra.mxu1 %v2976_v41 }
 0x91c   : > { %2742 = vmatprep.subr.bf16.mxu1 %v3558_v15 }
 0x91f   : > { %2743 = vmatpush3.bf16.msra.mxu1 %v2977_v51 }
 0x920   : > { %2744 = vmatprep.subr.bf16.mxu1 %v3558_v15 }
 0x923   : > { %2745 = vmatpush3.bf16.msra.mxu1 %v2978_v53 }
 0x996   : > { %v2066_v18 = vpop.xlane.xlu0 %2065 }
 0x997   : > { %v2067_v32 = vmul.f32 0.03125, %v2066_v18 }
 0x999   : > { %v2068_v33 = vsub.f32 %v4313_v30, %v2067_v32 }
 0x99b   : > { %v2069_v34 = vmul.f32 %v2068_v33, %v2068_v33 }
 0x99d   : > { %v2070_v35 = vsel %vm744_vm0, %v2069_v34, 0.0 }
 0x99e   : > { %2071 = vadd.xlane.f32.xlu1 %v2070_v35 }
 0xa2b   : > { %v2072_v42 = vpop.xlane.xlu1 %2071 }
 0xa2c   : > { %v2073_v43 = vmul.f32 0.03125, %v2072_v42 }
 0xa2e   : > { %v2074_v44 = vadd.f32 1e-05, %v2073_v43 }
 0xa30   : > { %2999 = vrsqrt.f32 %v2074_v44 }
 0xa3a   : > { %v3000_v45 = vpop.eup %2999 }
 0xa3b   : > { %v2076_v47 = vmul.f32 %v3000_v45, %v2068_v33 }
 0xa3d   : > { %v2083_v57 = vmul.f32 %v2583_v46, %v2076_v47 }
 0xa3f   : > { %v2090_v49 = vadd.f32 %v2584_v52, %v2083_v57 }
 0xa41   : > { %v2091_v50 = vpack.c.bf16 %v2090_v49, %v2090_v49 }
 0xa43   : > { %2727 = vmatmul.mubr.msk.bf16.vlgmr.msra.gmra.mrb[28].mxu0 %vm744_vm0, %v2091_v50 }
 0xb16   : > { %v2152_v55 = vpop.f32.mrb[28].mxu0 }
 0xb17   : > { %v2153_v56 = vadd.f32 %v2585_v54, %v2152_v55  ;;  %v2728_v58 = vpop.f32.mrb[29].mxu0 }
 0xb18   : > { %v2155_v59 = vpop.f32.mrb[30].mxu0 }
 0xb19   : > { %v2158_v60 = vmax.f32 %v2153_v56, 0.0  ;;  %v2729_v62 = vpop.f32.mrb[31].mxu0 }
 0xb1b   : > { %v2159_v63 = vpack.c.bf16 %v2158_v60, %v2158_v60 }
 0xb1d   : > { %2747 = vmatmul.mubr.bf16.vlgmr.msra.gmra.mrb[20].mxu1 %v2159_v63 }
 0xbf0   : > { %v2265_v2 = vpop.f32.mrb[20].mxu1 }
 0xbf1   : > { %v2266_v3 = vadd.f32 %v2589_v1, %v2265_v2  ;;  %v2748_v15 = vpop.f32.mrb[21].mxu1 }
 0xbf2   : > { %v2268_v4 = vpop.f32.mrb[22].mxu1 }
 0xbf3   : > { %v2271_v8 = vadd.f32 %v2266_v3, %v4313_v30  ;;  %v2749_v9 = vpop.f32.mrb[23].mxu1 }
 0xbf5   : > { %2272 = vst.msk [vmem:[%s737_s6] sm:$0xff] %vm744_vm0, %v2271_v8 }
 0xbf6   : > { %3438 = shalt.err (!%p3435_p10)
}
 0xbf7   : > { %s3439_s3 = scalar_lea.hbm %s4334_s29, 128  ;;  %s3443_s16 = scalar_lea.hbm %s4472_s7, 256 }
 0xbf8   : > { %p3440_p13 = scmp.ne.s32.totalorder %s4334_s29, %s3439_s3  ;;  %p3444_p12 = scmp.lt.u32.totalorder %s4334_s29, %s4472_s7 }
 0xbf9   : > { %p3445_p4 = scmp.lt.u32.totalorder %s3443_s16, %s3439_s3  ;;  %p3447_p5 = scmp.lt.u32.totalorder %s3439_s3, %s4334_s29 }
 0xbfa   : > { %p3441_p2 = pnand %p3440_p13, %p4473_p7 }
 0xbfb   : > { %p3446_p6 = por %p3445_p4, %p3444_p12 }
 0xbfc   : > { %p3442_p11 = pneg %p3441_p2 }
 0xbfd   : > { %p3448_p0 = por %p3447_p5, %p3446_p6 }
 0xbff   : > { %p3449_p8 = pnand %p3448_p0, %p3442_p11 }
 0xc01   : > { %3452 = shalt.err (!%p3449_p8)
}
 0xc02   : > { %2806 = dma.vmem_to_hbm [thread:$0]  (%p4473_p7), %s4336_s17, 128, %s4334_s29, %s2274_s30  }
 0xc03 PF: > { %s4474_s24 = sld [smem:[#allocation37_spill]]  ;;  %p4475_p9 = scmp.ne.s32.totalorder %s4447_s26, 0 }
 0xc04   : > { %p4476_p1 = scmp.ge.s32.totalorder %s3539_s23, 2 }
 0xc06   : > { %p2856_p3 = pnand %p4476_p1, %p4475_p9 }
 0xc09   : > { %s2300_s15 = sand.u32 1, %s4474_s24  }
 0xc0a   : > { %s2301_s21 = scalar_lea.sflag [#allocation4], %s2300_s15 }
 0xc0b   : > { %3514 = dma.done.wait (!%p2856_p3), %s2301_s21, 128  }
 0xc0c   : > { %3516 = vsyncadd (!%p2856_p3), %s2301_s21, 4294967168  ;;  %s40_s23 = sadd.s32 1, %s3539_s23   ;;  %s4477_s18 = sld [smem:[#allocation38_spill]] }
 0xc0d   : > { %p37_p10 = scmp.ge.s32.totalorder %s40_s23, 4   ;;  %s4478_s19 = sld [smem:[#allocation39_spill]] }
 0xc0e   : > { %s4479_s21 = smov %s3535_s22  ;;  %s4480_s22 = smov %s4482_s1 }
 0xc0f   :  { %39 = sbr.rel (!%p37_p10) target bundleno = 25 (0x19), region = 190 }
 0xc16   :  { %2306 = vsyncpa [#allocation3], 1 }
 0xc17   :  { %2308 = vsyncpa [#allocation3 + $0x1], 1 }
 0xc18   :  { %2309 = vsyncpa [#allocation6], 1 }
 0xc19   :  { %2311 = vsyncpa [#allocation6 + $0x1], 1 }
 0xc1a   :  { %2312 = vsyncpa [#allocation9], 1 }
 0xc1b   :  { %2313 = vsyncpa [#allocation12], 1 }
 0xc1c   :  { %2314 = vsyncpa [#allocation15], 1 }
 0xc1d   :  { %2315 = vsyncpa [#allocation18], 1 }
 0xc1e   :  { %2316 = vsyncpa [#allocation21], 1 }
 0xc1f   :  { %2317 = vsyncpa [#allocation24], 1 }
 0xc20   :  { %2318 = vsyncpa [#allocation4], 1 }
 0xc21   :  { %2320 = vsyncpa [#allocation4 + $0x1], 1 }

// kernel: tpu_custom_call.1
= control target key start
LH: loop header
LB: loop body
LE: loop exit
PB: predicated region body
PF: predicated region fallthrough
CT: control target
= control target key end

     0   :  { %s3718_s0 = inlined_call_operand.hbm [shape: f32[2,8,32], index: 0, kind: input, shape index: {}]   ;;  %s3719_s1 = inlined_call_operand.hbm [shape: f32[2,8,32], index: 1, kind: input, shape index: {}]   ;;  %s3720_s2 = inlined_call_operand.hbm [shape: f32[1,32], index: 2, kind: input, shape index: {}]   ;;  %s3721_s3 = inlined_call_operand.hbm [shape: f32[1,32], index: 3, kind: input, shape index: {}]   ;;  %s3722_s4 = inlined_call_operand.hbm [shape: bf16[32,32], index: 4, kind: input, shape index: {}]   ;;  %s3723_s5 = inlined_call_operand.hbm [shape: bf16[32,32], index: 5, kind: input, shape index: {}]   ;;  %s3724_s6 = inlined_call_operand.hbm [shape: bf16[32,32], index: 6, kind: input, shape index: {}]   ;;  %s3725_s7 = inlined_call_operand.hbm [shape: bf16[32,32], index: 7, kind: input, shape index: {}]   ;;  %s3726_s8 = inlined_call_operand.hbm [shape: f32[1,32], index: 8, kind: input, shape index: {}]   ;;  %s3727_s9 = inlined_call_operand.hbm [shape: f32[1,32], index: 9, kind: input, shape index: {}]   ;;  %s3728_s10 = inlined_call_operand.hbm [shape: f32[1,32], index: 10, kind: input, shape index: {}]   ;;  %s3729_s11 = inlined_call_operand.hbm [shape: bf16[32,128], index: 11, kind: input, shape index: {}]   ;;  %s3730_s12 = inlined_call_operand.hbm [shape: f32[1,128], index: 12, kind: input, shape index: {}]   ;;  %s3731_s13 = inlined_call_operand.hbm [shape: bf16[128,32], index: 13, kind: input, shape index: {}]   ;;  %s3732_s14 = inlined_call_operand.hbm [shape: f32[1,32], index: 14, kind: input, shape index: {}]   ;;  %s3733_s15 = inlined_call_operand.hbm [shape: f32[2,8,32], index: 15, kind: output, shape index: {}]  }
   0x1   :  { %3747 = sst [smem:[#allocation43_spill]] %s3718_s0 }
   0x2   :  { %3748 = sst [smem:[#allocation44_spill]] %s3719_s1 }
   0x3   :  { %3749 = sst [smem:[#allocation45_spill]] %s3720_s2 }
   0x4   :  { %3750 = sst [smem:[#allocation46_spill]] %s3721_s3 }
   0x5   :  { %3751 = sst [smem:[#allocation47_spill]] %s3722_s4 }
   0x6   :  { %3752 = sst [smem:[#allocation48_spill]] %s3723_s5 }
   0x7   :  { %3753 = sst [smem:[#allocation49_spill]] %s3724_s6 }
   0x8   :  { %3754 = sst [smem:[#allocation50_spill]] %s3725_s7 }
   0x9   :  { %3755 = sst [smem:[#allocation51_spill]] %s3726_s8 }
   0xa   :  { %3756 = sst [smem:[#allocation52_spill]] %s3733_s15 }
   0xb   :  { %20 = vsyncpa [#allocation3], 0 }
   0xc   :  { %22 = vsyncpa [#allocation3 + $0x1], 0 }
   0xd   :  { %23 = vsyncpa [#allocation6], 0 }
   0xe   :  { %25 = vsyncpa [#allocation6 + $0x1], 0 }
   0xf   :  { %26 = vsyncpa [#allocation9], 0 }
  0x10   :  { %27 = vsyncpa [#allocation12], 0 }
  0x11   :  { %28 = vsyncpa [#allocation15], 0 }
  0x12   :  { %29 = vsyncpa [#allocation18], 0 }
  0x13   :  { %30 = vsyncpa [#allocation21], 0 }
  0x14   :  { %31 = vsyncpa [#allocation24], 0 }
  0x15   :  { %32 = vsyncpa [#allocation4], 0 }
  0x16   :  { %34 = vsyncpa [#allocation4 + $0x1], 0  ;;  %s3076_s18 = smov 0   ;;  %s3078_s19 = smov 0  }
  0x17   :  { %s3080_s20 = smov 0   ;;  %s3082_s21 = smov 0  }
  0x18   :  { %s3084_s22 = smov 0   ;;  %s3086_s23 = smov 0  }
  0x19 LB: > { %3757 = sst [smem:[#allocation37_spill]] %s2947_s18  ;;  %s3107_s24 = sadd.s32 4294967295, %s2967_s23   ;;  %s2967_s23 = sphi %s3086_s23, %s40_s23   ;;  %s2963_s22 = sphi %s3084_s22, %s3814_s22   ;;  %s2959_s21 = sphi %s3082_s21, %s3813_s21   ;;  %s2955_s20 = sphi %s3080_s20, %s3423_s20   ;;  %s2951_s19 = sphi %s3078_s19, %s3812_s19   ;;  %s2947_s18 = sphi %s3076_s18, %s3811_s18  }
  0x1a   : > { %3758 = sst [smem:[#allocation38_spill]] %s2951_s19  ;;  %p1954_p0 = scmp.ge.s32.totalorder %s2967_s23, 1 }
  0x1b   : > { %3759 = sst [smem:[#allocation39_spill]] %s2955_s20  ;;  %p3738_p1 = scmp.eq.s32.totalorder %s3107_s24, 0 }
  0x1c   : > { %3760 = sst [smem:[#allocation40_spill]] %s2959_s21  ;;  %p412_p2 = scmp.lt.s32.totalorder %s2967_s23, 3 }
  0x1d   : > { %3761 = sst [smem:[#allocation41_spill]] %s3107_s24  ;;  %s2969_s26 = smov [#allocation7]  }
  0x1e   : > { %p3112_p3 = pnand %p1954_p0, %p412_p2  ;;  %s425_s27 = sshll.u32 %s2969_s26, 4  ;;  %s426_s27 = int_to_ptr.vmem [resolvable:$true] %s425_s27 }
  0x1f   : > { %s2970_s28 = smov [#allocation8]   ;;  %s2971_s16 = smov [#allocation11]  }
  0x20   : > { %s3762_s25 = scalar_select %p3112_p3, 1, 0 }
  0x21   : > { %p2238_p5 = pneg %p3112_p3  ;;  %s436_s29 = sshll.u32 %s2970_s28, 4  ;;  %s3125_s29 = int_to_ptr.vmem [resolvable:$true] %s436_s29 }
  0x22   : > { %3763 = sst [smem:[#allocation42_spill]] %s3762_s25  ;;  %s3127_s17 = sshll.u32 %s2971_s16, 4  ;;  %s460_s17 = int_to_ptr.vmem [resolvable:$true] %s3127_s17 }
  0x23   : > { %p3121_p6 = pnand %p2238_p5, %p3738_p1  ;;  %s3765_s2 = sld [smem:[#allocation45_spill]] }
  0x25   : > { %p3137_p8 = pneg %p3121_p6 }
  0x29   : > { %s2429_s26 = scalar_lea.hbm %s3765_s2, 16 }
  0x2a   : > { %p2430_p7 = scmp.ne.s32.totalorder %s3765_s2, %s2429_s26  ;;  %p2436_p11 = scmp.lt.u32.totalorder %s2429_s26, %s3765_s2 }
  0x2c   : > { %p2432_p9 = pnand %p3137_p8, %p2430_p7 }
  0x2e   : > { %p2433_p10 = pneg %p2432_p9 }
  0x30   : > { %p2438_p12 = pnand %p2436_p11, %p2433_p10 }
  0x32   : > { %2441 = shalt.err (!%p2438_p12)
}
  0x33   : > { %s2442_s15 = scalar_lea.vmem %s426_s27, 16  ;;  %s2449_s1 = scalar_lea.vmem %s426_s27, 32 }
  0x34   : > { %p2443_p13 = scmp.ne.s32.totalorder %s426_s27, %s2442_s15  ;;  %p2450_p5 = scmp.lt.s32.totalorder %s426_s27, %s426_s27 }
  0x35   : > { %p2451_p4 = scmp.lt.s32.totalorder %s2449_s1, %s2442_s15 }
  0x36   : > { %p2445_p0 = pnand %p2443_p13, %p3137_p8 }
  0x37   : > { %p2452_p1 = por %p2451_p4, %p2450_p5 }
  0x38   : > { %p2446_p2 = pneg %p2445_p0 }
  0x3a   : > { %p2453_p3 = pnand %p2452_p1, %p2446_p2 }
  0x3c   : > { %2456 = shalt.err (!%p2453_p3)
}
  0x3d   : > { %2241 = dma.hbm_to_vmem [thread:$0]  (!%p3121_p6), %s3765_s2, 16, %s426_s27, [#allocation6]  }
  0x3e   : > { %s3767_s3 = sld [smem:[#allocation46_spill]] }
  0x44   : > { %s2457_s16 = scalar_lea.hbm %s3767_s3, 16 }
  0x45   : > { %p2458_p7 = scmp.ne.s32.totalorder %s3767_s3, %s2457_s16  ;;  %p2464_p1 = scmp.lt.u32.totalorder %s2457_s16, %s3767_s3 }
  0x47   : > { %p2460_p9 = pnand %p2458_p7, %p3137_p8 }
  0x49   : > { %p2461_p4 = pneg %p2460_p9 }
  0x4b   : > { %p2466_p3 = pnand %p2464_p1, %p2461_p4 }
  0x4d   : > { %2469 = shalt.err (!%p2466_p3)
}
  0x4e   : > { %s2470_s27 = scalar_lea.vmem %s3125_s29, 16  ;;  %s2477_s18 = scalar_lea.vmem %s3125_s29, 32 }
  0x4f   : > { %p2471_p10 = scmp.ne.s32.totalorder %s3125_s29, %s2470_s27  ;;  %p2478_p13 = scmp.lt.s32.totalorder %s3125_s29, %s3125_s29 }
  0x50   : > { %p2479_p0 = scmp.lt.s32.totalorder %s2477_s18, %s2470_s27 }
  0x51   : > { %p2473_p11 = pnand %p2471_p10, %p3137_p8 }
  0x52   : > { %p2480_p2 = por %p2479_p0, %p2478_p13 }
  0x53   : > { %p2474_p12 = pneg %p2473_p11 }
  0x55   : > { %p2481_p5 = pnand %p2480_p2, %p2474_p12 }
  0x57   : > { %2484 = shalt.err (!%p2481_p5)
}
  0x58   : > { %2244 = dma.hbm_to_vmem [thread:$0]  (!%p3121_p6), %s3767_s3, 16, %s3125_s29, [#allocation9]  }
  0x59   : > { %s3768_s5 = sld [smem:[#allocation48_spill]] }
  0x5f   : > { %s2485_s26 = scalar_lea.hbm %s3768_s5, 256 }
  0x60   : > { %p2486_p7 = scmp.ne.s32.totalorder %s3768_s5, %s2485_s26  ;;  %p2492_p1 = scmp.lt.u32.totalorder %s2485_s26, %s3768_s5 }
  0x62   : > { %p2488_p9 = pnand %p2486_p7, %p3137_p8 }
  0x64   : > { %p2489_p4 = pneg %p2488_p9 }
  0x66   : > { %p2494_p3 = pnand %p2492_p1, %p2489_p4 }
  0x68   : > { %2497 = shalt.err (!%p2494_p3)
}
  0x69   : > { %s2498_s18 = scalar_lea.vmem %s460_s17, 256  ;;  %p2506_p13 = scmp.lt.s32.totalorder %s460_s17, %s460_s17 }
  0x6a   : > { %p2499_p10 = scmp.ne.s32.totalorder %s460_s17, %s2498_s18  ;;  %p2507_p0 = scmp.lt.s32.totalorder %s2498_s18, %s2498_s18 }
  0x6c   : > { %p2501_p11 = pnand %p2499_p10, %p3137_p8  ;;  %p2508_p2 = por %p2507_p0, %p2506_p13 }
  0x6e   : > { %p2502_p12 = pneg %p2501_p11 }
  0x70   : > { %p2509_p5 = pnand %p2508_p2, %p2502_p12 }
  0x72   : > { %2512 = shalt.err (!%p2509_p5)
}
  0x73   : > { %s2972_s29 = smov 64   ;;  %s2973_s24 = smov 4  }
  0x74   : > { %2250 = dma.hbm_to_vmem [thread:$0]  (!%p3121_p6), %s3768_s5, 256, %s460_s17, [#allocation12], %s2972_s29, %s2972_s29, %s2973_s24  }
  0x75   : > { %s2974_s0 = smov [#allocation14]   ;;  %s2975_s16 = smov [#allocation17]  }
  0x76   : > { %s485_s26 = sshll.u32 %s2974_s0, 4  ;;  %s510_s15 = sshll.u32 %s2975_s16, 4  ;;  %s486_s26 = int_to_ptr.vmem [resolvable:$true] %s485_s26  ;;  %s511_s15 = int_to_ptr.vmem [resolvable:$true] %s510_s15 }
  0x77   : > { %s3769_s7 = sld [smem:[#allocation50_spill]] }
  0x7d   : > { %s2513_s18 = scalar_lea.hbm %s3769_s7, 256 }
  0x7e   : > { %p2514_p7 = scmp.ne.s32.totalorder %s3769_s7, %s2513_s18  ;;  %p2520_p1 = scmp.lt.u32.totalorder %s2513_s18, %s3769_s7 }
  0x80   : > { %p2516_p9 = pnand %p2514_p7, %p3137_p8 }
  0x82   : > { %p2517_p4 = pneg %p2516_p9 }
  0x84   : > { %p2522_p3 = pnand %p2520_p1, %p2517_p4 }
  0x86   : > { %2525 = shalt.err (!%p2522_p3)
}
  0x87   : > { %s2526_s17 = scalar_lea.vmem %s486_s26, 256  ;;  %p2534_p13 = scmp.lt.s32.totalorder %s486_s26, %s486_s26 }
  0x88   : > { %p2527_p10 = scmp.ne.s32.totalorder %s486_s26, %s2526_s17  ;;  %p2535_p0 = scmp.lt.s32.totalorder %s2526_s17, %s2526_s17 }
  0x8a   : > { %p2529_p11 = pnand %p2527_p10, %p3137_p8  ;;  %p2536_p2 = por %p2535_p0, %p2534_p13 }
  0x8c   : > { %p2530_p12 = pneg %p2529_p11 }
  0x8e   : > { %p2537_p5 = pnand %p2536_p2, %p2530_p12 }
  0x90   : > { %2540 = shalt.err (!%p2537_p5)
}
  0x91   : > { %2256 = dma.hbm_to_vmem [thread:$0]  (!%p3121_p6), %s3769_s7, 256, %s486_s26, [#allocation15], %s2972_s29, %s2972_s29, %s2973_s24  }
  0x92   : > { %s2541_s21 = scalar_lea.hbm %s3727_s9, 16 }
  0x93   : > { %p2542_p7 = scmp.ne.s32.totalorder %s3727_s9, %s2541_s21  ;;  %p2548_p1 = scmp.lt.u32.totalorder %s2541_s21, %s3727_s9 }
  0x95   : > { %p2544_p9 = pnand %p2542_p7, %p3137_p8 }
  0x97   : > { %p2545_p4 = pneg %p2544_p9 }
  0x99   : > { %p2550_p3 = pnand %p2548_p1, %p2545_p4 }
  0x9b   : > { %2553 = shalt.err (!%p2550_p3)
}
  0x9c   : > { %s2554_s27 = scalar_lea.vmem %s511_s15, 16  ;;  %s2561_s26 = scalar_lea.vmem %s511_s15, 32 }
  0x9d   : > { %p2555_p10 = scmp.ne.s32.totalorder %s511_s15, %s2554_s27  ;;  %p2562_p13 = scmp.lt.s32.totalorder %s511_s15, %s511_s15 }
  0x9e   : > { %p2563_p0 = scmp.lt.s32.totalorder %s2561_s26, %s2554_s27 }
  0x9f   : > { %p2557_p11 = pnand %p2555_p10, %p3137_p8 }
  0xa0   : > { %p2564_p2 = por %p2563_p0, %p2562_p13 }
  0xa1   : > { %p2558_p12 = pneg %p2557_p11 }
  0xa3   : > { %p2565_p5 = pnand %p2564_p2, %p2558_p12 }
  0xa5   : > { %2568 = shalt.err (!%p2565_p5)
}
  0xa6   : > { %2262 = dma.hbm_to_vmem [thread:$0]  (!%p3121_p6), %s3727_s9, 16, %s511_s15, [#allocation18]  }
  0xa7   : > { %s2976_s2 = smov [#allocation20]   ;;  %s2977_s19 = smov [#allocation23]  }
  0xa8   : > { %s531_s3 = sshll.u32 %s2976_s2, 4  ;;  %s555_s20 = sshll.u32 %s2977_s19, 4  ;;  %s532_s3 = int_to_ptr.vmem [resolvable:$true] %s531_s3  ;;  %s556_s20 = int_to_ptr.vmem [resolvable:$true] %s555_s20 }
  0xa9   : > { %s2569_s0 = scalar_lea.hbm %s3729_s11, 256 }
  0xaa   : > { %p2570_p7 = scmp.ne.s32.totalorder %s3729_s11, %s2569_s0  ;;  %p2576_p1 = scmp.lt.u32.totalorder %s2569_s0, %s3729_s11 }
  0xac   : > { %p2572_p9 = pnand %p2570_p7, %p3137_p8 }
  0xae   : > { %p2573_p4 = pneg %p2572_p9 }
  0xb0   : > { %p2578_p3 = pnand %p2576_p1, %p2573_p4 }
  0xb2   : > { %2581 = shalt.err (!%p2578_p3)
}
  0xb3   : > { %s2582_s15 = scalar_lea.vmem %s532_s3, 256  ;;  %p2590_p13 = scmp.lt.s32.totalorder %s532_s3, %s532_s3 }
  0xb4   : > { %p2583_p10 = scmp.ne.s32.totalorder %s532_s3, %s2582_s15  ;;  %p2591_p0 = scmp.lt.s32.totalorder %s2582_s15, %s2582_s15 }
  0xb6   : > { %p2585_p11 = pnand %p2583_p10, %p3137_p8  ;;  %p2592_p2 = por %p2591_p0, %p2590_p13 }
  0xb8   : > { %p2586_p12 = pneg %p2585_p11 }
  0xba   : > { %p2593_p5 = pnand %p2592_p2, %p2586_p12 }
  0xbc   : > { %2596 = shalt.err (!%p2593_p5)
}
  0xbd   : > { %2268 = dma.hbm_to_vmem [thread:$0]  (!%p3121_p6), %s3729_s11, 256, %s532_s3, [#allocation21], %s2972_s29, %s2972_s29, %s2973_s24  }
  0xbe   : > { %s2597_s21 = scalar_lea.hbm %s3731_s13, 1024 }
  0xbf   : > { %p2598_p7 = scmp.ne.s32.totalorder %s3731_s13, %s2597_s21  ;;  %p2604_p1 = scmp.lt.u32.totalorder %s2597_s21, %s3731_s13 }
  0xc1   : > { %p2600_p9 = pnand %p2598_p7, %p3137_p8 }
  0xc3   : > { %p2601_p4 = pneg %p2600_p9 }
  0xc5   : > { %p2606_p3 = pnand %p2604_p1, %p2601_p4 }
  0xc7   : > { %2609 = shalt.err (!%p2606_p3)
}
  0xc8   : > { %s2610_s27 = scalar_lea.vmem %s556_s20, 1024  ;;  %p2618_p13 = scmp.lt.s32.totalorder %s556_s20, %s556_s20 }
  0xc9   : > { %p2611_p10 = scmp.ne.s32.totalorder %s556_s20, %s2610_s27  ;;  %p2619_p0 = scmp.lt.s32.totalorder %s2610_s27, %s2610_s27 }
  0xcb   : > { %p2613_p11 = pnand %p2611_p10, %p3137_p8  ;;  %p2620_p2 = por %p2619_p0, %p2618_p13 }
  0xcd   : > { %p2614_p12 = pneg %p2613_p11 }
  0xcf   : > { %p2621_p5 = pnand %p2620_p2, %p2614_p12 }
  0xd1   : > { %2624 = shalt.err (!%p2621_p5)
}
  0xd2   : > { %2274 = dma.hbm_to_vmem [thread:$0]  (!%p3121_p6), %s3731_s13, 1024, %s556_s20, [#allocation24], %s2972_s29, %s2972_s29, %s2973_s24  }
  0xd3   : > { %s2978_s15 = smov [#allocation10]   ;;  %s2979_s17 = smov [#allocation13]  }
  0xd4   : > { %s446_s18 = sshll.u32 %s2978_s15, 4  ;;  %s472_s2 = sshll.u32 %s2979_s17, 4  ;;  %s447_s18 = int_to_ptr.vmem [resolvable:$true] %s446_s18  ;;  %s473_s2 = int_to_ptr.vmem [resolvable:$true] %s472_s2 }
  0xd5   : > { %s3770_s4 = sld [smem:[#allocation47_spill]] }
  0xdb   : > { %s2625_s25 = scalar_lea.hbm %s3770_s4, 256 }
  0xdc   : > { %p2626_p7 = scmp.ne.s32.totalorder %s3770_s4, %s2625_s25  ;;  %p2632_p1 = scmp.lt.u32.totalorder %s2625_s25, %s3770_s4 }
  0xde   : > { %p2628_p9 = pnand %p2626_p7, %p3137_p8 }
  0xe0   : > { %p2629_p4 = pneg %p2628_p9 }
  0xe2   : > { %p2634_p3 = pnand %p2632_p1, %p2629_p4 }
  0xe4   : > { %2637 = shalt.err (!%p2634_p3)
}
  0xe5   : > { %s2638_s20 = scalar_lea.vmem %s447_s18, 256  ;;  %p2646_p13 = scmp.lt.s32.totalorder %s447_s18, %s447_s18 }
  0xe6   : > { %p2639_p10 = scmp.ne.s32.totalorder %s447_s18, %s2638_s20  ;;  %p2647_p0 = scmp.lt.s32.totalorder %s2638_s20, %s2638_s20 }
  0xe8   : > { %p2641_p11 = pnand %p2639_p10, %p3137_p8  ;;  %p2648_p2 = por %p2647_p0, %p2646_p13 }
  0xea   : > { %p2642_p12 = pneg %p2641_p11 }
  0xec   : > { %p2649_p5 = pnand %p2648_p2, %p2642_p12 }
  0xee   : > { %2652 = shalt.err (!%p2649_p5)
}
  0xef   : > { %2247 = dma.hbm_to_vmem [thread:$0]  (!%p3121_p6), %s3770_s4, 256, %s447_s18, [#allocation9], %s2972_s29, %s2972_s29, %s2973_s24  }
  0xf0   : > { %s3771_s6 = sld [smem:[#allocation49_spill]] }
  0xf6   : > { %s2653_s19 = scalar_lea.hbm %s3771_s6, 256 }
  0xf7   : > { %p2654_p7 = scmp.ne.s32.totalorder %s3771_s6, %s2653_s19  ;;  %p2660_p1 = scmp.lt.u32.totalorder %s2653_s19, %s3771_s6 }
  0xf9   : > { %p2656_p9 = pnand %p2654_p7, %p3137_p8 }
  0xfb   : > { %p2657_p4 = pneg %p2656_p9 }
  0xfd   : > { %p2662_p3 = pnand %p2660_p1, %p2657_p4 }
  0xff   : > { %2665 = shalt.err (!%p2662_p3)
}
 0x100   : > { %s2666_s1 = scalar_lea.vmem %s473_s2, 256  ;;  %p2674_p13 = scmp.lt.s32.totalorder %s473_s2, %s473_s2 }
 0x101   : > { %p2667_p10 = scmp.ne.s32.totalorder %s473_s2, %s2666_s1  ;;  %p2675_p0 = scmp.lt.s32.totalorder %s2666_s1, %s2666_s1 }
 0x103   : > { %p2669_p11 = pnand %p2667_p10, %p3137_p8  ;;  %p2676_p2 = por %p2675_p0, %p2674_p13 }
 0x105   : > { %p2670_p12 = pneg %p2669_p11 }
 0x107   : > { %p2677_p5 = pnand %p2676_p2, %p2670_p12 }
 0x109   : > { %2680 = shalt.err (!%p2677_p5)
}
 0x10a   : > { %2253 = dma.hbm_to_vmem [thread:$0]  (!%p3121_p6), %s3771_s6, 256, %s473_s2, [#allocation12], %s2972_s29, %s2972_s29, %s2973_s24  }
 0x10b   : > { %s2980_s20 = smov [#allocation16]   ;;  %s2981_s26 = smov [#allocation19]  }
 0x10c   : > { %s499_s3 = sshll.u32 %s2980_s20, 4  ;;  %s521_s15 = sshll.u32 %s2981_s26, 4  ;;  %s500_s3 = int_to_ptr.vmem [resolvable:$true] %s499_s3  ;;  %s522_s15 = int_to_ptr.vmem [resolvable:$true] %s521_s15 }
 0x10d   : > { %s3772_s8 = sld [smem:[#allocation51_spill]] }
 0x113   : > { %s2681_s21 = scalar_lea.hbm %s3772_s8, 16 }
 0x114   : > { %p2682_p7 = scmp.ne.s32.totalorder %s3772_s8, %s2681_s21  ;;  %p2688_p1 = scmp.lt.u32.totalorder %s2681_s21, %s3772_s8 }
 0x116   : > { %p2684_p9 = pnand %p2682_p7, %p3137_p8 }
 0x118   : > { %p2685_p4 = pneg %p2684_p9 }
 0x11a   : > { %p2690_p3 = pnand %p2688_p1, %p2685_p4 }
 0x11c   : > { %2693 = shalt.err (!%p2690_p3)
}
 0x11d   : > { %s2694_s29 = scalar_lea.vmem %s500_s3, 16  ;;  %s2701_s24 = scalar_lea.vmem %s500_s3, 32 }
 0x11e   : > { %p2695_p10 = scmp.ne.s32.totalorder %s500_s3, %s2694_s29  ;;  %p2702_p13 = scmp.lt.s32.totalorder %s500_s3, %s500_s3 }
 0x11f   : > { %p2703_p0 = scmp.lt.s32.totalorder %s2701_s24, %s2694_s29 }
 0x120   : > { %p2697_p11 = pnand %p2695_p10, %p3137_p8 }
 0x121   : > { %p2704_p2 = por %p2703_p0, %p2702_p13 }
 0x122   : > { %p2698_p12 = pneg %p2697_p11 }
 0x124   : > { %p2705_p5 = pnand %p2704_p2, %p2698_p12 }
 0x126   : > { %2708 = shalt.err (!%p2705_p5)
}
 0x127   : > { %2259 = dma.hbm_to_vmem [thread:$0]  (!%p3121_p6), %s3772_s8, 16, %s500_s3, [#allocation15]  }
 0x128   : > { %s2709_s26 = scalar_lea.hbm %s3728_s10, 16 }
 0x129   : > { %p2710_p7 = scmp.ne.s32.totalorder %s3728_s10, %s2709_s26  ;;  %p2716_p1 = scmp.lt.u32.totalorder %s2709_s26, %s3728_s10 }
 0x12b   : > { %p2712_p9 = pnand %p2710_p7, %p3137_p8 }
 0x12d   : > { %p2713_p4 = pneg %p2712_p9 }
 0x12f   : > { %p2718_p3 = pnand %p2716_p1, %p2713_p4 }
 0x131   : > { %2721 = shalt.err (!%p2718_p3)
}
 0x132   : > { %s2722_s0 = scalar_lea.vmem %s522_s15, 16  ;;  %s2729_s3 = scalar_lea.vmem %s522_s15, 32 }
 0x133   : > { %p2723_p10 = scmp.ne.s32.totalorder %s522_s15, %s2722_s0  ;;  %p2730_p13 = scmp.lt.s32.totalorder %s522_s15, %s522_s15 }
 0x134   : > { %p2731_p0 = scmp.lt.s32.totalorder %s2729_s3, %s2722_s0 }
 0x135   : > { %p2725_p11 = pnand %p2723_p10, %p3137_p8 }
 0x136   : > { %p2732_p2 = por %p2731_p0, %p2730_p13 }
 0x137   : > { %p2726_p12 = pneg %p2725_p11 }
 0x139   : > { %p2733_p5 = pnand %p2732_p2, %p2726_p12 }
 0x13b   : > { %2736 = shalt.err (!%p2733_p5)
}
 0x13c   : > { %2265 = dma.hbm_to_vmem [thread:$0]  (!%p3121_p6), %s3728_s10, 16, %s522_s15, [#allocation18]  }
 0x13d   : > { %s2982_s29 = smov [#allocation22]   ;;  %s2983_s2 = smov [#allocation25]  }
 0x13e   : > { %s545_s24 = sshll.u32 %s2982_s29, 4  ;;  %s569_s18 = sshll.u32 %s2983_s2, 4  ;;  %s546_s24 = int_to_ptr.vmem [resolvable:$true] %s545_s24  ;;  %s570_s18 = int_to_ptr.vmem [resolvable:$true] %s569_s18 }
 0x13f   : > { %s2737_s26 = scalar_lea.hbm %s3730_s12, 16 }
 0x140   : > { %p2738_p7 = scmp.ne.s32.totalorder %s3730_s12, %s2737_s26  ;;  %p2744_p1 = scmp.lt.u32.totalorder %s2737_s26, %s3730_s12 }
 0x142   : > { %p2740_p9 = pnand %p2738_p7, %p3137_p8 }
 0x144   : > { %p2741_p4 = pneg %p2740_p9 }
 0x146   : > { %p2746_p3 = pnand %p2744_p1, %p2741_p4 }
 0x148   : > { %2749 = shalt.err (!%p2746_p3)
}
 0x149   : > { %s2750_s15 = scalar_lea.vmem %s546_s24, 16  ;;  %s2757_s0 = scalar_lea.vmem %s546_s24, 32 }
 0x14a   : > { %p2751_p10 = scmp.ne.s32.totalorder %s546_s24, %s2750_s15  ;;  %p2758_p13 = scmp.lt.s32.totalorder %s546_s24, %s546_s24 }
 0x14b   : > { %p2759_p0 = scmp.lt.s32.totalorder %s2757_s0, %s2750_s15 }
 0x14c   : > { %p2753_p11 = pnand %p2751_p10, %p3137_p8 }
 0x14d   : > { %p2760_p2 = por %p2759_p0, %p2758_p13 }
 0x14e   : > { %p2754_p12 = pneg %p2753_p11 }
 0x150   : > { %p2761_p5 = pnand %p2760_p2, %p2754_p12 }
 0x152   : > { %2764 = shalt.err (!%p2761_p5)
}
 0x153   : > { %2271 = dma.hbm_to_vmem [thread:$0]  (!%p3121_p6), %s3730_s12, 16, %s546_s24, [#allocation21]  }
 0x154   : > { %s2765_s2 = scalar_lea.hbm %s3732_s14, 16 }
 0x155   : > { %p2766_p7 = scmp.ne.s32.totalorder %s3732_s14, %s2765_s2  ;;  %p2772_p1 = scmp.lt.u32.totalorder %s2765_s2, %s3732_s14 }
 0x157   : > { %p2768_p9 = pnand %p2766_p7, %p3137_p8 }
 0x159   : > { %p2769_p4 = pneg %p2768_p9 }
 0x15b   : > { %p2774_p3 = pnand %p2772_p1, %p2769_p4 }
 0x15d   : > { %2777 = shalt.err (!%p2774_p3)
}
 0x15e   : > { %s2778_s19 = scalar_lea.vmem %s570_s18, 16  ;;  %s2785_s24 = scalar_lea.vmem %s570_s18, 32 }
 0x15f   : > { %p2779_p10 = scmp.ne.s32.totalorder %s570_s18, %s2778_s19  ;;  %p2786_p13 = scmp.lt.s32.totalorder %s570_s18, %s570_s18 }
 0x160   : > { %p2787_p0 = scmp.lt.s32.totalorder %s2785_s24, %s2778_s19 }
 0x161   : > { %p2781_p11 = pnand %p2779_p10, %p3137_p8 }
 0x162   : > { %p2788_p2 = por %p2787_p0, %p2786_p13 }
 0x163   : > { %p2782_p12 = pneg %p2781_p11 }
 0x165   : > { %p2789_p5 = pnand %p2788_p2, %p2782_p12 }
 0x167   : > { %2792 = shalt.err (!%p2789_p5)
}
 0x168   : > { %s3773_s15 = sld [smem:[#allocation39_spill]]  ;;  %s3774_s0 = sld [smem:[#allocation38_spill]] }
 0x169   : > { %s3775_s28 = sld [smem:[#allocation37_spill]]  ;;  %s3776_s3 = sld [smem:[#allocation41_spill]] }
 0x16a   : > { %2277 = dma.hbm_to_vmem [thread:$0]  (!%p3121_p6), %s3732_s14, 16, %s570_s18, [#allocation24]  }
 0x16b   : > { %s1953_s16 = sadd.s32 4294967294, %s2967_s23   ;;  %s52_s1 = sadd.s32 1, %s2963_s22 }
 0x16c   : > { %p54_p8 = scmp.ge.s32.totalorder %s52_s1, 2  ;;  %p69_p9 = scmp.eq.s32.totalorder %s2967_s23, 0 }
 0x16d   : > { %p405_p12 = scmp.eq.s32.totalorder %s1953_s16, 1  ;;  %p2302_p0 = scmp.lt.s32.totalorder %s2967_s23, 2 }
 0x16e   : > { %s61_s30 = sadd.s32 1, %s3773_s15  ;;  %p68_p7 = scmp.ne.s32.totalorder %s3773_s15, %s3774_s0 }
 0x16f   : > { %p74_p4 = scmp.ne.s32.totalorder %s3774_s0, %s3775_s28  ;;  %s3816_s1 = smov (%p54_p8, %s52_s1), 0 }
 0x170   : > { %p3404_p1 = por %p69_p9, %p68_p7  ;;  %p3778_p3 = scmp.eq.s32.totalorder %s3776_s3, 0 }
 0x171   : > { %s56_s2 = ssub.s32 %s2963_s22, %s3816_s1  ;;  %p399_p10 = scmp.eq.s32.totalorder %s3776_s3, 1 }
 0x172   : > { %p3410_p6 = por %p3778_p3, %p74_p4  ;;  %p59_p11 = scmp.eq.s32.totalorder %s56_s2, 0 }
 0x173   : > { %p3417_p13 = por %p399_p10, %p68_p7  ;;  %p3425_p2 = por %p405_p12, %p74_p4 }
 0x174   : > { %s3779_s18 = scalar_select %p3410_p6, 1, 0 }
 0x175   : > { %s3780_s27 = scalar_select %p3417_p13, 1, 0 }
 0x176   : > { %s3423_s20 = scalar_select %p59_p11, %s3773_s15, %s61_s30  }
 0x177   : > { %s3781_s26 = scalar_select %p3425_p2, 1, 0 }
 0x178   : > { %s580_s17 = sand.u32 1, %s3773_s15   ;;  %s1970_s24 = sshll.u32 %s2963_s22, 7 }
 0x179   : > { %s3430_s19 = sshll.u32 %s580_s17, 3  ;;  %s3782_s0 = sld [smem:[#allocation43_spill]] }
 0x17a   : > { %s584_s3 = scalar_lea.vmem [#allocation2], %s3430_s19  ;;  %p3443_p5 = pnand %p2302_p0, %p3404_p1 }
 0x17b   : > { %s592_s16 = sshll.u32 %s584_s3, 4  ;;  %s3784_s4 = sld [smem:[#allocation44_spill]]  ;;  %s3439_s16 = int_to_ptr.vmem [resolvable:$true] %s592_s16 }
 0x17c   : > { %s599_s25 = sand.u32 1, %s2967_s23   ;;  %s581_s5 = scalar_lea.sflag [#allocation3], %s580_s17 }
 0x17d   : > { %p2795_p7 = pneg %p3443_p5 }
 0x17f   : > { %s3436_s28 = scalar_lea.hbm %s3782_s0, %s1970_s24  ;;  %s2798_s7 = scalar_lea.hbm %s3782_s0, 256 }
 0x180   : > { %s2793_s6 = scalar_lea.hbm %s3436_s28, 128  ;;  %p2799_p1 = scmp.lt.u32.totalorder %s3436_s28, %s3782_s0 }
 0x181   : > { %s3450_s21 = scalar_lea.hbm %s3784_s4, %s1970_s24  ;;  %p2794_p8 = scmp.ne.s32.totalorder %s3436_s28, %s2793_s6 }
 0x182   : > { %p2800_p3 = scmp.lt.u32.totalorder %s2798_s7, %s2793_s6  ;;  %p2802_p11 = scmp.lt.u32.totalorder %s2793_s6, %s3436_s28 }
 0x183   : > { %p2796_p9 = pnand %p2795_p7, %p2794_p8 }
 0x184   : > { %p2801_p10 = por %p2800_p3, %p2799_p1 }
 0x185   : > { %p2797_p4 = pneg %p2796_p9 }
 0x186   : > { %p2803_p12 = por %p2802_p11, %p2801_p10 }
 0x188   : > { %p2804_p0 = pnand %p2803_p12, %p2797_p4 }
 0x18a   : > { %2807 = shalt.err (!%p2804_p0)
}
 0x18b   : > { %s2808_s17 = scalar_lea.vmem %s3439_s16, 128  ;;  %s2984_s24 = smov [#allocation2]  }
 0x18c   : > { %p2809_p8 = scmp.ne.s32.totalorder %s3439_s16, %s2808_s17  ;;  %s2813_s2 = sshll.u32 %s2984_s24, 4  ;;  %s2814_s2 = int_to_ptr.vmem [resolvable:$false] %s2813_s2 }
 0x18d   : > { %s2815_s8 = scalar_lea.vmem %s2814_s2, 256  ;;  %p2816_p13 = scmp.lt.s32.totalorder %s3439_s16, %s2814_s2 }
 0x18e   : > { %p2811_p9 = pnand %p2809_p8, %p2795_p7  ;;  %p2817_p1 = scmp.lt.s32.totalorder %s2815_s8, %s2808_s17 }
 0x190   : > { %p2812_p2 = pneg %p2811_p9  ;;  %p2818_p3 = por %p2817_p1, %p2816_p13 }
 0x192   : > { %p2819_p10 = pnand %p2818_p3, %p2812_p2 }
 0x194   : > { %2822 = shalt.err (!%p2819_p10)
}
 0x195   : > { %2281 = dma.hbm_to_vmem [thread:$0]  (!%p3443_p5), %s3436_s28, 128, %s3439_s16, %s581_s5  }
 0x196   : > { %s603_s6 = scalar_lea.vmem [#allocation5], %s3430_s19  ;;  %s600_s29 = scalar_lea.sflag [#allocation6], %s599_s25 }
 0x197   : > { %s610_s7 = sshll.u32 %s603_s6, 4  ;;  %s2823_s3 = scalar_lea.hbm %s3450_s21, 128  ;;  %s611_s7 = int_to_ptr.vmem [resolvable:$true] %s610_s7 }
 0x198   : > { %p2824_p13 = scmp.ne.s32.totalorder %s3450_s21, %s2823_s3  ;;  %s2828_s24 = scalar_lea.hbm %s3784_s4, 256 }
 0x199   : > { %p2829_p11 = scmp.lt.u32.totalorder %s3450_s21, %s3784_s4  ;;  %p2830_p12 = scmp.lt.u32.totalorder %s2828_s24, %s2823_s3 }
 0x19a   : > { %p2826_p2 = pnand %p2824_p13, %p2795_p7  ;;  %p2832_p8 = scmp.lt.u32.totalorder %s2823_s3, %s3450_s21 }
 0x19b   : > { %p2831_p0 = por %p2830_p12, %p2829_p11 }
 0x19c   : > { %p2827_p4 = pneg %p2826_p2 }
 0x19d   : > { %p2833_p9 = por %p2832_p8, %p2831_p0 }
 0x19f   : > { %p2834_p1 = pnand %p2833_p9, %p2827_p4 }
 0x1a1   : > { %2837 = shalt.err (!%p2834_p1)
}
 0x1a2   : > { %s2838_s5 = scalar_lea.vmem %s611_s7, 128  ;;  %s2985_s19 = smov [#allocation5]  }
 0x1a3   : > { %p2839_p3 = scmp.ne.s32.totalorder %s611_s7, %s2838_s5  ;;  %s2843_s28 = sshll.u32 %s2985_s19, 4  ;;  %s2844_s28 = int_to_ptr.vmem [resolvable:$false] %s2843_s28 }
 0x1a4   : > { %s2845_s16 = scalar_lea.vmem %s2844_s28, 256  ;;  %p2846_p2 = scmp.lt.s32.totalorder %s611_s7, %s2844_s28 }
 0x1a5   : > { %p2841_p10 = pnand %p2839_p3, %p2795_p7  ;;  %p2847_p6 = scmp.lt.s32.totalorder %s2845_s16, %s2838_s5 }
 0x1a7   : > { %p2842_p13 = pneg %p2841_p10  ;;  %p2848_p11 = por %p2847_p6, %p2846_p2 }
 0x1a9   : > { %p2849_p12 = pnand %p2848_p11, %p2842_p13 }
 0x1ab   : > { %2852 = shalt.err (!%p2849_p12)
}
 0x1ac   : > { %2284 = dma.hbm_to_vmem [thread:$0]  (!%p3443_p5), %s3450_s21, 128, %s611_s7, %s600_s29  }
 0x1ad   : > { %s3785_s25 = sld [smem:[#allocation42_spill]] }
 0x1b3   : > { %p3786_p4 = scmp.ne.s32.totalorder %s3785_s25, 0 }
 0x1b4   : > { %s3787_s6 = sld [smem:[#allocation38_spill]] (!%p3786_p4)  ;;  %p3788_p6 = scmp.ne.s32.totalorder (!%p3786_p4), %s3779_s18, 0 }
 0x1b5   : > { %619 = sbr.rel (%p3786_p4) target bundleno = 3029 (0xbd5), region = 80 }
 0x1ba   : > { %s3503_s3 = sand.u32 (!%p3786_p4), 1, %s3787_s6  }
 0x1bb   : > { %s3506_s30 = sshll.u32 (!%p3786_p4), %s3503_s3, 3  ;;  %s622_s17 = scalar_lea.sflag (!%p3786_p4), [#allocation3], %s3503_s3 }
 0x1bc   : > { %s625_s24 = scalar_lea.vmem [#allocation2], %s3506_s30 }
 0x1bd   : > { %2906 = dma.done.wait (%p3788_p6), %s622_s17, 128  }
 0x1be   : > { %2908 = vsyncadd (%p3788_p6), %s622_s17, 4294967168  ;;  %s3789_s15 = sld [smem:[#allocation41_spill]]  ;;  %s634_s29 = scalar_lea.vmem [#allocation5], %s3506_s30 }
 0x1c4   : > { %s630_s21 = sand.u32 1, %s3789_s15  }
 0x1c5   : > { %s631_s7 = scalar_lea.sflag [#allocation6], %s630_s21 }
 0x1c6   : > { %2910 = dma.done.wait (%p3788_p6), %s631_s7, 128  }
 0x1c7   : > { %2912 = vsyncadd (%p3788_p6), %s631_s7, 4294967168  ;;  %p3790_p5 = scmp.eq.s32.totalorder %s3789_s15, 0 }
 0x1c9   : > { %2914 = dma.done.wait (%p3790_p5), [#allocation6], 16   ;;  %p3791_p7 = pmov %p3790_p5 }
 0x1ca   : > { %p3792_p0 = pmov %p3790_p5 }
 0x1cb   : > { %2916 = vsyncadd (%p3791_p7), [#allocation6], 4294967280 }
 0x1cc   : > { %2918 = dma.done.wait (%p3792_p0), [#allocation9], 272   ;;  %p3793_p8 = pmov %p3792_p0 }
 0x1cd   : > { %p3794_p9 = pmov %p3792_p0 }
 0x1ce   : > { %2920 = vsyncadd (%p3793_p8), [#allocation9], 4294967024 }
 0x1cf   : > { %2922 = dma.done.wait (%p3794_p9), [#allocation12], 512   ;;  %p3795_p1 = pmov %p3792_p0 }
 0x1d0   : > { %p3796_p3 = pmov %p3792_p0 }
 0x1d1   : > { %2924 = vsyncadd (%p3795_p1), [#allocation12], 4294966784 }
 0x1d2   : > { %2926 = dma.done.wait (%p3796_p3), [#allocation15], 272   ;;  %p3797_p10 = pmov %p3792_p0 }
 0x1d3   : > { %p3798_p13 = pmov %p3792_p0 }
 0x1d4   : > { %2928 = vsyncadd (%p3797_p10), [#allocation15], 4294967024 }
 0x1d5   : > { %2930 = dma.done.wait (%p3798_p13), [#allocation18], 32   ;;  %p3799_p2 = pmov %p3792_p0 }
 0x1d6   : > { %p3800_p11 = pmov %p3792_p0 }
 0x1d7   : > { %2932 = vsyncadd (%p3799_p2), [#allocation18], 4294967264 }
 0x1d8   : > { %2934 = dma.done.wait (%p3800_p11), [#allocation21], 272   ;;  %p3801_p12 = pmov %p3792_p0 }
 0x1d9   : > { %p3802_p4 = pmov %p3792_p0 }
 0x1da   : > { %2936 = vsyncadd (%p3801_p12), [#allocation21], 4294967024 }
 0x1db   : > { %2938 = dma.done.wait (%p3802_p4), [#allocation24], 1040   ;;  %p3803_p6 = pmov %p3792_p0 }
 0x1dc   : > { %vm744_vm0 = vcmask 261120   ;;  %v3548_v0 = vld [vmem:[%s625_s24] sm:$0xff]  ;;  %v740_v1 = vld [vmem:[%s634_s29] sm:$0xff]  ;;  %v2986_v15 = vmov 0.0   ;;  %vm2987_vm1 = vmmov 0   ;;  %s2988_s18 = smov 120  }
 0x1dd   : > { %2940 = vsyncadd (%p3803_p6), [#allocation24], 4294966256  ;;  %v745_v2 = vsel %vm744_vm0, %v3548_v0, 0.0  ;;  %v773_v3 = vsel %vm744_vm0, %v740_v1, 0.0  ;;  %v2389_v14 = vld [vmem:[#allocation10] sm:$0xff]   ;;  %2072 = vmatprep.subr.bf16.mxu0 %v2986_v15  ;;  %2096 = vmatprep.subr.bf16.mxu1 %v2986_v15  ;;  %v2390_v16 = vld [vmem:[#allocation10 + $0x8] sm:$0xff]  }
 0x1de   : > { %746 = vadd.xlane.f32.xlu0 %v745_v2  ;;  %2073 = vmatpush3.bf16.msra.mxu0 %v2389_v14  ;;  %v1990_v24 = vld [vmem:[#allocation7] ss:$0 sm:$0xff]  ;;  %v1991_v26 = vld [vmem:[#allocation8] ss:$0 sm:$0xff]  ;;  %v2391_v31 = vld [vmem:[#allocation11] sm:$0xff]   ;;  %vm976_vm2 = vcmask 64512  }
 0x1df   : > { %2074 = vmatprep.subr.bf16.mxu0 %v2986_v15  ;;  %2076 = vmatprep.mubr.msk.bf16.mxu0 %vm2987_vm1, %v2986_v15  ;;  %v2392_v34 = vld [vmem:[#allocation11 + $0x8] sm:$0xff]   ;;  %v2393_v36 = vld [vmem:[#allocation13] sm:$0xff]   ;;  %v2394_v38 = vld [vmem:[#allocation13 + $0x8] sm:$0xff]   ;;  %s2989_s2 = smov 112   ;;  %s2990_s8 = smov 104   ;;  %vm1038_vm3 = vcmask 1043456  }
 0x1e0   : > { %2098 = vmatprep.mubr.msk.bf16.mxu1 %vm2987_vm1, %v2986_v15  ;;  %s2992_s5 = smov 8   ;;  %s2993_s19 = smov 16   ;;  %vm1428_vm5 = vcmask 130048   ;;  %vm1430_vm6 = vcmask 195584  }
 0x1e1   : > { %s2994_s28 = smov 24   ;;  %s3804_s16 = sld [smem:[#allocation40_spill]] }
 0x1e2   : > { %774 = vadd.xlane.f32.xlu0 %v773_v3  ;;  %2075 = vmatpush3.bf16.msra.mxu0 %v2390_v16  ;;  %v965_v3 = vlaneseq  ;;  %s737_s6 = scalar_lea.vmem [#allocation26], %s3506_s30  ;;  %s3805_s21 = sld [smem:[#allocation52_spill]] }
 0x1e3   : > { %2080 = vmatprep.subr.bf16.mxu0 %v2986_v15  ;;  %s1726_s17 = sshll.u32 %s737_s6, 4  ;;  %s1712_s30 = scalar_lea.sflag [#allocation4], %s3503_s3  ;;  %s3670_s17 = int_to_ptr.vmem [resolvable:$true] %s1726_s17 }
 0x1e4   : > { %p3807_p7 = scmp.ne.s32.totalorder %s3780_s27, 0 }
 0x1e7   : > { %s2029_s25 = sshll.u32 %s3804_s16, 7 }
 0x1e8   : > { %s3806_s7 = smov %s3805_s21  ;;  %s3668_s29 = scalar_lea.hbm %s3805_s21, %s2029_s25 }
 0x26b   : > { %v747_v4 = vpop.xlane.xlu0 %746 }
 0x26c   : > { %v749_v5 = vmul.f32 0.03125, %v747_v4  ;;  %v966_v4 = vshrl.u32 %v965_v3, 7 }
 0x26e   : > { %v750_v6 = vsub.f32 %v3548_v0, %v749_v5  ;;  %v970_v5 = vand.u32 127, %v965_v3 }
 0x26f   : > { %v775_v7 = vpop.xlane.xlu0 %774 }
 0x270   : > { %v776_v8 = vmul.f32 0.03125, %v775_v7  ;;  %v751_v9 = vmul.f32 %v750_v6, %v750_v6  ;;  %vm971_vm4 = vcmp.ge.s32.totalorder %v966_v4, %v970_v5 }
 0x272   : > { %v777_v10 = vsub.f32 %v740_v1, %v776_v8  ;;  %v752_v11 = vsel %vm744_vm0, %v751_v9, 0.0 }
 0x273   : > { %753 = vadd.xlane.f32.xlu1 %v752_v11 }
 0x274   : > { %v778_v12 = vmul.f32 %v777_v10, %v777_v10 }
 0x276   : > { %v779_v13 = vsel %vm744_vm0, %v778_v12, 0.0 }
 0x277   : > { %780 = vadd.xlane.f32.xlu1 %v779_v13 }
 0x300   : > { %v754_v17 = vpop.xlane.xlu1 %753 }
 0x301   : > { %v755_v18 = vmul.f32 0.03125, %v754_v17 }
 0x303   : > { %v756_v19 = vadd.f32 1e-05, %v755_v18 }
 0x304   : > { %v781_v20 = vpop.xlane.xlu1 %780 }
 0x305   : > { %2407 = vrsqrt.f32 %v756_v19  ;;  %v782_v21 = vmul.f32 0.03125, %v781_v20 }
 0x307   : > { %v783_v22 = vadd.f32 1e-05, %v782_v21 }
 0x309   : > { %2409 = vrsqrt.f32 %v783_v22 }
 0x30f   : > { %v2408_v23 = vpop.eup %2407 }
 0x310   : > { %v758_v25 = vmul.f32 %v2408_v23, %v750_v6  ;;  %v2991_v6 = vmov -1e+30  }
 0x311   : > { %v972_v7 = vsel %vm971_vm4, 0.0, %v2991_v6 }
 0x312   : > { %v765_v27 = vmul.f32 %v1990_v24, %v758_v25 }
 0x313   : > { %v2410_v28 = vpop.eup %2409 }
 0x314   : > { %v785_v29 = vmul.f32 %v2410_v28, %v777_v10  ;;  %v772_v30 = vadd.f32 %v1991_v26, %v765_v27 }
 0x316   : > { %v786_v32 = vmul.f32 %v1990_v24, %v785_v29  ;;  %v788_v33 = vpack.c.bf16 %v772_v30, %v772_v30 }
 0x318   : > { %2077 = vmatmul.mubr.msk.bf16.vlgmr.msra.gmra.mrb[0].mxu0 %vm744_vm0, %v788_v33  ;;  %v787_v35 = vadd.f32 %v1991_v26, %v786_v32 }
 0x319   : > { %2081 = vmatpush3.bf16.msra.mxu0 %v2391_v31  ;;  %2084 = vmatprep.mubr.msk.bf16.mxu0 %vm2987_vm1, %v2986_v15 }
 0x31a   : > { %2082 = vmatprep.subr.bf16.mxu0 %v2986_v15  ;;  %v849_v37 = vpack.c.bf16 %v787_v35, %v787_v35 }
 0x31d   : > { %2083 = vmatpush3.bf16.msra.mxu0 %v2392_v34 }
 0x31e   : > { %2088 = vmatprep.subr.bf16.mxu0 %v2986_v15 }
 0x320   : > { %2085 = vmatmul.mubr.msk.bf16.vlgmr.msra.gmra.mrb[4].mxu0 %vm744_vm0, %v849_v37 }
 0x321   : > { %2089 = vmatpush3.bf16.msra.mxu0 %v2393_v36  ;;  %2092 = vmatprep.mubr.msk.bf16.mxu0 %vm2987_vm1, %v2986_v15 }
 0x322   : > { %2090 = vmatprep.subr.bf16.mxu0 %v2986_v15 }
 0x325   : > { %2091 = vmatpush3.bf16.msra.mxu0 %v2394_v38 }
 0x326   : > { %2102 = vmatprep.subr.bf16.mxu0 %v2986_v15 }
 0x328   : > { %2093 = vmatmul.mubr.msk.bf16.vlgmr.msra.gmra.mrb[8].mxu0 %vm744_vm0, %v849_v37 }
 0x329   : > { %2104 = vmatprep.mubr.msk.bf16.mxu0 %vm2987_vm1, %v2986_v15 }
 0x3eb   : > { %v842_v39 = vpop.f32.mrb[0].mxu0 }
 0x3ec   : > { %v848_v40 = vmul.f32 0.35355338, %v842_v39  ;;  %v2078_v41 = vpop.f32.mrb[1].mxu0 }
 0x3ed   : > { %v845_v42 = vpop.f32.mrb[2].mxu0 }
 0x3ee   : > { %v973_v43 = vpack.c.bf16 %v848_v40, %v848_v40  ;;  %v2079_v44 = vpop.f32.mrb[3].mxu0 }
 0x3f0   : > { %1083 = vrot.lane.b32.xlu1 %v973_v43, %s2988_s18 }
 0x3f3   : > { %v903_v45 = vpop.f32.mrb[4].mxu0 }
 0x3f4   : > { %v974_v46 = vpack.c.bf16 %v903_v45, %v903_v45  ;;  %v2086_v47 = vpop.f32.mrb[5].mxu0 }
 0x3f5   : > { %v906_v48 = vpop.f32.mrb[6].mxu0 }
 0x3f6   : > { %1197 = vrot.lane.b32.xlu1 %v974_v46, %s2989_s2  ;;  %1086 = vrot.lane.b32.xlu0 %v974_v46, %s2988_s18  ;;  %v2087_v49 = vpop.f32.mrb[7].mxu0  ;;  %v981_v50 = vsel %vm976_vm2, %v974_v46, 0 }
 0x3f7   : > { %2097 = vmatpush3.bf16.xpose.msra.mxu1 %v981_v50 }
 0x3f8   : > { %2108 = vmatprep.subr.bf16.mxu1 %v2986_v15 }
 0x3fa   : > { %1195 = vrot.lane.b32.xlu1 %v973_v43, %s2989_s2  ;;  %1307 = vrot.lane.b32.xlu0 %v974_v46, %s2990_s8 }
 0x3fb   : > { %v959_v51 = vpop.f32.mrb[8].mxu0 }
 0x3fc   : > { %v3584_v52 = vpack.c.bf16 %v959_v51, %v959_v51  ;;  %v2094_v53 = vpop.f32.mrb[9].mxu0 }
 0x3fd   : > { %v962_v54 = vpop.f32.mrb[10].mxu0 }
 0x3fe   : > { %1305 = vrot.lane.b32.xlu1 %v973_v43, %s2990_s8  ;;  %v2095_v55 = vpop.f32.mrb[11].mxu0  ;;  %2099 = vmatmul.mubr.msk.bf16.vlgmr.msra.gmra.mrb[0].mxu1 %vm976_vm2, %v973_v43  ;;  %v1040_v56 = vsel %vm1038_vm3, %v3584_v52, 0 }
 0x3ff   : > { %2103 = vmatpush3.bf16.msra.mxu0 %v1040_v56  ;;  %2110 = vmatprep.mubr.msk.bf16.mxu1 %vm2987_vm1, %v2986_v15 }
 0x400   : > { %2114 = vmatprep.subr.bf16.mxu0 %v2986_v15 }
 0x462   : > { %v1084_v59 = vpop.permute.xlu1 %1083 }
 0x468   : > { %v1087_v57 = vpop.permute.xlu0 %1086  ;;  %v1198_v60 = vpop.permute.xlu1 %1197 }
 0x469   : > { %v1092_v58 = vsel %vm976_vm2, %v1087_v57, 0  ;;  %v1203_v61 = vsel %vm976_vm2, %v1198_v60, 0 }
 0x46a   : > { %2109 = vmatpush3.bf16.xpose.msra.mxu1 %v1092_v58 }
 0x46b   : > { %2120 = vmatprep.subr.bf16.mxu1 %v2986_v15 }
 0x46c   : > { %v1308_v62 = vpop.permute.xlu0 %1307  ;;  %v1196_v63 = vpop.permute.xlu1 %1195 }
 0x46d   : > { %v1313_v1 = vsel %vm976_vm2, %v1308_v62, 0 }
 0x470   : > { %v1306_v2 = vpop.permute.xlu1 %1305 }
 0x471   : > { %2111 = vmatmul.mubr.msk.bf16.vlgmr.msra.gmra.mrb[4].mxu1 %vm976_vm2, %v1084_v59 }
 0x472   : > { %2121 = vmatpush3.bf16.xpose.msra.mxu1 %v1203_v61  ;;  %2122 = vmatprep.mubr.msk.bf16.mxu1 %vm2987_vm1, %v2986_v15 }
 0x473   : > { %2132 = vmatprep.subr.bf16.mxu1 %v2986_v15 }
 0x479   : > { %2123 = vmatmul.mubr.msk.bf16.vlgmr.msra.gmra.mrb[8].mxu1 %vm976_vm2, %v1196_v63 }
 0x47a   : > { %2133 = vmatpush3.bf16.xpose.msra.mxu1 %v1313_v1  ;;  %2134 = vmatprep.mubr.msk.bf16.mxu1 %vm2987_vm1, %v2986_v15 }
 0x47b   : > { %2144 = vmatprep.subr.bf16.mxu1 %v2986_v15 }
 0x481   : > { %2135 = vmatmul.mubr.msk.bf16.vlgmr.msra.gmra.mrb[12].mxu1 %vm976_vm2, %v1306_v2 }
 0x482   : > { %2148 = vmatprep.mubr.msk.bf16.mxu1 %vm2987_vm1, %v2986_v15 }
 0x4d1   : > { %v1017_v8 = vpop.f32.mrb[0].mxu1 }
 0x4d2   : > { %v1018_v9 = vadd.f32 %v1017_v8, %v972_v7  ;;  %v2100_v10 = vpop.f32.mrb[1].mxu1 }
 0x4d3   : > { %v1020_v11 = vpop.f32.mrb[2].mxu1 }
 0x4d4   : > { %v2101_v12 = vpop.f32.mrb[3].mxu1  ;;  %v1023_v13 = vsel %vm976_vm2, %v1018_v9, -inf }
 0x4d5   : > { %1024 = vmax.xlane.f32.xlu0 %v1023_v13 }
 0x544   : > { %v1128_v14 = vpop.f32.mrb[4].mxu1 }
 0x545   : > { %v1129_v16 = vadd.f32 %v1128_v14, %v972_v7  ;;  %v2112_v17 = vpop.f32.mrb[5].mxu1 }
 0x546   : > { %v1131_v18 = vpop.f32.mrb[6].mxu1  ;;  %v2395_v17 = vld [vmem:[#allocation14] sm:$0xff]  }
 0x547   : > { %v2113_v19 = vpop.f32.mrb[7].mxu1  ;;  %v1134_v20 = vsel %vm976_vm2, %v1129_v16, -inf  ;;  %2145 = vmatpush3.bf16.msra.mxu1 %v2395_v17 }
 0x548   : > { %1135 = vmax.xlane.f32.xlu1 %v1134_v20  ;;  %2146 = vmatprep.subr.bf16.mxu1 %v2986_v15 }
 0x54c   : > { %v1239_v21 = vpop.f32.mrb[8].mxu1 }
 0x54d   : > { %v1240_v22 = vadd.f32 %v1239_v21, %v972_v7  ;;  %v2124_v23 = vpop.f32.mrb[9].mxu1 }
 0x54e   : > { %v1242_v24 = vpop.f32.mrb[10].mxu1 }
 0x54f   : > { %v2125_v25 = vpop.f32.mrb[11].mxu1  ;;  %v1245_v26 = vsel %vm976_vm2, %v1240_v22, -inf }
 0x550   : > { %1246 = vmax.xlane.f32.xlu0 %v1245_v26  ;;  %v2396_v26 = vld [vmem:[#allocation14 + $0x8] sm:$0xff]  }
 0x551   : > { %2147 = vmatpush3.bf16.msra.mxu1 %v2396_v26 }
 0x552   : > { %2160 = vmatprep.subr.bf16.mxu1 %v2986_v15 }
 0x554   : > { %v1349_v27 = vpop.f32.mrb[12].mxu1 }
 0x555   : > { %v1350_v28 = vadd.f32 %v1349_v27, %v972_v7  ;;  %v2136_v29 = vpop.f32.mrb[13].mxu1 }
 0x556   : > { %v1352_v30 = vpop.f32.mrb[14].mxu1 }
 0x557   : > { %v2137_v31 = vpop.f32.mrb[15].mxu1  ;;  %v1355_v32 = vsel %vm976_vm2, %v1350_v28, -inf }
 0x558   : > { %1356 = vmax.xlane.f32.xlu0 %v1355_v32 }
 0x562   : > { %v1025_v33 = vpop.xlane.xlu0 %1024 }
 0x563   : > { %v1026_v34 = vsub.f32 %v1018_v9, %v1025_v33 }
 0x565   : > { %v1027_v35 = vmul.f32 1.442695, %v1026_v34 }
 0x567   : > { %2411 = vpow2.f32 %v1027_v35 }
 0x571   : > { %v2412_v36 = vpop.eup %2411 }
 0x572   : > { %v1029_v37 = vsel %vm976_vm2, %v2412_v36, 0.0 }
 0x573   : > { %1030 = vadd.xlane.f32.xlu0 %v1029_v37 }
 0x5d5   : > { %v1136_v38 = vpop.xlane.xlu1 %1135 }
 0x5d6   : > { %v1137_v39 = vsub.f32 %v1129_v16, %v1136_v38  ;;  %v2009_v38 = vld [vmem:[#allocation16] ss:$0 sm:$0xff] }
 0x5d8   : > { %v1138_v40 = vmul.f32 1.442695, %v1137_v39 }
 0x5da   : > { %2413 = vpow2.f32 %v1138_v40 }
 0x5dd   : > { %v1247_v41 = vpop.xlane.xlu0 %1246 }
 0x5de   : > { %v1248_v42 = vsub.f32 %v1240_v22, %v1247_v41 }
 0x5e0   : > { %v1249_v43 = vmul.f32 1.442695, %v1248_v42 }
 0x5e2   : > { %2415 = vpow2.f32 %v1249_v43 }
 0x5e4   : > { %v2414_v44 = vpop.eup %2413 }
 0x5e5   : > { %v1140_v45 = vsel %vm976_vm2, %v2414_v44, 0.0  ;;  %v1357_v48 = vpop.xlane.xlu0 %1356 }
 0x5e6   : > { %1141 = vadd.xlane.f32.xlu1 %v1140_v45  ;;  %v1358_v50 = vsub.f32 %v1350_v28, %v1357_v48 }
 0x5e8   : > { %v1359_v51 = vmul.f32 1.442695, %v1358_v50 }
 0x5ec   : > { %v2416_v46 = vpop.eup %2415 }
 0x5ed   : > { %v1251_v47 = vsel %vm976_vm2, %v2416_v46, 0.0 }
 0x5ee   : > { %1252 = vadd.xlane.f32.xlu0 %v1251_v47 }
 0x5f7   : > { %1257 = vrot.lane.b32.xlu1 %v3584_v52, %s2989_s2  ;;  %s2995_s2 = smov [#allocation26]  }
 0x600   : > { %v1031_v49 = vpop.xlane.xlu0 %1030 }
 0x601   : > { %2417 = vrcp.f32 %v1031_v49 }
 0x602   : > { %2419 = vpow2.f32 %v1359_v51  ;;  %v2397_v51 = vld [vmem:[#allocation20] sm:$0xff]  }
 0x604   : > { %1147 = vrot.lane.b32.xlu0 %v3584_v52, %s2988_s18  ;;  %s2853_s18 = scalar_lea.vmem %s3670_s17, 128 }
 0x605   : > { %p2854_p5 = scmp.ne.s32.totalorder %s3670_s17, %s2853_s18 }
 0x607   : > { %p2855_p0 = pnand %p2854_p5, %p3807_p7 }
 0x609   : > { %p2856_p8 = pneg %p2855_p0 }
 0x60b   : > { %v2418_v53 = vpop.eup %2417 }
 0x60c   : > { %v1033_v54 = vmul.f32 %v2418_v53, %v2412_v36  ;;  %v2420_v56 = vpop.eup %2419  ;;  %v2398_v53 = vld [vmem:[#allocation20 + $0x8] sm:$0xff]  }
 0x60d   : > { %v1361_v57 = vsel %vm976_vm2, %v2420_v56, 0.0 }
 0x60e   : > { %v1034_v55 = vpack.c.bf16 %v1033_v54, %v1033_v54  ;;  %v2400_v54 = vld [vmem:[#allocation23 + $0x8] sm:$0xff]  }
 0x610   : > { %2105 = vmatmul.mubr.msk.bf16.vlgmr.msra.gmra.mrb[12].mxu0 %vm976_vm2, %v1034_v55  ;;  %v2401_v55 = vld [vmem:[#allocation23 + $0x10] sm:$0xff]  }
 0x611   : > { %2116 = vmatprep.mubr.msk.bf16.mxu0 %vm2987_vm1, %v2986_v15 }
 0x61b   : > { %1362 = vadd.xlane.f32.xlu1 %v1361_v57  ;;  %v2403_v57 = vld [vmem:[#allocation23 + $0x20] sm:$0xff]  }
 0x62c   : > { %1367 = vrot.lane.b32.xlu1 %v3584_v52, %s2990_s8  ;;  %s2857_s8 = sshll.u32 %s2995_s2, 4  ;;  %s2858_s8 = int_to_ptr.vmem [resolvable:$false] %s2857_s8 }
 0x62d   : > { %p2860_p9 = scmp.lt.s32.totalorder %s3670_s17, %s2858_s8 }
 0x673   : > { %v1142_v58 = vpop.xlane.xlu1 %1141 }
 0x674   : > { %2421 = vrcp.f32 %v1142_v58  ;;  %v2404_v58 = vld [vmem:[#allocation23 + $0x28] sm:$0xff]  }
 0x677   : > { %v1258_v1 = vpop.permute.xlu1 %1257 }
 0x678   : > { %v1263_v3 = vsel %vm1038_vm3, %v1258_v1, 0 }
 0x67b   : > { %v1253_v59 = vpop.xlane.xlu0 %1252 }
 0x67c   : > { %2423 = vrcp.f32 %v1253_v59 }
 0x67e   : > { %v2422_v60 = vpop.eup %2421 }
 0x67f   : > { %v1144_v61 = vmul.f32 %v2422_v60, %v2414_v44  ;;  %v1148_v62 = vpop.permute.xlu0 %1147 }
 0x680   : > { %v1153_v63 = vsel %vm1038_vm3, %v1148_v62, 0 }
 0x681   : > { %2115 = vmatpush3.bf16.msra.mxu0 %v1153_v63  ;;  %v1145_v2 = vpack.c.bf16 %v1144_v61, %v1144_v61  ;;  %v2013_v63 = vld [vmem:[#allocation17] ss:$0 sm:$0xff] }
 0x682   : > { %2126 = vmatprep.subr.bf16.mxu0 %v2986_v15 }
 0x684   : > { %2117 = vmatmul.mubr.msk.bf16.vlgmr.msra.gmra.mrb[16].mxu0 %vm976_vm2, %v1145_v2  ;;  %v2014_v2 = vld [vmem:[#allocation19] ss:$0 sm:$0xff] }
 0x685   : > { %2127 = vmatpush3.bf16.msra.mxu0 %v1263_v3  ;;  %2128 = vmatprep.mubr.msk.bf16.mxu0 %vm2987_vm1, %v2986_v15 }
 0x686   : > { %v2424_v52 = vpop.eup %2423  ;;  %2138 = vmatprep.subr.bf16.mxu0 %v2986_v15 }
 0x687   : > { %v1255_v4 = vmul.f32 %v2424_v52, %v2416_v46 }
 0x689   : > { %v1256_v5 = vpack.c.bf16 %v1255_v4, %v1255_v4 }
 0x68c   : > { %2129 = vmatmul.mubr.msk.bf16.vlgmr.msra.gmra.mrb[20].mxu0 %vm976_vm2, %v1256_v5  ;;  %v2405_v5 = vld [vmem:[#allocation23 + $0x30] sm:$0xff]  }
 0x68d   : > { %2140 = vmatprep.mubr.msk.bf16.mxu0 %vm2987_vm1, %v2986_v15 }
 0x6a8   : > { %v1363_v6 = vpop.xlane.xlu1 %1362 }
 0x6a9   : > { %2425 = vrcp.f32 %v1363_v6  ;;  %v2406_v6 = vld [vmem:[#allocation23 + $0x38] sm:$0xff]  }
 0x6ac   : > { %v1368_v7 = vpop.permute.xlu1 %1367 }
 0x6ad   : > { %v1373_v8 = vsel %vm1038_vm3, %v1368_v7, 0  ;;  %v2015_v7 = vld [vmem:[#allocation22] ss:$0 sm:$0xff] }
 0x6ae   : > { %2139 = vmatpush3.bf16.msra.mxu0 %v1373_v8 }
 0x6af   : > { %2152 = vmatprep.subr.bf16.mxu0 %v2986_v15 }
 0x6b3   : > { %v2426_v9 = vpop.eup %2425 }
 0x6b4   : > { %v1365_v10 = vmul.f32 %v2426_v9, %v2420_v56  ;;  %v2402_v56 = vld [vmem:[#allocation23 + $0x18] sm:$0xff]  }
 0x6b6   : > { %v1366_v11 = vpack.c.bf16 %v1365_v10, %v1365_v10 }
 0x6b8   : > { %2141 = vmatmul.mubr.msk.bf16.vlgmr.msra.gmra.mrb[24].mxu0 %vm976_vm2, %v1366_v11 }
 0x6b9   : > { %2156 = vmatprep.mubr.msk.bf16.mxu0 %vm2987_vm1, %v2986_v15  ;;  %2153 = vmatpush3.bf16.msra.mxu0 %v2397_v51 }
 0x6ba   : > { %2154 = vmatprep.subr.bf16.mxu0 %v2986_v15 }
 0x6bd   : > { %2155 = vmatpush3.bf16.msra.mxu0 %v2398_v53 }
 0x6e3   : > { %v1076_v12 = vpop.f32.mrb[12].mxu0 }
 0x6e4   : > { %v2106_v13 = vpop.f32.mrb[13].mxu0 }
 0x6e5   : > { %v1079_v14 = vpop.f32.mrb[14].mxu0 }
 0x6e6   : > { %v2107_v16 = vpop.f32.mrb[15].mxu0 }
 0x6e7   : > { %v2019_v16 = vld [vmem:[#allocation25] ss:$0 sm:$0xff] }
 0x757   : > { %v1189_v18 = vpop.f32.mrb[16].mxu0 }
 0x758   : > { %1416 = vrot.lane.b32.xlu1 %v1189_v18, %s2992_s5  ;;  %v2118_v19 = vpop.f32.mrb[17].mxu0  ;;  %s2859_s5 = scalar_lea.vmem %s2858_s8, 256 }
 0x759   : > { %v1192_v20 = vpop.f32.mrb[18].mxu0  ;;  %p2861_p1 = scmp.lt.s32.totalorder %s2859_s5, %s2853_s18 }
 0x75a   : > { %v2119_v21 = vpop.f32.mrb[19].mxu0 }
 0x75b   : > { %p2862_p3 = por %p2861_p1, %p2860_p9 }
 0x75d   : > { %p2863_p10 = pnand %p2862_p3, %p2856_p8 }
 0x75f   : > { %v1299_v22 = vpop.f32.mrb[20].mxu0 }
 0x760   : > { %1420 = vrot.lane.b32.xlu0 %v1299_v22, %s2993_s19  ;;  %v2130_v23 = vpop.f32.mrb[21].mxu0 }
 0x761   : > { %v1302_v24 = vpop.f32.mrb[22].mxu0 }
 0x762   : > { %v2131_v25 = vpop.f32.mrb[23].mxu0 }
 0x78b   : > { %v1409_v27 = vpop.f32.mrb[24].mxu0 }
 0x78c   : > { %1424 = vrot.lane.b32.xlu1 %v1409_v27, %s2994_s28  ;;  %v2142_v28 = vpop.f32.mrb[25].mxu0 }
 0x78d   : > { %v1412_v29 = vpop.f32.mrb[26].mxu0 }
 0x78e   : > { %v2143_v30 = vpop.f32.mrb[27].mxu0 }
 0x7ca   : > { %v1417_v31 = vpop.permute.xlu1 %1416 }
 0x7cb   : > { %v1427_v33 = vsel %vm976_vm2, %v1076_v12, %v1417_v31 }
 0x7d2   : > { %v1421_v32 = vpop.permute.xlu0 %1420 }
 0x7d3   : > { %v1429_v34 = vsel %vm1428_vm5, %v1427_v33, %v1421_v32 }
 0x7fe   : > { %v1425_v35 = vpop.permute.xlu1 %1424 }
 0x7ff   : > { %v1431_v36 = vsel %vm1430_vm6, %v1429_v34, %v1425_v35 }
 0x800   : > { %v1432_v37 = vpack.c.bf16 %v1431_v36, %v1431_v36 }
 0x802   : > { %2149 = vmatmul.mubr.msk.bf16.vlgmr.msra.gmra.mrb[16].mxu1 %vm744_vm0, %v1432_v37 }
 0x803   : > { %2176 = vmatprep.mubr.msk.bf16.mxu1 %vm2987_vm1, %v2986_v15 }
 0x8d5   : > { %v1493_v39 = vpop.f32.mrb[16].mxu1 }
 0x8d6   : > { %v1494_v40 = vadd.f32 %v2009_v38, %v1493_v39  ;;  %v2150_v41 = vpop.f32.mrb[17].mxu1 }
 0x8d7   : > { %v1496_v42 = vpop.f32.mrb[18].mxu1 }
 0x8d8   : > { %v3647_v43 = vadd.f32 %v1494_v40, %v3548_v0  ;;  %v2151_v44 = vpop.f32.mrb[19].mxu1  ;;  %v2399_v0 = vld [vmem:[#allocation23] sm:$0xff]  }
 0x8d9   : > { %2161 = vmatpush3.bf16.msra.mxu1 %v2399_v0 }
 0x8da   : > { %v1502_v45 = vsel %vm744_vm0, %v3647_v43, 0.0  ;;  %2162 = vmatprep.subr.bf16.mxu1 %v2986_v15 }
 0x8db   : > { %1503 = vadd.xlane.f32.xlu0 %v1502_v45 }
 0x8dd   : > { %2163 = vmatpush3.bf16.msra.mxu1 %v2400_v54 }
 0x8de   : > { %2164 = vmatprep.subr.bf16.mxu1 %v2986_v15 }
 0x8e1   : > { %2165 = vmatpush3.bf16.msra.mxu1 %v2401_v55 }
 0x8e2   : > { %2166 = vmatprep.subr.bf16.mxu1 %v2986_v15 }
 0x8e5   : > { %2167 = vmatpush3.bf16.msra.mxu1 %v2402_v56 }
 0x8e6   : > { %2168 = vmatprep.subr.bf16.mxu1 %v2986_v15 }
 0x8e9   : > { %2169 = vmatpush3.bf16.msra.mxu1 %v2403_v57 }
 0x8ea   : > { %2170 = vmatprep.subr.bf16.mxu1 %v2986_v15 }
 0x8ed   : > { %2171 = vmatpush3.bf16.msra.mxu1 %v2404_v58 }
 0x8ee   : > { %2172 = vmatprep.subr.bf16.mxu1 %v2986_v15 }
 0x8f1   : > { %2173 = vmatpush3.bf16.msra.mxu1 %v2405_v5 }
 0x8f2   : > { %2174 = vmatprep.subr.bf16.mxu1 %v2986_v15 }
 0x8f5   : > { %2175 = vmatpush3.bf16.msra.mxu1 %v2406_v6 }
 0x968   : > { %v1504_v46 = vpop.xlane.xlu0 %1503 }
 0x969   : > { %v1505_v47 = vmul.f32 0.03125, %v1504_v46 }
 0x96b   : > { %v1506_v48 = vsub.f32 %v3647_v43, %v1505_v47 }
 0x96d   : > { %v1507_v49 = vmul.f32 %v1506_v48, %v1506_v48 }
 0x96f   : > { %v1508_v50 = vsel %vm744_vm0, %v1507_v49, 0.0 }
 0x970   : > { %1509 = vadd.xlane.f32.xlu1 %v1508_v50 }
 0x9fd   : > { %v1510_v59 = vpop.xlane.xlu1 %1509 }
 0x9fe   : > { %v1511_v60 = vmul.f32 0.03125, %v1510_v59 }
 0xa00   : > { %v1512_v61 = vadd.f32 1e-05, %v1511_v60 }
 0xa02   : > { %2427 = vrsqrt.f32 %v1512_v61 }
 0xa0c   : > { %v2428_v62 = vpop.eup %2427 }
 0xa0d   : > { %v1514_v1 = vmul.f32 %v2428_v62, %v1506_v48 }
 0xa0f   : > { %v1521_v3 = vmul.f32 %v2013_v63, %v1514_v1 }
 0xa11   : > { %v1528_v52 = vadd.f32 %v2014_v2, %v1521_v3 }
 0xa13   : > { %v1529_v4 = vpack.c.bf16 %v1528_v52, %v1528_v52 }
 0xa15   : > { %2157 = vmatmul.mubr.msk.bf16.vlgmr.msra.gmra.mrb[28].mxu0 %vm744_vm0, %v1529_v4 }
 0xae8   : > { %v1590_v8 = vpop.f32.mrb[28].mxu0 }
 0xae9   : > { %v1591_v9 = vadd.f32 %v2015_v7, %v1590_v8  ;;  %v2158_v10 = vpop.f32.mrb[29].mxu0 }
 0xaea   : > { %v1593_v11 = vpop.f32.mrb[30].mxu0 }
 0xaeb   : > { %v1596_v12 = vmax.f32 %v1591_v9, 0.0  ;;  %v2159_v13 = vpop.f32.mrb[31].mxu0 }
 0xaed   : > { %v1597_v14 = vpack.c.bf16 %v1596_v12, %v1596_v12 }
 0xaef   : > { %2177 = vmatmul.mubr.bf16.vlgmr.msra.gmra.mrb[20].mxu1 %v1597_v14 }
 0xbc2   : > { %v1703_v17 = vpop.f32.mrb[20].mxu1 }
 0xbc3   : > { %v1704_v18 = vadd.f32 %v2019_v16, %v1703_v17  ;;  %v2178_v15 = vpop.f32.mrb[21].mxu1 }
 0xbc4   : > { %v1706_v19 = vpop.f32.mrb[22].mxu1 }
 0xbc5   : > { %v1709_v20 = vadd.f32 %v1704_v18, %v3647_v43  ;;  %v2179_v21 = vpop.f32.mrb[23].mxu1 }
 0xbc7   : > { %1710 = vst.msk [vmem:[%s737_s6] sm:$0xff] %vm744_vm0, %v1709_v20 }
 0xbc8   : > { %2866 = shalt.err (!%p2863_p10)
}
 0xbc9   : > { %s2867_s3 = scalar_lea.hbm %s3668_s29, 128  ;;  %s2871_s16 = scalar_lea.hbm %s3806_s7, 256 }
 0xbca   : > { %p2868_p13 = scmp.ne.s32.totalorder %s3668_s29, %s2867_s3  ;;  %p2872_p12 = scmp.lt.u32.totalorder %s3668_s29, %s3806_s7 }
 0xbcb   : > { %p2873_p4 = scmp.lt.u32.totalorder %s2871_s16, %s2867_s3  ;;  %p2875_p5 = scmp.lt.u32.totalorder %s2867_s3, %s3668_s29 }
 0xbcc   : > { %p2869_p2 = pnand %p2868_p13, %p3807_p7 }
 0xbcd   : > { %p2874_p6 = por %p2873_p4, %p2872_p12 }
 0xbce   : > { %p2870_p11 = pneg %p2869_p2 }
 0xbcf   : > { %p2876_p0 = por %p2875_p5, %p2874_p6 }
 0xbd1   : > { %p2877_p8 = pnand %p2876_p0, %p2870_p11 }
 0xbd3   : > { %2880 = shalt.err (!%p2877_p8)
}
 0xbd4   : > { %2236 = dma.vmem_to_hbm [thread:$0]  (%p3807_p7), %s3670_s17, 128, %s3668_s29, %s1712_s30  }
 0xbd5 PF: > { %s3808_s24 = sld [smem:[#allocation37_spill]]  ;;  %p3809_p9 = scmp.ne.s32.totalorder %s3781_s26, 0 }
 0xbd6   : > { %p3810_p1 = scmp.ge.s32.totalorder %s2967_s23, 2 }
 0xbd8   : > { %p2286_p3 = pnand %p3810_p1, %p3809_p9 }
 0xbdb   : > { %s1738_s15 = sand.u32 1, %s3808_s24  }
 0xbdc   : > { %s1739_s21 = scalar_lea.sflag [#allocation4], %s1738_s15 }
 0xbdd   : > { %2942 = dma.done.wait (!%p2286_p3), %s1739_s21, 128  }
 0xbde   : > { %2944 = vsyncadd (!%p2286_p3), %s1739_s21, 4294967168  ;;  %s40_s23 = sadd.s32 1, %s2967_s23   ;;  %s3811_s18 = sld [smem:[#allocation38_spill]] }
 0xbdf   : > { %p37_p10 = scmp.ge.s32.totalorder %s40_s23, 4   ;;  %s3812_s19 = sld [smem:[#allocation39_spill]] }
 0xbe0   : > { %s3813_s21 = smov %s2963_s22  ;;  %s3814_s22 = smov %s3816_s1 }
 0xbe1   :  { %39 = sbr.rel (!%p37_p10) target bundleno = 25 (0x19), region = 190 }
 0xbe8   :  { %1744 = vsyncpa [#allocation3], 1 }
 0xbe9   :  { %1746 = vsyncpa [#allocation3 + $0x1], 1 }
 0xbea   :  { %1747 = vsyncpa [#allocation6], 1 }
 0xbeb   :  { %1749 = vsyncpa [#allocation6 + $0x1], 1 }
 0xbec   :  { %1750 = vsyncpa [#allocation9], 1 }
 0xbed   :  { %1751 = vsyncpa [#allocation12], 1 }
 0xbee   :  { %1752 = vsyncpa [#allocation15], 1 }
 0xbef   :  { %1753 = vsyncpa [#allocation18], 1 }
 0xbf0   :  { %1754 = vsyncpa [#allocation21], 1 }
 0xbf1   :  { %1755 = vsyncpa [#allocation24], 1 }
 0xbf2   :  { %1756 = vsyncpa [#allocation4], 1 }
 0xbf3   :  { %1758 = vsyncpa [#allocation4 + $0x1], 1 }

</bundles_post_ra>
